<compile_context>
chip_gen: v7x
topology: tpu7x:2x2x1
jax: 0.10.0
libtpu: 0.0.40
codegen_flags: <defaults>
</compile_context>

<pallas_src>
import jax
import jax.numpy as jnp
from jax import lax
from jax.experimental import pallas as pl
from jax.experimental.pallas import tpu as pltpu

# ---------------- configuration (small shapes consistent with the module) ----
B = 2                # per-view batch
B_PAD = 8            # per-view rows after sublane-aligning replication
C = 4                # image channels
H = W = 16           # spatial
HW = H * W
K = 3                # conv kernel size (stride 1, padding 1)
CKK = C * K * K      # 36
CKK_PAD = 128        # im2col contraction dim padded to a full lane group
LANE = 128
MLP_SIZE = 128       # representation dim (module default 512, shrunk for demo)
PROJ_SIZE = 64       # projection_size (module default 256); stored 128-lane padded
PROJ_HID = 128       # projection_hidden_size (module default 4096)
CLS_HID = 128        # hidden of supervised classifier MLPs (module uses 256)
N_DISEASE = 32       # cancer_types
N_METHOD = 2
BN_EPS = 1e-5
MARGIN = 1.0
ALPHA = 1.0
BETA = 1.0
N_VIEWS = 4          # anc_img_one, anc_img_two, pos_img, neg_img

# ---- layout of the stacked weight / vector operands -------------------------
W_BB_ON, W_BB_TG, W_HEAD0 = 0, 1, 2          # weight stack: backbone online/target, then heads
V_BB_ON, V_BB_TG, V_HEAD0 = 0, 1, 2          # vector stack: backbone biases, then heads
# heads (order matters): projector, predictor, triplet projector,
#                        cls_disease, cls_method, TARGET projector
H_PJ, H_PD, H_TP, H_CD, H_CM, H_TPJ = 0, 1, 2, 3, 4, 5
N_HEADS = 6
N_WMAT = W_HEAD0 + 2 * N_HEADS               # 14 matrices of (128, 128)
N_VEC = V_HEAD0 + 4 * N_HEADS                # 26 vectors of (128,)


# ---------------- the fused kernel --------------------------------------------
def _fused_forward_kernel(labels_ref, patches_ref, w_ref, vec_ref, out_ref):
    V = vec_ref[...]                                     # (N_VEC, 128) f32

    def head_mlp(x, h, nseg):
        """Linear -> BatchNorm1d (train-mode stats, per 8-row view segment) -> ReLU -> Linear.

        Each 8-row segment is one PyTorch forward call's batch (B real rows
        replicated 4x), so batch mean / biased variance match exactly.
        """
        w1 = w_ref[W_HEAD0 + 2 * h]                      # (128, 128) bf16
        w2 = w_ref[W_HEAD0 + 2 * h + 1]
        r = V_HEAD0 + 4 * h
        b1, g, bt, b2 = V[r:r + 1], V[r + 1:r + 2], V[r + 2:r + 3], V[r + 3:r + 4]
        z = jnp.dot(x.astype(jnp.bfloat16), w1, preferred_element_type=jnp.float32) + b1
        n, d = z.shape
        zs = z.reshape(nseg, n // nseg, d)
        mu = jnp.mean(zs, axis=1, keepdims=True)
        var = jnp.mean(jnp.square(zs - mu), axis=1, keepdims=True)
        z = ((zs - mu) * lax.rsqrt(var + BN_EPS)).reshape(n, d) * g + bt
        z = jnp.maximum(z, 0.0)
        return jnp.dot(z.astype(jnp.bfloat16), w2, preferred_element_type=jnp.float32) + b2

    def seg8(x, start):
        """Take the B real rows of one view and replicate to a full 8-row sublane group."""
        return jnp.concatenate([x[start:start + B]] * (B_PAD // B), axis=0)

    # ---- backbone (online): conv-as-matmul -> ReLU -> GAP (f32 sublane reduce)
    P = patches_ref[...]                                 # (N_VIEWS*B*HW, 128) bf16
    h_on = jnp.dot(P, w_ref[W_BB_ON], preferred_element_type=jnp.float32)
    h_on = jnp.maximum(h_on + V[V_BB_ON:V_BB_ON + 1], 0.0)
    reps_on = jnp.mean(h_on.reshape(N_VIEWS * B, HW, MLP_SIZE), axis=1)   # (8, 128) f32

    # ---- backbone (target): only the two anchor views are needed
    h_tg = jnp.dot(P[:2 * B * HW], w_ref[W_BB_TG], preferred_element_type=jnp.float32)
    h_tg = jnp.maximum(h_tg + V[V_BB_TG:V_BB_TG + 1], 0.0)
    reps_tg = jnp.mean(h_tg.reshape(2 * B, HW, MLP_SIZE), axis=1)         # (4, 128) f32

    r_anc1 = seg8(reps_on, 0)
    r_anc2 = seg8(reps_on, B)
    r_pos = seg8(reps_on, 2 * B)
    r_neg = seg8(reps_on, 3 * B)
    rt_anc1 = seg8(reps_tg, 0)
    rt_anc2 = seg8(reps_tg, B)

    # ---- conventional self-supervised (BYOL) branch --------------------------
    proj = head_mlp(jnp.concatenate([r_anc1, r_anc2], axis=0), H_PJ, 2)   # (16, 128)
    pred = head_mlp(proj, H_PD, 2)                                        # (16, 128)
    # target projections use the target-encoder weight slots; forward-only, so
    # .detach()/stop_gradient does not change values.
    tproj = head_mlp(jnp.concatenate([rt_anc1, rt_anc2], axis=0), H_TPJ, 2)
    pred_one, pred_two = pred[:B_PAD], pred[B_PAD:]
    tgt_one, tgt_two = tproj[:B_PAD], tproj[B_PAD:]

    def cos_loss(p, z):                                  # BYOL loss_fn: 2 - 2*cos
        pn = p / jnp.maximum(jnp.sqrt(jnp.sum(p * p, -1, keepdims=True)), 1e-12)
        zn = z / jnp.maximum(jnp.sqrt(jnp.sum(z * z, -1, keepdims=True)), 1e-12)
        return 2.0 - 2.0 * jnp.sum(pn * zn, -1, keepdims=True)            # (8, 1)

    loss_byol = jnp.mean(cos_loss(pred_one, tgt_two) + cos_loss(pred_two, tgt_one))

    # ---- attribute learning (supervised) branch ------------------------------
    dis_logits = head_mlp(r_anc1, H_CD, 1)               # (8, 128); classes >= N_DISEASE biased -1e30
    met_logits = head_mlp(r_anc1, H_CM, 1)               # (8, 128); classes >= N_METHOD biased -1e30

    col = lax.broadcasted_iota(jnp.int32, (B_PAD, LANE), 1)
    row = lax.broadcasted_iota(jnp.int32, (B_PAD, LANE), 0)
    sample = row % B                                     # replicated row -> real sample index
    dis_lab = jnp.zeros((B_PAD, LANE), jnp.int32)
    met_lab = jnp.zeros((B_PAD, LANE), jnp.int32)
    for b in range(B):                                   # B=2: two selects
        dis_lab = jnp.where(sample == b, labels_ref[b], dis_lab)
        met_lab = jnp.where(sample == b, labels_ref[B + b], met_lab)
    dis_oh = (col == dis_lab).astype(jnp.float32)
    met_oh = (col == met_lab).astype(jnp.float32)

    def ce(lg, oh):                                      # nn.CrossEntropyLoss (mean)
        m = jnp.max(lg, -1, keepdims=True)
        lse = jnp.log(jnp.sum(jnp.exp(lg - m), -1, keepdims=True)) + m
        return jnp.mean(jnp.sum(oh * (lse - lg), -1, keepdims=True))

    loss_super = ce(dis_logits, dis_oh) + ce(met_logits, met_oh)

    # ---- structured triplet branch -------------------------------------------
    tri = head_mlp(jnp.concatenate([r_anc1, r_pos, r_neg], axis=0), H_TP, 3)  # (24, 128)
    a, p, n = tri[:B_PAD], tri[B_PAD:2 * B_PAD], tri[2 * B_PAD:]
    # TODO(synk): `triplet_loss` is not defined in the reference snippet; standard
    # margin triplet loss with L2 distances is used (PyTorch TripletMarginLoss adds
    # eps=1e-6 inside pairwise_distance instead).
    d_ap = jnp.sqrt(jnp.sum(jnp.square(a - p), -1, keepdims=True) + 1e-12)
    d_an = jnp.sqrt(jnp.sum(jnp.square(a - n), -1, keepdims=True) + 1e-12)
    loss_triplet = jnp.mean(jnp.maximum(d_ap - d_an + MARGIN, 0.0))

    loss = loss_byol + ALPHA * loss_super + BETA * loss_triplet
    out_ref[0, 0] = loss
    out_ref[0, 1] = loss_byol
    out_ref[0, 2] = loss_super
    out_ref[0, 3] = loss_triplet


# ---------------- plain-JAX glue -----------------------------------------------
def _im2col(x, k):
    """NCHW image -> (B, H*W, C*k*k) patches (stride 1, 'same' padding)."""
    b, c, h, w = x.shape
    pad = k // 2
    xp = jnp.pad(x, ((0, 0), (0, 0), (pad, pad), (pad, pad)))
    cols = []
    for dh in range(k):
        for dw in range(k):
            cols.append(xp[:, :, dh:dh + h, dw:dw + w])  # (B, C, H, W)
    p = jnp.stack(cols, axis=2)                          # (B, C, k*k, H, W)
    p = p.transpose(0, 3, 4, 1, 2)                       # (B, H, W, C, k*k)
    return p.reshape(b, h * w, c * k * k)


# ---------------- parameters (deterministic, synthetic) --------------------------
def _glorot(key, din, dout):
    return jax.random.normal(key, (din, dout), jnp.float32) / jnp.sqrt(float(din))


def _init_head(key, din, dhid, dout, pad_logit_bias=0.0):
    """One MLP head, zero-padded to (128,128) matrices and 128-lane vectors."""
    k1, k2 = jax.random.split(key)
    w1 = jnp.pad(_glorot(k1, din, dhid), ((0, LANE - din), (0, LANE - dhid)))
    w2 = jnp.pad(_glorot(k2, dhid, dout), ((0, LANE - dhid), (0, LANE - dout)))
    b1 = jnp.zeros((LANE,), jnp.float32)
    g = jnp.ones((LANE,), jnp.float32)
    bt = jnp.zeros((LANE,), jnp.float32)
    # padded output lanes: 0 for projection heads (values stay exactly 0),
    # -1e30 for classifier heads (softmax denominator unchanged).
    b2 = jnp.where(jnp.arange(LANE) < dout, 0.0, pad_logit_bias).astype(jnp.float32)
    return (w1, w2), (b1, g, bt, b2)


def init_params(key):
    ks = jax.random.split(key, 6)
    wc = jnp.pad(_glorot(ks[0], CKK, MLP_SIZE),
                 ((0, CKK_PAD - CKK), (0, LANE - MLP_SIZE)))
    bc = jnp.zeros((LANE,), jnp.float32)
    pj_w, pj_v = _init_head(ks[1], MLP_SIZE, PROJ_HID, PROJ_SIZE)
    pd_w, pd_v = _init_head(ks[2], PROJ_SIZE, PROJ_HID, PROJ_SIZE)
    tp_w, tp_v = _init_head(ks[3], MLP_SIZE, PROJ_HID, PROJ_SIZE)
    cd_w, cd_v = _init_head(ks[4], MLP_SIZE, CLS_HID, N_DISEASE, pad_logit_bias=-1e30)
    cm_w, cm_v = _init_head(ks[5], MLP_SIZE, CLS_HID, N_METHOD, pad_logit_bias=-1e30)
    # Target encoder == deepcopy(online encoder) at init; it gets its OWN slots
    # in the stacks so an EMA-updated state is representable without changing the kernel.
    # TODO(synk): EMA update of the target encoder is training-time state, not forward().
    wc_tg, bc_tg = wc, bc
    tpj_w, tpj_v = pj_w, pj_v

    wstack = jnp.stack(
        [wc, wc_tg, *pj_w, *pd_w, *tp_w, *cd_w, *cm_w, *tpj_w], axis=0
    ).astype(jnp.bfloat16)                               # (N_WMAT, 128, 128) = 14 mats, one DMA
    vec = jnp.stack(
        [bc, bc_tg, *pj_v, *pd_v, *tp_v, *cd_v, *cm_v, *tpj_v], axis=0
    ).astype(jnp.float32)                                # (N_VEC, 128) = 26 vecs, one DMA
    assert wstack.shape == (N_WMAT, LANE, LANE) and vec.shape == (N_VEC, LANE)
    return {"wstack": wstack, "vec": vec}


# ---------------- full forward pass ----------------------------------------------
@jax.jit
def triplet_supervised_byol_forward(params, anc_img_one, anc_img_two, pos_img,
                                    neg_img, disease_gt, method_gt):
    # One im2col over the concatenated 4-view batch; the target path reuses the
    # first two views' patch rows inside the kernel.
    imgs = jnp.concatenate([anc_img_one, anc_img_two, pos_img, neg_img], axis=0)
    nb = imgs.shape[0]                                   # N_VIEWS * B
    patches = _im2col(imgs, K).reshape(nb * HW, CKK)
    # TODO(synk): for v5e-scale production inputs, assemble the 128-lane patch tiles
    # in-kernel from the raw NCHW images (memory_space=pl.ANY + manual copies) instead
    # of shipping the 36->128 zero-padded im2col through HBM.
    patches = jnp.pad(patches, ((0, 0), (0, CKK_PAD - CKK))).astype(jnp.bfloat16)

    labels = jnp.concatenate([disease_gt, method_gt]).astype(jnp.int32)   # (2*B,) -> SMEM

    losses = pl.pallas_call(
        _fused_forward_kernel,
        out_shape=jax.ShapeDtypeStruct((1, 4), jnp.float32),
        in_specs=[
            pl.BlockSpec(memory_space=pltpu.MemorySpace.SMEM),   # labels (int32 scalars)
            pl.BlockSpec(memory_space=pltpu.MemorySpace.VMEM),   # im2col patches
            pl.BlockSpec(memory_space=pltpu.MemorySpace.VMEM),   # stacked bf16 weights
            pl.BlockSpec(memory_space=pltpu.MemorySpace.VMEM),   # stacked f32 bias/BN params
        ],
        out_specs=pl.BlockSpec(memory_space=pltpu.MemorySpace.SMEM),
        compiler_params=pltpu.CompilerParams(vmem_limit_bytes=32 * 1024 * 1024),
    )(labels, patches, params["wstack"], params["vec"])

    return losses[0, 0], losses[0, 1], losses[0, 2], losses[0, 3]


# ---------------- demo --------------------------------------------------------------
if __name__ == "__main__":
    key = jax.random.PRNGKey(0)
    kp, k1, k2, k3, k4, k5, k6 = jax.random.split(key, 7)
    params = init_params(kp)

    anc_img_one = jax.random.normal(k1, (B, C, H, W), jnp.float32)
    anc_img_two = jax.random.normal(k2, (B, C, H, W), jnp.float32)
    pos_img = jax.random.normal(k3, (B, C, H, W), jnp.float32)
    neg_img = jax.random.normal(k4, (B, C, H, W), jnp.float32)
    disease_gt = jax.random.randint(k5, (B,), 0, N_DISEASE, dtype=jnp.int32)
    method_gt = jax.random.randint(k6, (B,), 0, N_METHOD, dtype=jnp.int32)

    outs = triplet_supervised_byol_forward(
        params, anc_img_one, anc_img_two, pos_img, neg_img, disease_gt, method_gt
    )
    outs = jax.block_until_ready(outs)
    loss, loss_byol, loss_super, loss_triplet = outs
    assert all(bool(jnp.isfinite(v)) for v in (loss, loss_byol, loss_super, loss_triplet))
    print("KERNEL_OK")
</pallas_src>

<mosaic_0001>
module attributes {stable_mosaic.version = 11 : i64} {
  func.func @_fused_forward_kernel(%arg0: memref<4xi32, #tpu.memory_space<smem>>, %arg1: memref<2048x128xbf16, #tpu.memory_space<vmem>>, %arg2: memref<14x128x128xbf16, #tpu.memory_space<vmem>>, %arg3: memref<26x128xf32, #tpu.memory_space<vmem>>, %arg4: memref<1x4xf32, #tpu.memory_space<smem>>) attributes {dimension_semantics = [], scalar_prefetch = 0 : i64, scratch_operands = 0 : i64, tpu.core_type = #tpu.core_type<tc>} {
    %c0 = arith.constant 0 : index
    %c0_0 = arith.constant 0 : index
    %0 = vector.load %arg3[%c0, %c0_0] : memref<26x128xf32, #tpu.memory_space<vmem>>, vector<26x128xf32>
    %c0_1 = arith.constant 0 : index
    %c0_2 = arith.constant 0 : index
    %1 = vector.load %arg1[%c0_1, %c0_2] : memref<2048x128xbf16, #tpu.memory_space<vmem>>, vector<2048x128xbf16>
    %c0_3 = arith.constant 0 : index
    %c0_4 = arith.constant 0 : index
    %c0_5 = arith.constant 0 : index
    %2 = vector.load %arg2[%c0_3, %c0_4, %c0_5] : memref<14x128x128xbf16, #tpu.memory_space<vmem>>, vector<1x128x128xbf16>
    %3 = vector.shape_cast %2 : vector<1x128x128xbf16> to vector<128x128xbf16>
    %cst = arith.constant dense<0.000000e+00> : vector<2048x128xf32>
    %4 = tpu.matmul %1, %3, %cst {dimension_numbers = #tpu.dot_dimension_numbers<[1], [0], [0], [1], [0, 0, 1, 1], [], []>} : vector<2048x128xbf16>, vector<128x128xbf16>, vector<2048x128xf32> -> vector<2048x128xf32>
    %5 = vector.extract_strided_slice %0 {offsets = [0, 0], sizes = [1, 128], strides = [1, 1]} : vector<26x128xf32> to vector<1x128xf32>
    %6 = vector.broadcast %5 : vector<1x128xf32> to vector<2048x128xf32>
    %7 = arith.addf %4, %6 : vector<2048x128xf32>
    %cst_6 = arith.constant 0.000000e+00 : f32
    %8 = vector.broadcast %cst_6 : f32 to vector<2048x128xf32>
    %9 = arith.maximumf %7, %8 : vector<2048x128xf32>
    %10 = vector.shape_cast %9 : vector<2048x128xf32> to vector<8x256x128xf32>
    %cst_7 = arith.constant dense<0.000000e+00> : vector<8x128xf32>
    %11 = vector.multi_reduction <add>, %10, %cst_7 [1] : vector<8x256x128xf32> to vector<8x128xf32>
    %cst_8 = arith.constant 2.560000e+02 : f32
    %12 = vector.broadcast %cst_8 : f32 to vector<8x128xf32>
    %13 = arith.divf %11, %12 : vector<8x128xf32>
    %14 = vector.extract_strided_slice %1 {offsets = [0, 0], sizes = [1024, 128], strides = [1, 1]} : vector<2048x128xbf16> to vector<1024x128xbf16>
    %c1 = arith.constant 1 : index
    %c0_9 = arith.constant 0 : index
    %c0_10 = arith.constant 0 : index
    %15 = vector.load %arg2[%c1, %c0_9, %c0_10] : memref<14x128x128xbf16, #tpu.memory_space<vmem>>, vector<1x128x128xbf16>
    %16 = vector.shape_cast %15 : vector<1x128x128xbf16> to vector<128x128xbf16>
    %cst_11 = arith.constant dense<0.000000e+00> : vector<1024x128xf32>
    %17 = tpu.matmul %14, %16, %cst_11 {dimension_numbers = #tpu.dot_dimension_numbers<[1], [0], [0], [1], [0, 0, 1, 1], [], []>} : vector<1024x128xbf16>, vector<128x128xbf16>, vector<1024x128xf32> -> vector<1024x128xf32>
    %18 = vector.extract_strided_slice %0 {offsets = [1, 0], sizes = [1, 128], strides = [1, 1]} : vector<26x128xf32> to vector<1x128xf32>
    %19 = vector.broadcast %18 : vector<1x128xf32> to vector<1024x128xf32>
    %20 = arith.addf %17, %19 : vector<1024x128xf32>
    %cst_12 = arith.constant 0.000000e+00 : f32
    %21 = vector.broadcast %cst_12 : f32 to vector<1024x128xf32>
    %22 = arith.maximumf %20, %21 : vector<1024x128xf32>
    %23 = vector.shape_cast %22 : vector<1024x128xf32> to vector<4x256x128xf32>
    %cst_13 = arith.constant dense<0.000000e+00> : vector<4x128xf32>
    %24 = vector.multi_reduction <add>, %23, %cst_13 [1] : vector<4x256x128xf32> to vector<4x128xf32>
    %cst_14 = arith.constant 2.560000e+02 : f32
    %25 = vector.broadcast %cst_14 : f32 to vector<4x128xf32>
    %26 = arith.divf %24, %25 : vector<4x128xf32>
    %27 = vector.extract_strided_slice %13 {offsets = [0, 0], sizes = [2, 128], strides = [1, 1]} : vector<8x128xf32> to vector<2x128xf32>
    %28 = tpu.concatenate %27, %27, %27, %27 in 0 : vector<2x128xf32>, vector<2x128xf32>, vector<2x128xf32>, vector<2x128xf32> -> vector<8x128xf32>
    %29 = vector.extract_strided_slice %13 {offsets = [2, 0], sizes = [2, 128], strides = [1, 1]} : vector<8x128xf32> to vector<2x128xf32>
    %30 = tpu.concatenate %29, %29, %29, %29 in 0 : vector<2x128xf32>, vector<2x128xf32>, vector<2x128xf32>, vector<2x128xf32> -> vector<8x128xf32>
    %31 = vector.extract_strided_slice %13 {offsets = [4, 0], sizes = [2, 128], strides = [1, 1]} : vector<8x128xf32> to vector<2x128xf32>
    %32 = tpu.concatenate %31, %31, %31, %31 in 0 : vector<2x128xf32>, vector<2x128xf32>, vector<2x128xf32>, vector<2x128xf32> -> vector<8x128xf32>
    %33 = vector.extract_strided_slice %13 {offsets = [6, 0], sizes = [2, 128], strides = [1, 1]} : vector<8x128xf32> to vector<2x128xf32>
    %34 = tpu.concatenate %33, %33, %33, %33 in 0 : vector<2x128xf32>, vector<2x128xf32>, vector<2x128xf32>, vector<2x128xf32> -> vector<8x128xf32>
    %35 = vector.extract_strided_slice %26 {offsets = [0, 0], sizes = [2, 128], strides = [1, 1]} : vector<4x128xf32> to vector<2x128xf32>
    %36 = tpu.concatenate %35, %35, %35, %35 in 0 : vector<2x128xf32>, vector<2x128xf32>, vector<2x128xf32>, vector<2x128xf32> -> vector<8x128xf32>
    %37 = vector.extract_strided_slice %26 {offsets = [2, 0], sizes = [2, 128], strides = [1, 1]} : vector<4x128xf32> to vector<2x128xf32>
    %38 = tpu.concatenate %37, %37, %37, %37 in 0 : vector<2x128xf32>, vector<2x128xf32>, vector<2x128xf32>, vector<2x128xf32> -> vector<8x128xf32>
    %39 = tpu.concatenate %28, %30 in 0 : vector<8x128xf32>, vector<8x128xf32> -> vector<16x128xf32>
    %c2 = arith.constant 2 : index
    %c0_15 = arith.constant 0 : index
    %c0_16 = arith.constant 0 : index
    %40 = vector.load %arg2[%c2, %c0_15, %c0_16] : memref<14x128x128xbf16, #tpu.memory_space<vmem>>, vector<1x128x128xbf16>
    %41 = vector.shape_cast %40 : vector<1x128x128xbf16> to vector<128x128xbf16>
    %c3 = arith.constant 3 : index
    %c0_17 = arith.constant 0 : index
    %c0_18 = arith.constant 0 : index
    %42 = vector.load %arg2[%c3, %c0_17, %c0_18] : memref<14x128x128xbf16, #tpu.memory_space<vmem>>, vector<1x128x128xbf16>
    %43 = vector.shape_cast %42 : vector<1x128x128xbf16> to vector<128x128xbf16>
    %44 = vector.extract_strided_slice %0 {offsets = [2, 0], sizes = [1, 128], strides = [1, 1]} : vector<26x128xf32> to vector<1x128xf32>
    %45 = vector.extract_strided_slice %0 {offsets = [3, 0], sizes = [1, 128], strides = [1, 1]} : vector<26x128xf32> to vector<1x128xf32>
    %46 = vector.extract_strided_slice %0 {offsets = [4, 0], sizes = [1, 128], strides = [1, 1]} : vector<26x128xf32> to vector<1x128xf32>
    %47 = vector.extract_strided_slice %0 {offsets = [5, 0], sizes = [1, 128], strides = [1, 1]} : vector<26x128xf32> to vector<1x128xf32>
    %48 = arith.truncf %39 : vector<16x128xf32> to vector<16x128xbf16>
    %cst_19 = arith.constant dense<0.000000e+00> : vector<16x128xf32>
    %49 = tpu.matmul %48, %41, %cst_19 {dimension_numbers = #tpu.dot_dimension_numbers<[1], [0], [0], [1], [0, 0, 1, 1], [], []>} : vector<16x128xbf16>, vector<128x128xbf16>, vector<16x128xf32> -> vector<16x128xf32>
    %50 = vector.broadcast %44 : vector<1x128xf32> to vector<16x128xf32>
    %51 = arith.addf %49, %50 : vector<16x128xf32>
    %52 = vector.shape_cast %51 : vector<16x128xf32> to vector<2x8x128xf32>
    %cst_20 = arith.constant dense<0.000000e+00> : vector<2x128xf32>
    %53 = vector.multi_reduction <add>, %52, %cst_20 [1] : vector<2x8x128xf32> to vector<2x128xf32>
    %54 = vector.shape_cast %53 : vector<2x128xf32> to vector<2x1x128xf32>
    %cst_21 = arith.constant 8.000000e+00 : f32
    %55 = vector.broadcast %cst_21 : f32 to vector<2x1x128xf32>
    %56 = arith.divf %54, %55 : vector<2x1x128xf32>
    %57 = vector.broadcast %56 : vector<2x1x128xf32> to vector<2x8x128xf32>
    %58 = arith.subf %52, %57 : vector<2x8x128xf32>
    %59 = arith.mulf %58, %58 : vector<2x8x128xf32>
    %cst_22 = arith.constant dense<0.000000e+00> : vector<2x128xf32>
    %60 = vector.multi_reduction <add>, %59, %cst_22 [1] : vector<2x8x128xf32> to vector<2x128xf32>
    %61 = vector.shape_cast %60 : vector<2x128xf32> to vector<2x1x128xf32>
    %cst_23 = arith.constant 8.000000e+00 : f32
    %62 = vector.broadcast %cst_23 : f32 to vector<2x1x128xf32>
    %63 = arith.divf %61, %62 : vector<2x1x128xf32>
    %64 = vector.broadcast %56 : vector<2x1x128xf32> to vector<2x8x128xf32>
    %65 = arith.subf %52, %64 : vector<2x8x128xf32>
    %cst_24 = arith.constant 9.99999974E-6 : f32
    %66 = vector.broadcast %cst_24 : f32 to vector<2x1x128xf32>
    %67 = arith.addf %63, %66 : vector<2x1x128xf32>
    %68 = math.rsqrt %67 : vector<2x1x128xf32>
    %69 = vector.broadcast %68 : vector<2x1x128xf32> to vector<2x8x128xf32>
    %70 = arith.mulf %65, %69 : vector<2x8x128xf32>
    %71 = vector.shape_cast %70 : vector<2x8x128xf32> to vector<16x128xf32>
    %72 = vector.broadcast %45 : vector<1x128xf32> to vector<16x128xf32>
    %73 = arith.mulf %71, %72 : vector<16x128xf32>
    %74 = vector.broadcast %46 : vector<1x128xf32> to vector<16x128xf32>
    %75 = arith.addf %73, %74 : vector<16x128xf32>
    %cst_25 = arith.constant 0.000000e+00 : f32
    %76 = vector.broadcast %cst_25 : f32 to vector<16x128xf32>
    %77 = arith.maximumf %75, %76 : vector<16x128xf32>
    %78 = arith.truncf %77 : vector<16x128xf32> to vector<16x128xbf16>
    %cst_26 = arith.constant dense<0.000000e+00> : vector<16x128xf32>
    %79 = tpu.matmul %78, %43, %cst_26 {dimension_numbers = #tpu.dot_dimension_numbers<[1], [0], [0], [1], [0, 0, 1, 1], [], []>} : vector<16x128xbf16>, vector<128x128xbf16>, vector<16x128xf32> -> vector<16x128xf32>
    %80 = vector.broadcast %47 : vector<1x128xf32> to vector<16x128xf32>
    %81 = arith.addf %79, %80 : vector<16x128xf32>
    %c4 = arith.constant 4 : index
    %c0_27 = arith.constant 0 : index
    %c0_28 = arith.constant 0 : index
    %82 = vector.load %arg2[%c4, %c0_27, %c0_28] : memref<14x128x128xbf16, #tpu.memory_space<vmem>>, vector<1x128x128xbf16>
    %83 = vector.shape_cast %82 : vector<1x128x128xbf16> to vector<128x128xbf16>
    %c5 = arith.constant 5 : index
    %c0_29 = arith.constant 0 : index
    %c0_30 = arith.constant 0 : index
    %84 = vector.load %arg2[%c5, %c0_29, %c0_30] : memref<14x128x128xbf16, #tpu.memory_space<vmem>>, vector<1x128x128xbf16>
    %85 = vector.shape_cast %84 : vector<1x128x128xbf16> to vector<128x128xbf16>
    %86 = vector.extract_strided_slice %0 {offsets = [6, 0], sizes = [1, 128], strides = [1, 1]} : vector<26x128xf32> to vector<1x128xf32>
    %87 = vector.extract_strided_slice %0 {offsets = [7, 0], sizes = [1, 128], strides = [1, 1]} : vector<26x128xf32> to vector<1x128xf32>
    %88 = vector.extract_strided_slice %0 {offsets = [8, 0], sizes = [1, 128], strides = [1, 1]} : vector<26x128xf32> to vector<1x128xf32>
    %89 = vector.extract_strided_slice %0 {offsets = [9, 0], sizes = [1, 128], strides = [1, 1]} : vector<26x128xf32> to vector<1x128xf32>
    %90 = arith.truncf %81 : vector<16x128xf32> to vector<16x128xbf16>
    %cst_31 = arith.constant dense<0.000000e+00> : vector<16x128xf32>
    %91 = tpu.matmul %90, %83, %cst_31 {dimension_numbers = #tpu.dot_dimension_numbers<[1], [0], [0], [1], [0, 0, 1, 1], [], []>} : vector<16x128xbf16>, vector<128x128xbf16>, vector<16x128xf32> -> vector<16x128xf32>
    %92 = vector.broadcast %86 : vector<1x128xf32> to vector<16x128xf32>
    %93 = arith.addf %91, %92 : vector<16x128xf32>
    %94 = vector.shape_cast %93 : vector<16x128xf32> to vector<2x8x128xf32>
    %cst_32 = arith.constant dense<0.000000e+00> : vector<2x128xf32>
    %95 = vector.multi_reduction <add>, %94, %cst_32 [1] : vector<2x8x128xf32> to vector<2x128xf32>
    %96 = vector.shape_cast %95 : vector<2x128xf32> to vector<2x1x128xf32>
    %cst_33 = arith.constant 8.000000e+00 : f32
    %97 = vector.broadcast %cst_33 : f32 to vector<2x1x128xf32>
    %98 = arith.divf %96, %97 : vector<2x1x128xf32>
    %99 = vector.broadcast %98 : vector<2x1x128xf32> to vector<2x8x128xf32>
    %100 = arith.subf %94, %99 : vector<2x8x128xf32>
    %101 = arith.mulf %100, %100 : vector<2x8x128xf32>
    %cst_34 = arith.constant dense<0.000000e+00> : vector<2x128xf32>
    %102 = vector.multi_reduction <add>, %101, %cst_34 [1] : vector<2x8x128xf32> to vector<2x128xf32>
    %103 = vector.shape_cast %102 : vector<2x128xf32> to vector<2x1x128xf32>
    %cst_35 = arith.constant 8.000000e+00 : f32
    %104 = vector.broadcast %cst_35 : f32 to vector<2x1x128xf32>
    %105 = arith.divf %103, %104 : vector<2x1x128xf32>
    %106 = vector.broadcast %98 : vector<2x1x128xf32> to vector<2x8x128xf32>
    %107 = arith.subf %94, %106 : vector<2x8x128xf32>
    %cst_36 = arith.constant 9.99999974E-6 : f32
    %108 = vector.broadcast %cst_36 : f32 to vector<2x1x128xf32>
    %109 = arith.addf %105, %108 : vector<2x1x128xf32>
    %110 = math.rsqrt %109 : vector<2x1x128xf32>
    %111 = vector.broadcast %110 : vector<2x1x128xf32> to vector<2x8x128xf32>
    %112 = arith.mulf %107, %111 : vector<2x8x128xf32>
    %113 = vector.shape_cast %112 : vector<2x8x128xf32> to vector<16x128xf32>
    %114 = vector.broadcast %87 : vector<1x128xf32> to vector<16x128xf32>
    %115 = arith.mulf %113, %114 : vector<16x128xf32>
    %116 = vector.broadcast %88 : vector<1x128xf32> to vector<16x128xf32>
    %117 = arith.addf %115, %116 : vector<16x128xf32>
    %cst_37 = arith.constant 0.000000e+00 : f32
    %118 = vector.broadcast %cst_37 : f32 to vector<16x128xf32>
    %119 = arith.maximumf %117, %118 : vector<16x128xf32>
    %120 = arith.truncf %119 : vector<16x128xf32> to vector<16x128xbf16>
    %cst_38 = arith.constant dense<0.000000e+00> : vector<16x128xf32>
    %121 = tpu.matmul %120, %85, %cst_38 {dimension_numbers = #tpu.dot_dimension_numbers<[1], [0], [0], [1], [0, 0, 1, 1], [], []>} : vector<16x128xbf16>, vector<128x128xbf16>, vector<16x128xf32> -> vector<16x128xf32>
    %122 = vector.broadcast %89 : vector<1x128xf32> to vector<16x128xf32>
    %123 = arith.addf %121, %122 : vector<16x128xf32>
    %124 = tpu.concatenate %36, %38 in 0 : vector<8x128xf32>, vector<8x128xf32> -> vector<16x128xf32>
    %c12 = arith.constant 12 : index
    %c0_39 = arith.constant 0 : index
    %c0_40 = arith.constant 0 : index
    %125 = vector.load %arg2[%c12, %c0_39, %c0_40] : memref<14x128x128xbf16, #tpu.memory_space<vmem>>, vector<1x128x128xbf16>
    %126 = vector.shape_cast %125 : vector<1x128x128xbf16> to vector<128x128xbf16>
    %c13 = arith.constant 13 : index
    %c0_41 = arith.constant 0 : index
    %c0_42 = arith.constant 0 : index
    %127 = vector.load %arg2[%c13, %c0_41, %c0_42] : memref<14x128x128xbf16, #tpu.memory_space<vmem>>, vector<1x128x128xbf16>
    %128 = vector.shape_cast %127 : vector<1x128x128xbf16> to vector<128x128xbf16>
    %129 = vector.extract_strided_slice %0 {offsets = [22, 0], sizes = [1, 128], strides = [1, 1]} : vector<26x128xf32> to vector<1x128xf32>
    %130 = vector.extract_strided_slice %0 {offsets = [23, 0], sizes = [1, 128], strides = [1, 1]} : vector<26x128xf32> to vector<1x128xf32>
    %131 = vector.extract_strided_slice %0 {offsets = [24, 0], sizes = [1, 128], strides = [1, 1]} : vector<26x128xf32> to vector<1x128xf32>
    %132 = vector.extract_strided_slice %0 {offsets = [25, 0], sizes = [1, 128], strides = [1, 1]} : vector<26x128xf32> to vector<1x128xf32>
    %133 = arith.truncf %124 : vector<16x128xf32> to vector<16x128xbf16>
    %cst_43 = arith.constant dense<0.000000e+00> : vector<16x128xf32>
    %134 = tpu.matmul %133, %126, %cst_43 {dimension_numbers = #tpu.dot_dimension_numbers<[1], [0], [0], [1], [0, 0, 1, 1], [], []>} : vector<16x128xbf16>, vector<128x128xbf16>, vector<16x128xf32> -> vector<16x128xf32>
    %135 = vector.broadcast %129 : vector<1x128xf32> to vector<16x128xf32>
    %136 = arith.addf %134, %135 : vector<16x128xf32>
    %137 = vector.shape_cast %136 : vector<16x128xf32> to vector<2x8x128xf32>
    %cst_44 = arith.constant dense<0.000000e+00> : vector<2x128xf32>
    %138 = vector.multi_reduction <add>, %137, %cst_44 [1] : vector<2x8x128xf32> to vector<2x128xf32>
    %139 = vector.shape_cast %138 : vector<2x128xf32> to vector<2x1x128xf32>
    %cst_45 = arith.constant 8.000000e+00 : f32
    %140 = vector.broadcast %cst_45 : f32 to vector<2x1x128xf32>
    %141 = arith.divf %139, %140 : vector<2x1x128xf32>
    %142 = vector.broadcast %141 : vector<2x1x128xf32> to vector<2x8x128xf32>
    %143 = arith.subf %137, %142 : vector<2x8x128xf32>
    %144 = arith.mulf %143, %143 : vector<2x8x128xf32>
    %cst_46 = arith.constant dense<0.000000e+00> : vector<2x128xf32>
    %145 = vector.multi_reduction <add>, %144, %cst_46 [1] : vector<2x8x128xf32> to vector<2x128xf32>
    %146 = vector.shape_cast %145 : vector<2x128xf32> to vector<2x1x128xf32>
    %cst_47 = arith.constant 8.000000e+00 : f32
    %147 = vector.broadcast %cst_47 : f32 to vector<2x1x128xf32>
    %148 = arith.divf %146, %147 : vector<2x1x128xf32>
    %149 = vector.broadcast %141 : vector<2x1x128xf32> to vector<2x8x128xf32>
    %150 = arith.subf %137, %149 : vector<2x8x128xf32>
    %cst_48 = arith.constant 9.99999974E-6 : f32
    %151 = vector.broadcast %cst_48 : f32 to vector<2x1x128xf32>
    %152 = arith.addf %148, %151 : vector<2x1x128xf32>
    %153 = math.rsqrt %152 : vector<2x1x128xf32>
    %154 = vector.broadcast %153 : vector<2x1x128xf32> to vector<2x8x128xf32>
    %155 = arith.mulf %150, %154 : vector<2x8x128xf32>
    %156 = vector.shape_cast %155 : vector<2x8x128xf32> to vector<16x128xf32>
    %157 = vector.broadcast %130 : vector<1x128xf32> to vector<16x128xf32>
    %158 = arith.mulf %156, %157 : vector<16x128xf32>
    %159 = vector.broadcast %131 : vector<1x128xf32> to vector<16x128xf32>
    %160 = arith.addf %158, %159 : vector<16x128xf32>
    %cst_49 = arith.constant 0.000000e+00 : f32
    %161 = vector.broadcast %cst_49 : f32 to vector<16x128xf32>
    %162 = arith.maximumf %160, %161 : vector<16x128xf32>
    %163 = arith.truncf %162 : vector<16x128xf32> to vector<16x128xbf16>
    %cst_50 = arith.constant dense<0.000000e+00> : vector<16x128xf32>
    %164 = tpu.matmul %163, %128, %cst_50 {dimension_numbers = #tpu.dot_dimension_numbers<[1], [0], [0], [1], [0, 0, 1, 1], [], []>} : vector<16x128xbf16>, vector<128x128xbf16>, vector<16x128xf32> -> vector<16x128xf32>
    %165 = vector.broadcast %132 : vector<1x128xf32> to vector<16x128xf32>
    %166 = arith.addf %164, %165 : vector<16x128xf32>
    %167 = vector.extract_strided_slice %123 {offsets = [0, 0], sizes = [8, 128], strides = [1, 1]} : vector<16x128xf32> to vector<8x128xf32>
    %168 = vector.extract_strided_slice %123 {offsets = [8, 0], sizes = [8, 128], strides = [1, 1]} : vector<16x128xf32> to vector<8x128xf32>
    %169 = vector.extract_strided_slice %166 {offsets = [0, 0], sizes = [8, 128], strides = [1, 1]} : vector<16x128xf32> to vector<8x128xf32>
    %170 = vector.extract_strided_slice %166 {offsets = [8, 0], sizes = [8, 128], strides = [1, 1]} : vector<16x128xf32> to vector<8x128xf32>
    %171 = arith.mulf %167, %167 : vector<8x128xf32>
    %cst_51 = arith.constant dense<0.000000e+00> : vector<8xf32>
    %172 = vector.multi_reduction <add>, %171, %cst_51 [1] : vector<8x128xf32> to vector<8xf32>
    %173 = vector.shape_cast %172 : vector<8xf32> to vector<8x1xf32>
    %174 = math.sqrt %173 : vector<8x1xf32>
    %cst_52 = arith.constant 9.99999996E-13 : f32
    %175 = vector.broadcast %cst_52 : f32 to vector<8x1xf32>
    %176 = arith.maximumf %174, %175 : vector<8x1xf32>
    %177 = vector.broadcast %176 : vector<8x1xf32> to vector<8x128xf32>
    %178 = arith.divf %167, %177 : vector<8x128xf32>
    %179 = arith.mulf %170, %170 : vector<8x128xf32>
    %cst_53 = arith.constant dense<0.000000e+00> : vector<8xf32>
    %180 = vector.multi_reduction <add>, %179, %cst_53 [1] : vector<8x128xf32> to vector<8xf32>
    %181 = vector.shape_cast %180 : vector<8xf32> to vector<8x1xf32>
    %182 = math.sqrt %181 : vector<8x1xf32>
    %cst_54 = arith.constant 9.99999996E-13 : f32
    %183 = vector.broadcast %cst_54 : f32 to vector<8x1xf32>
    %184 = arith.maximumf %182, %183 : vector<8x1xf32>
    %185 = vector.broadcast %184 : vector<8x1xf32> to vector<8x128xf32>
    %186 = arith.divf %170, %185 : vector<8x128xf32>
    %187 = arith.mulf %178, %186 : vector<8x128xf32>
    %cst_55 = arith.constant dense<0.000000e+00> : vector<8xf32>
    %188 = vector.multi_reduction <add>, %187, %cst_55 [1] : vector<8x128xf32> to vector<8xf32>
    %189 = vector.shape_cast %188 : vector<8xf32> to vector<8x1xf32>
    %cst_56 = arith.constant 2.000000e+00 : f32
    %190 = vector.broadcast %cst_56 : f32 to vector<8x1xf32>
    %191 = arith.mulf %190, %189 : vector<8x1xf32>
    %cst_57 = arith.constant 2.000000e+00 : f32
    %192 = vector.broadcast %cst_57 : f32 to vector<8x1xf32>
    %193 = arith.subf %192, %191 : vector<8x1xf32>
    %194 = arith.mulf %168, %168 : vector<8x128xf32>
    %cst_58 = arith.constant dense<0.000000e+00> : vector<8xf32>
    %195 = vector.multi_reduction <add>, %194, %cst_58 [1] : vector<8x128xf32> to vector<8xf32>
    %196 = vector.shape_cast %195 : vector<8xf32> to vector<8x1xf32>
    %197 = math.sqrt %196 : vector<8x1xf32>
    %cst_59 = arith.constant 9.99999996E-13 : f32
    %198 = vector.broadcast %cst_59 : f32 to vector<8x1xf32>
    %199 = arith.maximumf %197, %198 : vector<8x1xf32>
    %200 = vector.broadcast %199 : vector<8x1xf32> to vector<8x128xf32>
    %201 = arith.divf %168, %200 : vector<8x128xf32>
    %202 = arith.mulf %169, %169 : vector<8x128xf32>
    %cst_60 = arith.constant dense<0.000000e+00> : vector<8xf32>
    %203 = vector.multi_reduction <add>, %202, %cst_60 [1] : vector<8x128xf32> to vector<8xf32>
    %204 = vector.shape_cast %203 : vector<8xf32> to vector<8x1xf32>
    %205 = math.sqrt %204 : vector<8x1xf32>
    %cst_61 = arith.constant 9.99999996E-13 : f32
    %206 = vector.broadcast %cst_61 : f32 to vector<8x1xf32>
    %207 = arith.maximumf %205, %206 : vector<8x1xf32>
    %208 = vector.broadcast %207 : vector<8x1xf32> to vector<8x128xf32>
    %209 = arith.divf %169, %208 : vector<8x128xf32>
    %210 = arith.mulf %201, %209 : vector<8x128xf32>
    %cst_62 = arith.constant dense<0.000000e+00> : vector<8xf32>
    %211 = vector.multi_reduction <add>, %210, %cst_62 [1] : vector<8x128xf32> to vector<8xf32>
    %212 = vector.shape_cast %211 : vector<8xf32> to vector<8x1xf32>
    %cst_63 = arith.constant 2.000000e+00 : f32
    %213 = vector.broadcast %cst_63 : f32 to vector<8x1xf32>
    %214 = arith.mulf %213, %212 : vector<8x1xf32>
    %cst_64 = arith.constant 2.000000e+00 : f32
    %215 = vector.broadcast %cst_64 : f32 to vector<8x1xf32>
    %216 = arith.subf %215, %214 : vector<8x1xf32>
    %217 = arith.addf %193, %216 : vector<8x1xf32>
    %218 = vector.shape_cast %217 : vector<8x1xf32> to vector<1x8x1xf32>
    %cst_65 = arith.constant dense<0.000000e+00> : vector<1xf32>
    %219 = vector.multi_reduction <add>, %218, %cst_65 [1, 2] : vector<1x8x1xf32> to vector<1xf32>
    %220 = vector.shape_cast %219 : vector<1xf32> to vector<1x1x1xf32>
    %221 = vector.extract %220[0, 0, 0] : f32 from vector<1x1x1xf32>
    %cst_66 = arith.constant 8.000000e+00 : f32
    %222 = arith.divf %221, %cst_66 : f32
    %c8 = arith.constant 8 : index
    %c0_67 = arith.constant 0 : index
    %c0_68 = arith.constant 0 : index
    %223 = vector.load %arg2[%c8, %c0_67, %c0_68] : memref<14x128x128xbf16, #tpu.memory_space<vmem>>, vector<1x128x128xbf16>
    %224 = vector.shape_cast %223 : vector<1x128x128xbf16> to vector<128x128xbf16>
    %c9 = arith.constant 9 : index
    %c0_69 = arith.constant 0 : index
    %c0_70 = arith.constant 0 : index
    %225 = vector.load %arg2[%c9, %c0_69, %c0_70] : memref<14x128x128xbf16, #tpu.memory_space<vmem>>, vector<1x128x128xbf16>
    %226 = vector.shape_cast %225 : vector<1x128x128xbf16> to vector<128x128xbf16>
    %227 = vector.extract_strided_slice %0 {offsets = [14, 0], sizes = [1, 128], strides = [1, 1]} : vector<26x128xf32> to vector<1x128xf32>
    %228 = vector.extract_strided_slice %0 {offsets = [15, 0], sizes = [1, 128], strides = [1, 1]} : vector<26x128xf32> to vector<1x128xf32>
    %229 = vector.extract_strided_slice %0 {offsets = [16, 0], sizes = [1, 128], strides = [1, 1]} : vector<26x128xf32> to vector<1x128xf32>
    %230 = vector.extract_strided_slice %0 {offsets = [17, 0], sizes = [1, 128], strides = [1, 1]} : vector<26x128xf32> to vector<1x128xf32>
    %231 = arith.truncf %28 : vector<8x128xf32> to vector<8x128xbf16>
    %cst_71 = arith.constant dense<0.000000e+00> : vector<8x128xf32>
    %232 = tpu.matmul %231, %224, %cst_71 {dimension_numbers = #tpu.dot_dimension_numbers<[1], [0], [0], [1], [0, 0, 1, 1], [], []>} : vector<8x128xbf16>, vector<128x128xbf16>, vector<8x128xf32> -> vector<8x128xf32>
    %233 = vector.broadcast %227 : vector<1x128xf32> to vector<8x128xf32>
    %234 = arith.addf %232, %233 : vector<8x128xf32>
    %235 = vector.shape_cast %234 : vector<8x128xf32> to vector<1x8x128xf32>
    %cst_72 = arith.constant dense<0.000000e+00> : vector<1x128xf32>
    %236 = vector.multi_reduction <add>, %235, %cst_72 [1] : vector<1x8x128xf32> to vector<1x128xf32>
    %237 = vector.shape_cast %236 : vector<1x128xf32> to vector<1x1x128xf32>
    %cst_73 = arith.constant 8.000000e+00 : f32
    %238 = vector.broadcast %cst_73 : f32 to vector<1x1x128xf32>
    %239 = arith.divf %237, %238 : vector<1x1x128xf32>
    %240 = vector.broadcast %239 : vector<1x1x128xf32> to vector<1x8x128xf32>
    %241 = arith.subf %235, %240 : vector<1x8x128xf32>
    %242 = arith.mulf %241, %241 : vector<1x8x128xf32>
    %cst_74 = arith.constant dense<0.000000e+00> : vector<1x128xf32>
    %243 = vector.multi_reduction <add>, %242, %cst_74 [1] : vector<1x8x128xf32> to vector<1x128xf32>
    %244 = vector.shape_cast %243 : vector<1x128xf32> to vector<1x1x128xf32>
    %cst_75 = arith.constant 8.000000e+00 : f32
    %245 = vector.broadcast %cst_75 : f32 to vector<1x1x128xf32>
    %246 = arith.divf %244, %245 : vector<1x1x128xf32>
    %247 = vector.broadcast %239 : vector<1x1x128xf32> to vector<1x8x128xf32>
    %248 = arith.subf %235, %247 : vector<1x8x128xf32>
    %cst_76 = arith.constant 9.99999974E-6 : f32
    %249 = vector.broadcast %cst_76 : f32 to vector<1x1x128xf32>
    %250 = arith.addf %246, %249 : vector<1x1x128xf32>
    %251 = math.rsqrt %250 : vector<1x1x128xf32>
    %252 = vector.broadcast %251 : vector<1x1x128xf32> to vector<1x8x128xf32>
    %253 = arith.mulf %248, %252 : vector<1x8x128xf32>
    %254 = vector.shape_cast %253 : vector<1x8x128xf32> to vector<8x128xf32>
    %255 = vector.broadcast %228 : vector<1x128xf32> to vector<8x128xf32>
    %256 = arith.mulf %254, %255 : vector<8x128xf32>
    %257 = vector.broadcast %229 : vector<1x128xf32> to vector<8x128xf32>
    %258 = arith.addf %256, %257 : vector<8x128xf32>
    %cst_77 = arith.constant 0.000000e+00 : f32
    %259 = vector.broadcast %cst_77 : f32 to vector<8x128xf32>
    %260 = arith.maximumf %258, %259 : vector<8x128xf32>
    %261 = arith.truncf %260 : vector<8x128xf32> to vector<8x128xbf16>
    %cst_78 = arith.constant dense<0.000000e+00> : vector<8x128xf32>
    %262 = tpu.matmul %261, %226, %cst_78 {dimension_numbers = #tpu.dot_dimension_numbers<[1], [0], [0], [1], [0, 0, 1, 1], [], []>} : vector<8x128xbf16>, vector<128x128xbf16>, vector<8x128xf32> -> vector<8x128xf32>
    %263 = vector.broadcast %230 : vector<1x128xf32> to vector<8x128xf32>
    %264 = arith.addf %262, %263 : vector<8x128xf32>
    %c10 = arith.constant 10 : index
    %c0_79 = arith.constant 0 : index
    %c0_80 = arith.constant 0 : index
    %265 = vector.load %arg2[%c10, %c0_79, %c0_80] : memref<14x128x128xbf16, #tpu.memory_space<vmem>>, vector<1x128x128xbf16>
    %266 = vector.shape_cast %265 : vector<1x128x128xbf16> to vector<128x128xbf16>
    %c11 = arith.constant 11 : index
    %c0_81 = arith.constant 0 : index
    %c0_82 = arith.constant 0 : index
    %267 = vector.load %arg2[%c11, %c0_81, %c0_82] : memref<14x128x128xbf16, #tpu.memory_space<vmem>>, vector<1x128x128xbf16>
    %268 = vector.shape_cast %267 : vector<1x128x128xbf16> to vector<128x128xbf16>
    %269 = vector.extract_strided_slice %0 {offsets = [18, 0], sizes = [1, 128], strides = [1, 1]} : vector<26x128xf32> to vector<1x128xf32>
    %270 = vector.extract_strided_slice %0 {offsets = [19, 0], sizes = [1, 128], strides = [1, 1]} : vector<26x128xf32> to vector<1x128xf32>
    %271 = vector.extract_strided_slice %0 {offsets = [20, 0], sizes = [1, 128], strides = [1, 1]} : vector<26x128xf32> to vector<1x128xf32>
    %272 = vector.extract_strided_slice %0 {offsets = [21, 0], sizes = [1, 128], strides = [1, 1]} : vector<26x128xf32> to vector<1x128xf32>
    %273 = arith.truncf %28 : vector<8x128xf32> to vector<8x128xbf16>
    %cst_83 = arith.constant dense<0.000000e+00> : vector<8x128xf32>
    %274 = tpu.matmul %273, %266, %cst_83 {dimension_numbers = #tpu.dot_dimension_numbers<[1], [0], [0], [1], [0, 0, 1, 1], [], []>} : vector<8x128xbf16>, vector<128x128xbf16>, vector<8x128xf32> -> vector<8x128xf32>
    %275 = vector.broadcast %269 : vector<1x128xf32> to vector<8x128xf32>
    %276 = arith.addf %274, %275 : vector<8x128xf32>
    %277 = vector.shape_cast %276 : vector<8x128xf32> to vector<1x8x128xf32>
    %cst_84 = arith.constant dense<0.000000e+00> : vector<1x128xf32>
    %278 = vector.multi_reduction <add>, %277, %cst_84 [1] : vector<1x8x128xf32> to vector<1x128xf32>
    %279 = vector.shape_cast %278 : vector<1x128xf32> to vector<1x1x128xf32>
    %cst_85 = arith.constant 8.000000e+00 : f32
    %280 = vector.broadcast %cst_85 : f32 to vector<1x1x128xf32>
    %281 = arith.divf %279, %280 : vector<1x1x128xf32>
    %282 = vector.broadcast %281 : vector<1x1x128xf32> to vector<1x8x128xf32>
    %283 = arith.subf %277, %282 : vector<1x8x128xf32>
    %284 = arith.mulf %283, %283 : vector<1x8x128xf32>
    %cst_86 = arith.constant dense<0.000000e+00> : vector<1x128xf32>
    %285 = vector.multi_reduction <add>, %284, %cst_86 [1] : vector<1x8x128xf32> to vector<1x128xf32>
    %286 = vector.shape_cast %285 : vector<1x128xf32> to vector<1x1x128xf32>
    %cst_87 = arith.constant 8.000000e+00 : f32
    %287 = vector.broadcast %cst_87 : f32 to vector<1x1x128xf32>
    %288 = arith.divf %286, %287 : vector<1x1x128xf32>
    %289 = vector.broadcast %281 : vector<1x1x128xf32> to vector<1x8x128xf32>
    %290 = arith.subf %277, %289 : vector<1x8x128xf32>
    %cst_88 = arith.constant 9.99999974E-6 : f32
    %291 = vector.broadcast %cst_88 : f32 to vector<1x1x128xf32>
    %292 = arith.addf %288, %291 : vector<1x1x128xf32>
    %293 = math.rsqrt %292 : vector<1x1x128xf32>
    %294 = vector.broadcast %293 : vector<1x1x128xf32> to vector<1x8x128xf32>
    %295 = arith.mulf %290, %294 : vector<1x8x128xf32>
    %296 = vector.shape_cast %295 : vector<1x8x128xf32> to vector<8x128xf32>
    %297 = vector.broadcast %270 : vector<1x128xf32> to vector<8x128xf32>
    %298 = arith.mulf %296, %297 : vector<8x128xf32>
    %299 = vector.broadcast %271 : vector<1x128xf32> to vector<8x128xf32>
    %300 = arith.addf %298, %299 : vector<8x128xf32>
    %cst_89 = arith.constant 0.000000e+00 : f32
    %301 = vector.broadcast %cst_89 : f32 to vector<8x128xf32>
    %302 = arith.maximumf %300, %301 : vector<8x128xf32>
    %303 = arith.truncf %302 : vector<8x128xf32> to vector<8x128xbf16>
    %cst_90 = arith.constant dense<0.000000e+00> : vector<8x128xf32>
    %304 = tpu.matmul %303, %268, %cst_90 {dimension_numbers = #tpu.dot_dimension_numbers<[1], [0], [0], [1], [0, 0, 1, 1], [], []>} : vector<8x128xbf16>, vector<128x128xbf16>, vector<8x128xf32> -> vector<8x128xf32>
    %305 = vector.broadcast %272 : vector<1x128xf32> to vector<8x128xf32>
    %306 = arith.addf %304, %305 : vector<8x128xf32>
    %307 = tpu.iota {dimensions = array<i32: 1>} : vector<8x128xi32>
    %308 = tpu.iota {dimensions = array<i32: 0>} : vector<8x128xi32>
    %c2_i32 = arith.constant 2 : i32
    %c0_i32 = arith.constant 0 : i32
    %309 = arith.cmpi eq, %c2_i32, %c0_i32 : i32
    %c1_i32 = arith.constant 1 : i32
    %310 = arith.select %309, %c1_i32, %c2_i32 : i32
    %311 = vector.broadcast %310 : i32 to vector<8x128xi32>
    %312 = arith.remsi %308, %311 : vector<8x128xi32>
    %c0_i32_91 = arith.constant 0 : i32
    %313 = vector.broadcast %c0_i32_91 : i32 to vector<8x128xi32>
    %314 = arith.cmpi ne, %312, %313 : vector<8x128xi32>
    %c0_i32_92 = arith.constant 0 : i32
    %315 = vector.broadcast %c0_i32_92 : i32 to vector<8x128xi32>
    %316 = arith.cmpi slt, %312, %315 : vector<8x128xi32>
    %c0_i32_93 = arith.constant 0 : i32
    %317 = arith.cmpi slt, %310, %c0_i32_93 : i32
    %318 = vector.broadcast %317 : i1 to vector<8x128xi1>
    %319 = vector.broadcast %318 : vector<8x128xi1> to vector<8x128xi1>
    %320 = arith.xori %316, %319 : vector<8x128xi1>
    %321 = arith.andi %320, %314 : vector<8x128xi1>
    %322 = vector.broadcast %310 : i32 to vector<8x128xi32>
    %323 = arith.addi %312, %322 : vector<8x128xi32>
    %324 = arith.select %321, %323, %312 : vector<8x128xi1>, vector<8x128xi32>
    %c0_i32_94 = arith.constant 0 : i32
    %325 = vector.broadcast %c0_i32_94 : i32 to vector<8x128xi32>
    %c0_i32_95 = arith.constant 0 : i32
    %326 = vector.broadcast %c0_i32_95 : i32 to vector<8x128xi32>
    %c0_i32_96 = arith.constant 0 : i32
    %327 = vector.broadcast %c0_i32_96 : i32 to vector<8x128xi32>
    %328 = arith.cmpi eq, %324, %327 : vector<8x128xi32>
    %c0_97 = arith.constant 0 : index
    %329 = memref.load %arg0[%c0_97] : memref<4xi32, #tpu.memory_space<smem>>
    %330 = vector.broadcast %329 : i32 to vector<8x128xi32>
    %331 = arith.select %328, %330, %325 : vector<8x128xi1>, vector<8x128xi32>
    %c0_i32_98 = arith.constant 0 : i32
    %332 = vector.broadcast %c0_i32_98 : i32 to vector<8x128xi32>
    %333 = arith.cmpi eq, %324, %332 : vector<8x128xi32>
    %c2_99 = arith.constant 2 : index
    %334 = memref.load %arg0[%c2_99] : memref<4xi32, #tpu.memory_space<smem>>
    %335 = vector.broadcast %334 : i32 to vector<8x128xi32>
    %336 = arith.select %333, %335, %326 : vector<8x128xi1>, vector<8x128xi32>
    %c1_i32_100 = arith.constant 1 : i32
    %337 = vector.broadcast %c1_i32_100 : i32 to vector<8x128xi32>
    %338 = arith.cmpi eq, %324, %337 : vector<8x128xi32>
    %c1_101 = arith.constant 1 : index
    %339 = memref.load %arg0[%c1_101] : memref<4xi32, #tpu.memory_space<smem>>
    %340 = vector.broadcast %339 : i32 to vector<8x128xi32>
    %341 = arith.select %338, %340, %331 : vector<8x128xi1>, vector<8x128xi32>
    %c1_i32_102 = arith.constant 1 : i32
    %342 = vector.broadcast %c1_i32_102 : i32 to vector<8x128xi32>
    %343 = arith.cmpi eq, %324, %342 : vector<8x128xi32>
    %c3_103 = arith.constant 3 : index
    %344 = memref.load %arg0[%c3_103] : memref<4xi32, #tpu.memory_space<smem>>
    %345 = vector.broadcast %344 : i32 to vector<8x128xi32>
    %346 = arith.select %343, %345, %336 : vector<8x128xi1>, vector<8x128xi32>
    %347 = arith.cmpi eq, %307, %341 : vector<8x128xi32>
    %348 = arith.extui %347 : vector<8x128xi1> to vector<8x128xi32>
    %349 = arith.sitofp %348 : vector<8x128xi32> to vector<8x128xf32>
    %350 = arith.cmpi eq, %307, %346 : vector<8x128xi32>
    %351 = arith.extui %350 : vector<8x128xi1> to vector<8x128xi32>
    %352 = arith.sitofp %351 : vector<8x128xi32> to vector<8x128xf32>
    %cst_104 = arith.constant dense<0xFF800000> : vector<8xf32>
    %353 = vector.multi_reduction <maximumf>, %264, %cst_104 [1] : vector<8x128xf32> to vector<8xf32>
    %354 = vector.shape_cast %353 : vector<8xf32> to vector<8x1xf32>
    %355 = vector.broadcast %354 : vector<8x1xf32> to vector<8x128xf32>
    %356 = arith.subf %264, %355 : vector<8x128xf32>
    %357 = math.exp %356 : vector<8x128xf32>
    %cst_105 = arith.constant dense<0.000000e+00> : vector<8xf32>
    %358 = vector.multi_reduction <add>, %357, %cst_105 [1] : vector<8x128xf32> to vector<8xf32>
    %359 = vector.shape_cast %358 : vector<8xf32> to vector<8x1xf32>
    %360 = math.log %359 : vector<8x1xf32>
    %361 = arith.addf %360, %354 : vector<8x1xf32>
    %362 = vector.broadcast %361 : vector<8x1xf32> to vector<8x128xf32>
    %363 = arith.subf %362, %264 : vector<8x128xf32>
    %364 = arith.mulf %349, %363 : vector<8x128xf32>
    %cst_106 = arith.constant dense<0.000000e+00> : vector<8xf32>
    %365 = vector.multi_reduction <add>, %364, %cst_106 [1] : vector<8x128xf32> to vector<8xf32>
    %366 = vector.shape_cast %365 : vector<8xf32> to vector<8x1xf32>
    %367 = vector.shape_cast %366 : vector<8x1xf32> to vector<1x8x1xf32>
    %cst_107 = arith.constant dense<0.000000e+00> : vector<1xf32>
    %368 = vector.multi_reduction <add>, %367, %cst_107 [1, 2] : vector<1x8x1xf32> to vector<1xf32>
    %369 = vector.shape_cast %368 : vector<1xf32> to vector<1x1x1xf32>
    %370 = vector.extract %369[0, 0, 0] : f32 from vector<1x1x1xf32>
    %cst_108 = arith.constant 8.000000e+00 : f32
    %371 = arith.divf %370, %cst_108 : f32
    %cst_109 = arith.constant dense<0xFF800000> : vector<8xf32>
    %372 = vector.multi_reduction <maximumf>, %306, %cst_109 [1] : vector<8x128xf32> to vector<8xf32>
    %373 = vector.shape_cast %372 : vector<8xf32> to vector<8x1xf32>
    %374 = vector.broadcast %373 : vector<8x1xf32> to vector<8x128xf32>
    %375 = arith.subf %306, %374 : vector<8x128xf32>
    %376 = math.exp %375 : vector<8x128xf32>
    %cst_110 = arith.constant dense<0.000000e+00> : vector<8xf32>
    %377 = vector.multi_reduction <add>, %376, %cst_110 [1] : vector<8x128xf32> to vector<8xf32>
    %378 = vector.shape_cast %377 : vector<8xf32> to vector<8x1xf32>
    %379 = math.log %378 : vector<8x1xf32>
    %380 = arith.addf %379, %373 : vector<8x1xf32>
    %381 = vector.broadcast %380 : vector<8x1xf32> to vector<8x128xf32>
    %382 = arith.subf %381, %306 : vector<8x128xf32>
    %383 = arith.mulf %352, %382 : vector<8x128xf32>
    %cst_111 = arith.constant dense<0.000000e+00> : vector<8xf32>
    %384 = vector.multi_reduction <add>, %383, %cst_111 [1] : vector<8x128xf32> to vector<8xf32>
    %385 = vector.shape_cast %384 : vector<8xf32> to vector<8x1xf32>
    %386 = vector.shape_cast %385 : vector<8x1xf32> to vector<1x8x1xf32>
    %cst_112 = arith.constant dense<0.000000e+00> : vector<1xf32>
    %387 = vector.multi_reduction <add>, %386, %cst_112 [1, 2] : vector<1x8x1xf32> to vector<1xf32>
    %388 = vector.shape_cast %387 : vector<1xf32> to vector<1x1x1xf32>
    %389 = vector.extract %388[0, 0, 0] : f32 from vector<1x1x1xf32>
    %cst_113 = arith.constant 8.000000e+00 : f32
    %390 = arith.divf %389, %cst_113 : f32
    %391 = arith.addf %371, %390 : f32
    %392 = tpu.concatenate %28, %32, %34 in 0 : vector<8x128xf32>, vector<8x128xf32>, vector<8x128xf32> -> vector<24x128xf32>
    %c6 = arith.constant 6 : index
    %c0_114 = arith.constant 0 : index
    %c0_115 = arith.constant 0 : index
    %393 = vector.load %arg2[%c6, %c0_114, %c0_115] : memref<14x128x128xbf16, #tpu.memory_space<vmem>>, vector<1x128x128xbf16>
    %394 = vector.shape_cast %393 : vector<1x128x128xbf16> to vector<128x128xbf16>
    %c7 = arith.constant 7 : index
    %c0_116 = arith.constant 0 : index
    %c0_117 = arith.constant 0 : index
    %395 = vector.load %arg2[%c7, %c0_116, %c0_117] : memref<14x128x128xbf16, #tpu.memory_space<vmem>>, vector<1x128x128xbf16>
    %396 = vector.shape_cast %395 : vector<1x128x128xbf16> to vector<128x128xbf16>
    %397 = vector.extract_strided_slice %0 {offsets = [10, 0], sizes = [1, 128], strides = [1, 1]} : vector<26x128xf32> to vector<1x128xf32>
    %398 = vector.extract_strided_slice %0 {offsets = [11, 0], sizes = [1, 128], strides = [1, 1]} : vector<26x128xf32> to vector<1x128xf32>
    %399 = vector.extract_strided_slice %0 {offsets = [12, 0], sizes = [1, 128], strides = [1, 1]} : vector<26x128xf32> to vector<1x128xf32>
    %400 = vector.extract_strided_slice %0 {offsets = [13, 0], sizes = [1, 128], strides = [1, 1]} : vector<26x128xf32> to vector<1x128xf32>
    %401 = arith.truncf %392 : vector<24x128xf32> to vector<24x128xbf16>
    %cst_118 = arith.constant dense<0.000000e+00> : vector<24x128xf32>
    %402 = tpu.matmul %401, %394, %cst_118 {dimension_numbers = #tpu.dot_dimension_numbers<[1], [0], [0], [1], [0, 0, 1, 1], [], []>} : vector<24x128xbf16>, vector<128x128xbf16>, vector<24x128xf32> -> vector<24x128xf32>
    %403 = vector.broadcast %397 : vector<1x128xf32> to vector<24x128xf32>
    %404 = arith.addf %402, %403 : vector<24x128xf32>
    %405 = vector.shape_cast %404 : vector<24x128xf32> to vector<3x8x128xf32>
    %cst_119 = arith.constant dense<0.000000e+00> : vector<3x128xf32>
    %406 = vector.multi_reduction <add>, %405, %cst_119 [1] : vector<3x8x128xf32> to vector<3x128xf32>
    %407 = vector.shape_cast %406 : vector<3x128xf32> to vector<3x1x128xf32>
    %cst_120 = arith.constant 8.000000e+00 : f32
    %408 = vector.broadcast %cst_120 : f32 to vector<3x1x128xf32>
    %409 = arith.divf %407, %408 : vector<3x1x128xf32>
    %410 = vector.broadcast %409 : vector<3x1x128xf32> to vector<3x8x128xf32>
    %411 = arith.subf %405, %410 : vector<3x8x128xf32>
    %412 = arith.mulf %411, %411 : vector<3x8x128xf32>
    %cst_121 = arith.constant dense<0.000000e+00> : vector<3x128xf32>
    %413 = vector.multi_reduction <add>, %412, %cst_121 [1] : vector<3x8x128xf32> to vector<3x128xf32>
    %414 = vector.shape_cast %413 : vector<3x128xf32> to vector<3x1x128xf32>
    %cst_122 = arith.constant 8.000000e+00 : f32
    %415 = vector.broadcast %cst_122 : f32 to vector<3x1x128xf32>
    %416 = arith.divf %414, %415 : vector<3x1x128xf32>
    %417 = vector.broadcast %409 : vector<3x1x128xf32> to vector<3x8x128xf32>
    %418 = arith.subf %405, %417 : vector<3x8x128xf32>
    %cst_123 = arith.constant 9.99999974E-6 : f32
    %419 = vector.broadcast %cst_123 : f32 to vector<3x1x128xf32>
    %420 = arith.addf %416, %419 : vector<3x1x128xf32>
    %421 = math.rsqrt %420 : vector<3x1x128xf32>
    %422 = vector.broadcast %421 : vector<3x1x128xf32> to vector<3x8x128xf32>
    %423 = arith.mulf %418, %422 : vector<3x8x128xf32>
    %424 = vector.shape_cast %423 : vector<3x8x128xf32> to vector<24x128xf32>
    %425 = vector.broadcast %398 : vector<1x128xf32> to vector<24x128xf32>
    %426 = arith.mulf %424, %425 : vector<24x128xf32>
    %427 = vector.broadcast %399 : vector<1x128xf32> to vector<24x128xf32>
    %428 = arith.addf %426, %427 : vector<24x128xf32>
    %cst_124 = arith.constant 0.000000e+00 : f32
    %429 = vector.broadcast %cst_124 : f32 to vector<24x128xf32>
    %430 = arith.maximumf %428, %429 : vector<24x128xf32>
    %431 = arith.truncf %430 : vector<24x128xf32> to vector<24x128xbf16>
    %cst_125 = arith.constant dense<0.000000e+00> : vector<24x128xf32>
    %432 = tpu.matmul %431, %396, %cst_125 {dimension_numbers = #tpu.dot_dimension_numbers<[1], [0], [0], [1], [0, 0, 1, 1], [], []>} : vector<24x128xbf16>, vector<128x128xbf16>, vector<24x128xf32> -> vector<24x128xf32>
    %433 = vector.broadcast %400 : vector<1x128xf32> to vector<24x128xf32>
    %434 = arith.addf %432, %433 : vector<24x128xf32>
    %435 = vector.extract_strided_slice %434 {offsets = [0, 0], sizes = [8, 128], strides = [1, 1]} : vector<24x128xf32> to vector<8x128xf32>
    %436 = vector.extract_strided_slice %434 {offsets = [8, 0], sizes = [8, 128], strides = [1, 1]} : vector<24x128xf32> to vector<8x128xf32>
    %437 = vector.extract_strided_slice %434 {offsets = [16, 0], sizes = [8, 128], strides = [1, 1]} : vector<24x128xf32> to vector<8x128xf32>
    %438 = arith.subf %435, %436 : vector<8x128xf32>
    %439 = arith.mulf %438, %438 : vector<8x128xf32>
    %cst_126 = arith.constant dense<0.000000e+00> : vector<8xf32>
    %440 = vector.multi_reduction <add>, %439, %cst_126 [1] : vector<8x128xf32> to vector<8xf32>
    %441 = vector.shape_cast %440 : vector<8xf32> to vector<8x1xf32>
    %cst_127 = arith.constant 9.99999996E-13 : f32
    %442 = vector.broadcast %cst_127 : f32 to vector<8x1xf32>
    %443 = arith.addf %441, %442 : vector<8x1xf32>
    %444 = math.sqrt %443 : vector<8x1xf32>
    %445 = arith.subf %435, %437 : vector<8x128xf32>
    %446 = arith.mulf %445, %445 : vector<8x128xf32>
    %cst_128 = arith.constant dense<0.000000e+00> : vector<8xf32>
    %447 = vector.multi_reduction <add>, %446, %cst_128 [1] : vector<8x128xf32> to vector<8xf32>
    %448 = vector.shape_cast %447 : vector<8xf32> to vector<8x1xf32>
    %cst_129 = arith.constant 9.99999996E-13 : f32
    %449 = vector.broadcast %cst_129 : f32 to vector<8x1xf32>
    %450 = arith.addf %448, %449 : vector<8x1xf32>
    %451 = math.sqrt %450 : vector<8x1xf32>
    %452 = arith.subf %444, %451 : vector<8x1xf32>
    %cst_130 = arith.constant 1.000000e+00 : f32
    %453 = vector.broadcast %cst_130 : f32 to vector<8x1xf32>
    %454 = arith.addf %452, %453 : vector<8x1xf32>
    %cst_131 = arith.constant 0.000000e+00 : f32
    %455 = vector.broadcast %cst_131 : f32 to vector<8x1xf32>
    %456 = arith.maximumf %454, %455 : vector<8x1xf32>
    %457 = vector.shape_cast %456 : vector<8x1xf32> to vector<1x8x1xf32>
    %cst_132 = arith.constant dense<0.000000e+00> : vector<1xf32>
    %458 = vector.multi_reduction <add>, %457, %cst_132 [1, 2] : vector<1x8x1xf32> to vector<1xf32>
    %459 = vector.shape_cast %458 : vector<1xf32> to vector<1x1x1xf32>
    %460 = vector.extract %459[0, 0, 0] : f32 from vector<1x1x1xf32>
    %cst_133 = arith.constant 8.000000e+00 : f32
    %461 = arith.divf %460, %cst_133 : f32
    %cst_134 = arith.constant 1.000000e+00 : f32
    %462 = arith.mulf %cst_134, %391 : f32
    %463 = arith.addf %222, %462 : f32
    %cst_135 = arith.constant 1.000000e+00 : f32
    %464 = arith.mulf %cst_135, %461 : f32
    %465 = arith.addf %463, %464 : f32
    %c0_136 = arith.constant 0 : index
    %c0_137 = arith.constant 0 : index
    %466 = memref.load %arg4[%c0_136, %c0_137] : memref<1x4xf32, #tpu.memory_space<smem>>
    memref.store %465, %arg4[%c0_136, %c0_137] : memref<1x4xf32, #tpu.memory_space<smem>>
    %c0_138 = arith.constant 0 : index
    %c1_139 = arith.constant 1 : index
    %467 = memref.load %arg4[%c0_138, %c1_139] : memref<1x4xf32, #tpu.memory_space<smem>>
    memref.store %222, %arg4[%c0_138, %c1_139] : memref<1x4xf32, #tpu.memory_space<smem>>
    %c0_140 = arith.constant 0 : index
    %c2_141 = arith.constant 2 : index
    %468 = memref.load %arg4[%c0_140, %c2_141] : memref<1x4xf32, #tpu.memory_space<smem>>
    memref.store %391, %arg4[%c0_140, %c2_141] : memref<1x4xf32, #tpu.memory_space<smem>>
    %c0_142 = arith.constant 0 : index
    %c3_143 = arith.constant 3 : index
    %469 = memref.load %arg4[%c0_142, %c3_143] : memref<1x4xf32, #tpu.memory_space<smem>>
    memref.store %461, %arg4[%c0_142, %c3_143] : memref<1x4xf32, #tpu.memory_space<smem>>
    return
  }
}

</mosaic_0001>

<bundles_post_ra>
// kernel: triplet_supervised_byol_forward.1
= control target key start
LH: loop header
LB: loop body
LE: loop exit
PB: predicated region body
PF: predicated region fallthrough
CT: control target
= control target key end

     0   :  { %9 = vsyncpa [#allocation3], 0  ;;  %s8893_s0 = inlined_call_operand.vmem [shape: s32[4], index: 0, kind: input, shape index: {}]   ;;  %s8894_s1 = inlined_call_operand.vmem [shape: bf16[2048,128], index: 1, kind: input, shape index: {}]   ;;  %s8895_s2 = inlined_call_operand.vmem [shape: bf16[14,128,128], index: 2, kind: input, shape index: {}]   ;;  %s8896_s3 = inlined_call_operand.vmem [shape: f32[26,128], index: 3, kind: input, shape index: {}]   ;;  %s8897_s4 = inlined_call_operand.vmem [shape: f32[1,4], index: 4, kind: output, shape index: {}]  }
   0x1   :  { %10 = vsyncpa [#allocation4], 0  ;;  %s17_s17 = sshll.u32 %s8893_s0, 4  ;;  %s18_s17 = int_to_ptr.vmem [resolvable:$true] %s17_s17 }
   0x2   :  { %s7323_s18 = scalar_lea.vmem %s18_s17, 16  ;;  %p7328_p1 = scmp.lt.s32.totalorder %s18_s17, %s18_s17 }
   0x3   :  { %p7324_p0 = scmp.ne.s32.totalorder %s18_s17, %s7323_s18  ;;  %p7329_p2 = scmp.lt.s32.totalorder %s7323_s18, %s7323_s18 }
   0x5   :  { %p7330_p3 = por %p7329_p2, %p7328_p1 }
   0x7   :  { %p7331_p4 = pnand %p7330_p3, %p7324_p0 }
   0x9   :  { %7334 = shalt.err (!%p7331_p4)
}
   0xa   :  { %s7351_s19 = smov [#allocation2]  }
   0xb   :  { %20 = dma.vmem_to_smem %s18_s17, 16, %s7351_s19, [#allocation3]  }
   0xc   :  { %7347 = dma.done.wait [#allocation3], 16  }
   0xd   :  { %7348 = vsyncadd [#allocation3], 4294967280 }
   0xe   :  { %30 = sfence }
   0xf   :  { %v7032_v0 = vld [vmem:[%s8895_s2] sm:$0xff]   ;;  %v7033_v1 = vld [vmem:[%s8895_s2 + $0x8] sm:$0xff]   ;;  %v7034_v2 = vld [vmem:[%s8895_s2 + $0x10] sm:$0xff]   ;;  %v7352_v49 = vmov 0.0   ;;  %vm3642_vm0 = vcmask 1041409   ;;  %vm3645_vm1 = vcmask 1043459  }
  0x10   :  { %6364 = vmatprep.subr.bf16.mxu0 %v7032_v0  ;;  %v7035_v3 = vld [vmem:[%s8895_s2 + $0x18] sm:$0xff]   ;;  %v7040_v4 = vld [vmem:[%s8895_s2 + $0x40] sm:$0xff]   ;;  %v7043_v6 = vld [vmem:[%s8895_s2 + $0x48] sm:$0xff]   ;;  %vm3648_vm2 = vcmask 1045509   ;;  %vm3651_vm3 = vcmask 1047559   ;;  %vm3654_vm4 = vcmask 1041408  }
  0x11   :  { %6365 = vmatpush3.bf16.msra.mxu0 %v7032_v0  ;;  %v7041_v5 = vld [vmem:[%s8894_s1] sm:$0xff]   ;;  %6636 = vmatprep.subr.bf16.mxu1 %v7040_v4  ;;  %v7044_v8 = vld [vmem:[%s8895_s2 + $0x50] sm:$0xff]   ;;  %v7037_v9 = vld [vmem:[%s8895_s2 + $0x28] sm:$0xff]   ;;  %vm7353_vm5 = vmmov 0   ;;  %vm3656_vm6 = vcmask 1043456   ;;  %vm3658_vm7 = vcmask 1045504  }
  0x12   :  { %6366 = vmatprep.subr.bf16.mxu0 %v7033_v1  ;;  %6380 = vmatprep.mubr.bf16.mxu0 %v7041_v5  ;;  %v7036_v7 = vld [vmem:[%s8895_s2 + $0x20] sm:$0xff]   ;;  %v7047_v10 = vld [vmem:[%s8895_s2 + $0x58] sm:$0xff]   ;;  %v7038_v11 = vld [vmem:[%s8895_s2 + $0x30] sm:$0xff]   ;;  %s5994_s15 = sld [smem:[#allocation2 + $0x1]]  ;;  %s5993_s16 = sld [smem:[#allocation2 + $0x2]] }
  0x13   :  { %6637 = vmatpush3.bf16.msra.mxu1 %v7040_v4  ;;  %6652 = vmatprep.mubr.bf16.mxu1 %v7041_v5  ;;  %v7048_v12 = vld [vmem:[%s8895_s2 + $0x60] sm:$0xff]   ;;  %v7039_v13 = vld [vmem:[%s8895_s2 + $0x38] sm:$0xff]   ;;  %v7051_v14 = vld [vmem:[%s8895_s2 + $0x68] sm:$0xff]   ;;  %s5995_s17 = sld [smem:[#allocation2 + $0x3]]  ;;  %s5583_s27 = sshll.u32 %s8897_s4, 4  ;;  %s5584_s27 = int_to_ptr.vmem [resolvable:$true] %s5583_s27 }
  0x14   :  { %6638 = vmatprep.subr.bf16.mxu1 %v7043_v6  ;;  %v7052_v15 = vld [vmem:[%s8895_s2 + $0x70] sm:$0xff]   ;;  %v7042_v16 = vld [vmem:[%s8894_s1 + $0x8] sm:$0xff]   ;;  %v7055_v18 = vld [vmem:[%s8895_s2 + $0x78] sm:$0xff]   ;;  %s7335_s30 = scalar_lea.vmem %s5584_s27, 16  ;;  %p7340_p6 = scmp.lt.s32.totalorder %s5584_s27, %s5584_s27 }
  0x15   :  { %6367 = vmatpush3.bf16.msra.mxu0 %v7033_v1  ;;  %v7045_v17 = vld [vmem:[%s8894_s1 + $0x10] sm:$0xff]   ;;  %v7046_v19 = vld [vmem:[%s8894_s1 + $0x18] sm:$0xff]   ;;  %v7049_v20 = vld [vmem:[%s8894_s1 + $0x20] sm:$0xff]   ;;  %p7336_p5 = scmp.ne.s32.totalorder %s5584_s27, %s7335_s30  ;;  %p7341_p7 = scmp.lt.s32.totalorder %s7335_s30, %s7335_s30 }
  0x16   :  { %6368 = vmatprep.subr.bf16.mxu0 %v7034_v2  ;;  %v7050_v21 = vld [vmem:[%s8894_s1 + $0x28] sm:$0xff]   ;;  %v7053_v22 = vld [vmem:[%s8894_s1 + $0x30] sm:$0xff]   ;;  %v7054_v23 = vld [vmem:[%s8894_s1 + $0x38] sm:$0xff]  }
  0x17   :  { %6639 = vmatpush3.bf16.msra.mxu1 %v7043_v6  ;;  %v7056_v24 = vld [vmem:[%s8894_s1 + $0x40] sm:$0xff]   ;;  %v7057_v25 = vld [vmem:[%s8894_s1 + $0x48] sm:$0xff]   ;;  %v7058_v26 = vld [vmem:[%s8894_s1 + $0x50] sm:$0xff]   ;;  %p7342_p8 = por %p7341_p7, %p7340_p6 }
  0x18   :  { %6640 = vmatprep.subr.bf16.mxu1 %v7044_v8  ;;  %v7059_v27 = vld [vmem:[%s8894_s1 + $0x58] sm:$0xff]   ;;  %v7060_v28 = vld [vmem:[%s8894_s1 + $0x60] sm:$0xff]   ;;  %v7061_v29 = vld [vmem:[%s8894_s1 + $0x68] sm:$0xff]  }
  0x19   :  { %6369 = vmatpush3.bf16.msra.mxu0 %v7034_v2  ;;  %v7062_v30 = vld [vmem:[%s8894_s1 + $0x70] sm:$0xff]   ;;  %v7063_v31 = vld [vmem:[%s8894_s1 + $0x78] sm:$0xff]   ;;  %v7064_v32 = vld [vmem:[%s8894_s1 + $0x80] sm:$0xff]   ;;  %p7343_p9 = pnand %p7342_p8, %p7336_p5 }
  0x1a   :  { %6370 = vmatprep.subr.bf16.mxu0 %v7035_v3  ;;  %v7065_v33 = vld [vmem:[%s8894_s1 + $0x88] sm:$0xff]   ;;  %v7066_v34 = vld [vmem:[%s8894_s1 + $0x90] sm:$0xff]   ;;  %v7067_v35 = vld [vmem:[%s8894_s1 + $0x98] sm:$0xff]  }
  0x1b   :  { %6641 = vmatpush3.bf16.msra.mxu1 %v7044_v8  ;;  %v7068_v36 = vld [vmem:[%s8894_s1 + $0xa0] sm:$0xff]   ;;  %v7069_v37 = vld [vmem:[%s8894_s1 + $0xa8] sm:$0xff]   ;;  %v7070_v38 = vld [vmem:[%s8894_s1 + $0xb0] sm:$0xff]  }
  0x1c   :  { %6642 = vmatprep.subr.bf16.mxu1 %v7047_v10  ;;  %v7071_v39 = vld [vmem:[%s8894_s1 + $0xb8] sm:$0xff]   ;;  %v7072_v40 = vld [vmem:[%s8894_s1 + $0xc0] sm:$0xff]   ;;  %v7073_v41 = vld [vmem:[%s8894_s1 + $0xc8] sm:$0xff]  }
  0x1d   :  { %6371 = vmatpush3.bf16.msra.mxu0 %v7035_v3  ;;  %v7074_v42 = vld [vmem:[%s8894_s1 + $0xd0] sm:$0xff]   ;;  %v7075_v43 = vld [vmem:[%s8894_s1 + $0xd8] sm:$0xff]   ;;  %v7076_v44 = vld [vmem:[%s8894_s1 + $0xe0] sm:$0xff]  }
  0x1e   :  { %6372 = vmatprep.subr.bf16.mxu0 %v7036_v7  ;;  %v7077_v45 = vld [vmem:[%s8894_s1 + $0xe8] sm:$0xff]   ;;  %v7078_v46 = vld [vmem:[%s8894_s1 + $0xf0] sm:$0xff]   ;;  %v7108_v47 = vld [vmem:[%s8895_s2 + $0x80] sm:$0xff]  }
  0x1f   :  { %6643 = vmatpush3.bf16.msra.mxu1 %v7047_v10  ;;  %v7079_v48 = vld [vmem:[%s8894_s1 + $0xf8] sm:$0xff]   ;;  %v7080_v50 = vld [vmem:[%s8894_s1 + $0x100] sm:$0xff]   ;;  %v7081_v51 = vld [vmem:[%s8894_s1 + $0x108] sm:$0xff]  }
  0x20   :  { %6644 = vmatprep.subr.bf16.mxu1 %v7048_v12  ;;  %v7082_v52 = vld [vmem:[%s8894_s1 + $0x110] sm:$0xff]   ;;  %v7083_v53 = vld [vmem:[%s8894_s1 + $0x118] sm:$0xff]   ;;  %v7084_v54 = vld [vmem:[%s8894_s1 + $0x120] sm:$0xff]  }
  0x21   :  { %6373 = vmatpush3.bf16.msra.mxu0 %v7036_v7  ;;  %v7085_v55 = vld [vmem:[%s8894_s1 + $0x128] sm:$0xff]   ;;  %v7086_v56 = vld [vmem:[%s8894_s1 + $0x130] sm:$0xff]   ;;  %v7087_v58 = vld [vmem:[%s8894_s1 + $0x138] sm:$0xff]  }
  0x22   :  { %6374 = vmatprep.subr.bf16.mxu0 %v7037_v9  ;;  %v7117_v57 = vld [vmem:[%s8895_s2 + $0x88] sm:$0xff]   ;;  %v7088_v59 = vld [vmem:[%s8894_s1 + $0x140] sm:$0xff]   ;;  %v7090_v61 = vld [vmem:[%s8894_s1 + $0x150] sm:$0xff]  }
  0x23   :  { %6645 = vmatpush3.bf16.msra.mxu1 %v7048_v12  ;;  %v7089_v60 = vld [vmem:[%s8894_s1 + $0x148] sm:$0xff]   ;;  %v7091_v62 = vld [vmem:[%s8894_s1 + $0x158] sm:$0xff]   ;;  %v7092_v63 = vld [vmem:[%s8894_s1 + $0x160] sm:$0xff]  }
  0x24   :  { %6646 = vmatprep.subr.bf16.mxu1 %v7051_v14  ;;  %v7093_v0 = vld [vmem:[%s8894_s1 + $0x168] sm:$0xff]   ;;  %v7094_v1 = vld [vmem:[%s8894_s1 + $0x170] sm:$0xff]   ;;  %v7095_v3 = vld [vmem:[%s8894_s1 + $0x178] sm:$0xff]  }
  0x25   :  { %6375 = vmatpush3.bf16.msra.mxu0 %v7037_v9  ;;  %v7126_v2 = vld [vmem:[%s8895_s2 + $0x90] sm:$0xff]   ;;  %v7096_v4 = vld [vmem:[%s8894_s1 + $0x180] sm:$0xff]   ;;  %v7097_v5 = vld [vmem:[%s8894_s1 + $0x188] sm:$0xff]   ;;  %v308_v9 = vlaneseq }
  0x26   :  { %6376 = vmatprep.subr.bf16.mxu0 %v7038_v11  ;;  %v7098_v6 = vld [vmem:[%s8894_s1 + $0x190] sm:$0xff]   ;;  %v7099_v7 = vld [vmem:[%s8894_s1 + $0x198] sm:$0xff]   ;;  %v7100_v8 = vld [vmem:[%s8894_s1 + $0x1a0] sm:$0xff]  }
  0x27   :  { %6647 = vmatpush3.bf16.msra.mxu1 %v7051_v14  ;;  %v7605_v10 = vshrl.u32 %v308_v9, 7  ;;  %v7619_v14 = vld [vmem:[%s8896_s3] sm:$0xff] }
  0x28   :  { %6648 = vmatprep.subr.bf16.mxu1 %v7052_v15 }
  0x29   :  { %6377 = vmatpush3.bf16.msra.mxu0 %v7038_v11  ;;  %v7101_v11 = vld [vmem:[%s8894_s1 + $0x1a8] sm:$0xff]   ;;  %v7611_v12 = vsub.s32 0, %v7605_v10 }
  0x2a   :  { %6378 = vmatprep.subr.bf16.mxu0 %v7039_v13 }
  0x2b   :  { %6649 = vmatpush3.bf16.msra.mxu1 %v7052_v15  ;;  %v7623_v15 = vrot.slane %v7619_v14, %v7611_v12 }
  0x2c   :  { %6650 = vmatprep.subr.bf16.mxu1 %v7055_v18 }
  0x2d   :  { %6379 = vmatpush3.bf16.msra.mxu0 %v7039_v13  ;;  %v7102_v13 = vld [vmem:[%s8894_s1 + $0x1b0] sm:$0xff]  }
  0x2e   :  { %6940 = vmatprep.subr.bf16.mxu0 %v7352_v49 }
  0x2f   :  { %6651 = vmatpush3.bf16.msra.mxu1 %v7055_v18 }
  0x30   :  { %6381 = vmatmul.mubr.bf16.vlgmr.msra.gmra.mrb[0].mxu0 %v7042_v16  ;;  %6780 = vmatprep.subr.bf16.mxu1 %v7352_v49 }
  0x31   :  { %6384 = vmatprep.mubr.bf16.mxu0 %v7045_v17 }
  0x32   :  { %6653 = vmatmul.mubr.bf16.vlgmr.msra.gmra.mrb[0].mxu1 %v7042_v16  ;;  %v7135_v16 = vld [vmem:[%s8895_s2 + $0x98] sm:$0xff]  }
  0x33   :  { %6656 = vmatprep.mubr.bf16.mxu1 %v7045_v17  ;;  %6781 = vmatpush3.bf16.msra.mxu1 %v7108_v47 }
  0x34   :  { %6782 = vmatprep.subr.bf16.mxu1 %v7352_v49 }
  0x37   :  { %6783 = vmatpush3.bf16.msra.mxu1 %v7117_v57 }
  0x38   :  { %6385 = vmatmul.mubr.bf16.gmra.mrb[4].mxu0 %v7046_v19  ;;  %6784 = vmatprep.subr.bf16.mxu1 %v7352_v49 }
  0x39   :  { %6388 = vmatprep.mubr.bf16.mxu0 %v7049_v20 }
  0x3a   :  { %6657 = vmatmul.mubr.bf16.gmra.mrb[4].mxu1 %v7046_v19  ;;  %v7103_v19 = vld [vmem:[%s8894_s1 + $0x1b8] sm:$0xff]  }
  0x3b   :  { %6660 = vmatprep.mubr.bf16.mxu1 %v7049_v20  ;;  %6785 = vmatpush3.bf16.msra.mxu1 %v7126_v2 }
  0x3c   :  { %6786 = vmatprep.subr.bf16.mxu1 %v7352_v49 }
  0x3f   :  { %6787 = vmatpush3.bf16.msra.mxu1 %v7135_v16 }
  0x40   :  { %6389 = vmatmul.mubr.bf16.gmra.mrb[8].mxu0 %v7050_v21  ;;  %6788 = vmatprep.subr.bf16.mxu1 %v7352_v49 }
  0x41   :  { %6392 = vmatprep.mubr.bf16.mxu0 %v7053_v22 }
  0x42   :  { %6661 = vmatmul.mubr.bf16.gmra.mrb[8].mxu1 %v7050_v21 }
  0x43   :  { %6664 = vmatprep.mubr.bf16.mxu1 %v7053_v22  ;;  %v7104_v22 = vld [vmem:[%s8894_s1 + $0x1c0] sm:$0xff]  }
  0x48   :  { %6393 = vmatmul.mubr.bf16.gmra.mrb[12].mxu0 %v7054_v23 }
  0x49   :  { %6396 = vmatprep.mubr.bf16.mxu0 %v7056_v24 }
  0x4a   :  { %6665 = vmatmul.mubr.bf16.gmra.mrb[12].mxu1 %v7054_v23 }
  0x4b   :  { %6668 = vmatprep.mubr.bf16.mxu1 %v7056_v24 }
  0x50   :  { %6397 = vmatmul.mubr.bf16.gmra.mrb[16].mxu0 %v7057_v25 }
  0x51   :  { %6400 = vmatprep.mubr.bf16.mxu0 %v7058_v26 }
  0x52   :  { %6669 = vmatmul.mubr.bf16.gmra.mrb[16].mxu1 %v7057_v25 }
  0x53   :  { %6672 = vmatprep.mubr.bf16.mxu1 %v7058_v26 }
  0x58   :  { %6401 = vmatmul.mubr.bf16.gmra.mrb[20].mxu0 %v7059_v27 }
  0x59   :  { %6404 = vmatprep.mubr.bf16.mxu0 %v7060_v28 }
  0x5a   :  { %6673 = vmatmul.mubr.bf16.gmra.mrb[20].mxu1 %v7059_v27 }
  0x5b   :  { %6676 = vmatprep.mubr.bf16.mxu1 %v7060_v28 }
  0x60   :  { %6405 = vmatmul.mubr.bf16.gmra.mrb[24].mxu0 %v7061_v29 }
  0x61   :  { %6408 = vmatprep.mubr.bf16.mxu0 %v7062_v30 }
  0x62   :  { %6677 = vmatmul.mubr.bf16.gmra.mrb[24].mxu1 %v7061_v29 }
  0x63   :  { %6680 = vmatprep.mubr.bf16.mxu1 %v7062_v30 }
  0x68   :  { %6409 = vmatmul.mubr.bf16.gmra.mrb[28].mxu0 %v7063_v31 }
  0x69   :  { %6412 = vmatprep.mubr.bf16.mxu0 %v7064_v32 }
  0x6a   :  { %6681 = vmatmul.mubr.bf16.gmra.mrb[28].mxu1 %v7063_v31 }
  0x6b   :  { %6684 = vmatprep.mubr.bf16.mxu1 %v7064_v32 }
  0x70   :  { %6413 = vmatmul.mubr.bf16.gmra.mrb[32].mxu0 %v7065_v33 }
  0x71   :  { %6416 = vmatprep.mubr.bf16.mxu0 %v7066_v34 }
  0x72   :  { %6685 = vmatmul.mubr.bf16.gmra.mrb[32].mxu1 %v7065_v33  ;;  %v7105_v33 = vld [vmem:[%s8894_s1 + $0x1c8] sm:$0xff]  }
  0x73   :  { %6688 = vmatprep.mubr.bf16.mxu1 %v7066_v34 }
  0x78   :  { %6417 = vmatmul.mubr.bf16.gmra.mrb[36].mxu0 %v7067_v35 }
  0x79   :  { %6420 = vmatprep.mubr.bf16.mxu0 %v7068_v36 }
  0x7a   :  { %6689 = vmatmul.mubr.bf16.gmra.mrb[36].mxu1 %v7067_v35 }
  0x7b   :  { %6692 = vmatprep.mubr.bf16.mxu1 %v7068_v36 }
  0x80   :  { %6421 = vmatmul.mubr.bf16.gmra.mrb[40].mxu0 %v7069_v37 }
  0x81   :  { %6424 = vmatprep.mubr.bf16.mxu0 %v7070_v38 }
  0x82   :  { %6693 = vmatmul.mubr.bf16.gmra.mrb[40].mxu1 %v7069_v37 }
  0x83   :  { %6696 = vmatprep.mubr.bf16.mxu1 %v7070_v38 }
  0x88   :  { %6425 = vmatmul.mubr.bf16.gmra.mrb[44].mxu0 %v7071_v39 }
  0x89   :  { %6428 = vmatprep.mubr.bf16.mxu0 %v7072_v40 }
  0x8a   :  { %6697 = vmatmul.mubr.bf16.gmra.mrb[44].mxu1 %v7071_v39  ;;  %v7106_v39 = vld [vmem:[%s8894_s1 + $0x1d0] sm:$0xff]  }
  0x8b   :  { %6700 = vmatprep.mubr.bf16.mxu1 %v7072_v40 }
  0x90   :  { %6429 = vmatmul.mubr.bf16.gmra.mrb[48].mxu0 %v7073_v41 }
  0x91   :  { %6432 = vmatprep.mubr.bf16.mxu0 %v7074_v42 }
  0x92   :  { %6701 = vmatmul.mubr.bf16.gmra.mrb[48].mxu1 %v7073_v41 }
  0x93   :  { %6704 = vmatprep.mubr.bf16.mxu1 %v7074_v42 }
  0x98   :  { %6433 = vmatmul.mubr.bf16.gmra.mrb[52].mxu0 %v7075_v43 }
  0x99   :  { %6436 = vmatprep.mubr.bf16.mxu0 %v7076_v44 }
  0x9a   :  { %6705 = vmatmul.mubr.bf16.gmra.mrb[52].mxu1 %v7075_v43 }
  0x9b   :  { %6708 = vmatprep.mubr.bf16.mxu1 %v7076_v44 }
  0xa0   :  { %6437 = vmatmul.mubr.bf16.gmra.mrb[56].mxu0 %v7077_v45 }
  0xa1   :  { %6440 = vmatprep.mubr.bf16.mxu0 %v7078_v46 }
  0xa2   :  { %6709 = vmatmul.mubr.bf16.gmra.mrb[56].mxu1 %v7077_v45 }
  0xa3   :  { %6712 = vmatprep.mubr.bf16.mxu1 %v7078_v46 }
  0xa8   :  { %6441 = vmatmul.mubr.bf16.gmra.mrb[60].mxu0 %v7079_v48 }
  0xa9   :  { %6444 = vmatprep.mubr.bf16.mxu0 %v7080_v50 }
  0xaa   :  { %6713 = vmatmul.mubr.bf16.gmra.mrb[60].mxu1 %v7079_v48 }
  0xab   :  { %6716 = vmatprep.mubr.bf16.mxu1 %v7080_v50 }
  0xb0   :  { %6445 = vmatmul.mubr.bf16.gmra.mrb[64].mxu0 %v7081_v51 }
  0xb1   :  { %6448 = vmatprep.mubr.bf16.mxu0 %v7082_v52 }
  0xb2   :  { %6717 = vmatmul.mubr.bf16.gmra.mrb[64].mxu1 %v7081_v51 }
  0xb3   :  { %6720 = vmatprep.mubr.bf16.mxu1 %v7082_v52 }
  0xb8   :  { %6449 = vmatmul.mubr.bf16.gmra.mrb[68].mxu0 %v7083_v53 }
  0xb9   :  { %6452 = vmatprep.mubr.bf16.mxu0 %v7084_v54 }
  0xba   :  { %6721 = vmatmul.mubr.bf16.gmra.mrb[68].mxu1 %v7083_v53 }
  0xbb   :  { %6724 = vmatprep.mubr.bf16.mxu1 %v7084_v54 }
  0xc0   :  { %6453 = vmatmul.mubr.bf16.gmra.mrb[72].mxu0 %v7085_v55 }
  0xc1   :  { %6456 = vmatprep.mubr.bf16.mxu0 %v7086_v56 }
  0xc2   :  { %6725 = vmatmul.mubr.bf16.gmra.mrb[72].mxu1 %v7085_v55 }
  0xc3   :  { %6728 = vmatprep.mubr.bf16.mxu1 %v7086_v56  ;;  %v7107_v56 = vld [vmem:[%s8894_s1 + $0x1d8] sm:$0xff]  }
  0xc8   :  { %6457 = vmatmul.mubr.bf16.gmra.mrb[76].mxu0 %v7087_v58 }
  0xc9   :  { %6460 = vmatprep.mubr.bf16.mxu0 %v7088_v59 }
  0xca   :  { %6729 = vmatmul.mubr.bf16.gmra.mrb[76].mxu1 %v7087_v58 }
  0xcb   :  { %6732 = vmatprep.mubr.bf16.mxu1 %v7088_v59 }
  0xd0   :  { %6461 = vmatmul.mubr.bf16.gmra.mrb[80].mxu0 %v7089_v60 }
  0xd1   :  { %6464 = vmatprep.mubr.bf16.mxu0 %v7090_v61 }
  0xd2   :  { %6733 = vmatmul.mubr.bf16.gmra.mrb[80].mxu1 %v7089_v60 }
  0xd3   :  { %6736 = vmatprep.mubr.bf16.mxu1 %v7090_v61 }
  0xd8   :  { %6465 = vmatmul.mubr.bf16.gmra.mrb[84].mxu0 %v7091_v62 }
  0xd9   :  { %6468 = vmatprep.mubr.bf16.mxu0 %v7092_v63 }
  0xda   :  { %6737 = vmatmul.mubr.bf16.gmra.mrb[84].mxu1 %v7091_v62  ;;  %v7109_v62 = vld [vmem:[%s8894_s1 + $0x1e0] sm:$0xff]  }
  0xdb   :  { %6740 = vmatprep.mubr.bf16.mxu1 %v7092_v63  ;;  %v7657_v63 = vsub.s32 1, %v7605_v10 }
  0xe0   :  { %6469 = vmatmul.mubr.bf16.gmra.mrb[88].mxu0 %v7093_v0 }
  0xe1   :  { %6472 = vmatprep.mubr.bf16.mxu0 %v7094_v1 }
  0xe2   :  { %6741 = vmatmul.mubr.bf16.gmra.mrb[88].mxu1 %v7093_v0 }
  0xe3   :  { %6744 = vmatprep.mubr.bf16.mxu1 %v7094_v1 }
  0xe8   :  { %6473 = vmatmul.mubr.bf16.gmra.mrb[92].mxu0 %v7095_v3 }
  0xe9   :  { %6476 = vmatprep.mubr.bf16.mxu0 %v7096_v4 }
  0xea   :  { %6745 = vmatmul.mubr.bf16.gmra.mrb[92].mxu1 %v7095_v3 }
  0xeb   :  { %6748 = vmatprep.mubr.bf16.mxu1 %v7096_v4 }
  0xf0   :  { %6477 = vmatmul.mubr.bf16.gmra.mrb[96].mxu0 %v7097_v5 }
  0xf1   :  { %6480 = vmatprep.mubr.bf16.mxu0 %v7098_v6 }
  0xf2   :  { %6749 = vmatmul.mubr.bf16.gmra.mrb[96].mxu1 %v7097_v5 }
  0xf3   :  { %6752 = vmatprep.mubr.bf16.mxu1 %v7098_v6 }
  0xf8   :  { %6481 = vmatmul.mubr.bf16.gmra.mrb[100].mxu0 %v7099_v7 }
  0xf9   :  { %6484 = vmatprep.mubr.bf16.mxu0 %v7100_v8 }
  0xfa   :  { %6753 = vmatmul.mubr.bf16.gmra.mrb[100].mxu1 %v7099_v7  ;;  %v7663_v7 = vrot.slane %v7619_v14, %v7657_v63 }
  0xfb   :  { %6756 = vmatprep.mubr.bf16.mxu1 %v7100_v8 }
 0x100   :  { %6485 = vmatmul.mubr.bf16.gmra.mrb[104].mxu0 %v7101_v11 }
 0x101   :  { %6488 = vmatprep.mubr.bf16.mxu0 %v7102_v13 }
 0x102   :  { %6757 = vmatmul.mubr.bf16.gmra.mrb[104].mxu1 %v7101_v11 }
 0x103   :  { %v6382_v17 = vpop.f32.mrb[0].mxu0  ;;  %6760 = vmatprep.mubr.bf16.mxu1 %v7102_v13 }
 0x104   :  { %v1162_v18 = vpop.f32.mrb[1].mxu0  ;;  %v1171_v24 = vadd.f32 %v6382_v17, %v7623_v15 }
 0x105   :  { %v1163_v20 = vadd.f32 %v1162_v18, %v7623_v15  ;;  %v6383_v21 = vpop.f32.mrb[2].mxu0  ;;  %v6654_v34 = vpop.f32.mrb[0].mxu1 }
 0x106   :  { %v1165_v23 = vpop.f32.mrb[3].mxu0  ;;  %v1174_v27 = vadd.f32 %v6383_v21, %v7623_v15  ;;  %v2187_v29 = vmax.f32 %v1171_v24, 0.0  ;;  %v2849_v40 = vpop.f32.mrb[1].mxu1  ;;  %v2858_v17 = vadd.f32 %v6654_v34, %v7663_v7  ;;  %v7111_v34 = vld [vmem:[%s8894_s1 + $0x1f0] sm:$0xff]  }
 0x107   :  { %v1166_v25 = vadd.f32 %v1165_v23, %v7623_v15  ;;  %v2185_v26 = vmax.f32 %v1163_v20, 0.0  ;;  %v6655_v42 = vpop.f32.mrb[2].mxu1  ;;  %v2850_v18 = vadd.f32 %v2849_v40, %v7663_v7 }
 0x108   :  { %6489 = vmatmul.mubr.bf16.gmra.mrb[108].mxu0 %v7103_v19  ;;  %v2188_v35 = vmax.f32 %v1174_v27, 0.0  ;;  %v2852_v47 = vpop.f32.mrb[3].mxu1 }
 0x109   :  { %v2186_v28 = vmax.f32 %v1166_v25, 0.0  ;;  %6492 = vmatprep.mubr.bf16.mxu0 %v7104_v22  ;;  %v2853_v20 = vadd.f32 %v2852_v47, %v7663_v7  ;;  %v3360_v23 = vmax.f32 %v2850_v18, 0.0  ;;  %v7673_v25 = vld [vmem:[%s8894_s1 + $0x1e8] sm:$0xff]  }
 0x10a   :  { %6761 = vmatmul.mubr.bf16.gmra.mrb[108].mxu1 %v7103_v19  ;;  %v2861_v19 = vadd.f32 %v6655_v42, %v7663_v7 }
 0x10b   :  { %v2441_v30 = vadd.f32 %v2186_v28, %v2185_v26  ;;  %v6386_v31 = vpop.f32.mrb[4].mxu0  ;;  %6764 = vmatprep.mubr.bf16.mxu1 %v7104_v22  ;;  %v3362_v26 = vmax.f32 %v2858_v17, 0.0  ;;  %v3361_v27 = vmax.f32 %v2853_v20, 0.0 }
 0x10c   :  { %v1178_v32 = vpop.f32.mrb[5].mxu0  ;;  %v1187_v43 = vadd.f32 %v6386_v31, %v7623_v15 }
 0x10d   :  { %v2442_v36 = vadd.f32 %v2441_v30, %v2187_v29  ;;  %v1179_v37 = vadd.f32 %v1178_v32, %v7623_v15  ;;  %v6387_v38 = vpop.f32.mrb[6].mxu0  ;;  %v6658_v57 = vpop.f32.mrb[4].mxu1 }
 0x10e   :  { %v1181_v41 = vpop.f32.mrb[7].mxu0  ;;  %v1190_v50 = vadd.f32 %v6387_v38, %v7623_v15  ;;  %v2191_v52 = vmax.f32 %v1187_v43, 0.0  ;;  %v2865_v0 = vpop.f32.mrb[5].mxu1  ;;  %v3488_v38 = vadd.f32 %v3361_v27, %v3360_v23  ;;  %v2874_v47 = vadd.f32 %v6658_v57, %v7663_v7 }
 0x10f   :  { %v2189_v44 = vmax.f32 %v1179_v37, 0.0  ;;  %v2443_v45 = vadd.f32 %v2442_v36, %v2188_v35  ;;  %v1182_v46 = vadd.f32 %v1181_v41, %v7623_v15  ;;  %v6659_v3 = vpop.f32.mrb[6].mxu1  ;;  %v2866_v28 = vadd.f32 %v2865_v0, %v7663_v7  ;;  %v7693_v0 = vld [vmem:[%s8894_s1 + $0x1f8] sm:$0xff]  }
 0x110   :  { %6493 = vmatmul.mubr.bf16.gmra.mrb[112].mxu0 %v7105_v33  ;;  %v2192_v58 = vmax.f32 %v1190_v50, 0.0  ;;  %v2868_v8 = vpop.f32.mrb[7].mxu1  ;;  %v3363_v37 = vmax.f32 %v2861_v19, 0.0 }
 0x111   :  { %v2444_v48 = vadd.f32 %v2443_v45, %v2189_v44  ;;  %v2190_v51 = vmax.f32 %v1182_v46, 0.0  ;;  %6496 = vmatprep.mubr.bf16.mxu0 %v7106_v39  ;;  %v3489_v46 = vadd.f32 %v3488_v38, %v3362_v26 }
 0x112   :  { %6765 = vmatmul.mubr.bf16.gmra.mrb[112].mxu1 %v7105_v33 }
 0x113   :  { %v2445_v53 = vadd.f32 %v2444_v48, %v2190_v51  ;;  %v6390_v54 = vpop.f32.mrb[8].mxu0  ;;  %6768 = vmatprep.mubr.bf16.mxu1 %v7106_v39  ;;  %v2869_v39 = vadd.f32 %v2868_v8, %v7663_v7  ;;  %v3364_v48 = vmax.f32 %v2866_v28, 0.0  ;;  %v7113_v8 = vld [vmem:[%s8894_s1 + $0x200] sm:$0xff]  }
 0x114   :  { %v1194_v55 = vpop.f32.mrb[9].mxu0  ;;  %v1203_v1 = vadd.f32 %v6390_v54, %v7623_v15  ;;  %v3490_v54 = vadd.f32 %v3489_v46, %v3363_v37 }
 0x115   :  { %v1195_v59 = vadd.f32 %v1194_v55, %v7623_v15  ;;  %v2446_v60 = vadd.f32 %v2445_v53, %v2191_v52  ;;  %v6391_v61 = vpop.f32.mrb[10].mxu0  ;;  %v6662_v29 = vpop.f32.mrb[8].mxu1  ;;  %v7144_v53 = vld [vmem:[%s8895_s2 + $0xa0] sm:$0xff]   ;;  %v2877_v55 = vadd.f32 %v6659_v3, %v7663_v7 }
 0x116   :  { %v1197_v2 = vpop.f32.mrb[11].mxu0  ;;  %v1206_v11 = vadd.f32 %v6391_v61, %v7623_v15  ;;  %v2195_v21 = vmax.f32 %v1203_v1, 0.0  ;;  %v2881_v35 = vpop.f32.mrb[9].mxu1  ;;  %6789 = vmatpush3.bf16.msra.mxu1 %v7144_v53  ;;  %v3491_v1 = vadd.f32 %v3490_v54, %v3364_v48  ;;  %v2890_v26 = vadd.f32 %v6662_v29, %v7663_v7  ;;  %v7114_v29 = vld [vmem:[%s8894_s1 + $0x208] sm:$0xff]  }
 0x117   :  { %v2193_v4 = vmax.f32 %v1195_v59, 0.0  ;;  %v2447_v5 = vadd.f32 %v2446_v60, %v2192_v58  ;;  %v1198_v6 = vadd.f32 %v1197_v2, %v7623_v15  ;;  %v6663_v40 = vpop.f32.mrb[10].mxu1  ;;  %v3365_v58 = vmax.f32 %v2869_v39, 0.0  ;;  %6790 = vmatprep.subr.bf16.mxu1 %v7352_v49 }
 0x118   :  { %6497 = vmatmul.mubr.bf16.gmra.mrb[116].mxu0 %v7107_v56  ;;  %v2196_v30 = vmax.f32 %v1206_v11, 0.0  ;;  %v2884_v45 = vpop.f32.mrb[11].mxu1  ;;  %v2882_v2 = vadd.f32 %v2881_v35, %v7663_v7 }
 0x119   :  { %v2448_v13 = vadd.f32 %v2447_v5, %v2193_v4  ;;  %v2194_v16 = vmax.f32 %v1198_v6, 0.0  ;;  %6500 = vmatprep.mubr.bf16.mxu0 %v7109_v62  ;;  %v3492_v17 = vadd.f32 %v3491_v1, %v3365_v58  ;;  %v2885_v18 = vadd.f32 %v2884_v45, %v7663_v7 }
 0x11a   :  { %6769 = vmatmul.mubr.bf16.gmra.mrb[116].mxu1 %v7107_v56  ;;  %v3366_v56 = vmax.f32 %v2874_v47, 0.0  ;;  %v3368_v27 = vmax.f32 %v2882_v2, 0.0 }
 0x11b   :  { %v2449_v14 = vadd.f32 %v2448_v13, %v2194_v16  ;;  %v6394_v22 = vpop.f32.mrb[12].mxu0  ;;  %6772 = vmatprep.mubr.bf16.mxu1 %v7109_v62  ;;  %v3367_v16 = vmax.f32 %v2877_v55, 0.0  ;;  %v3369_v35 = vmax.f32 %v2885_v18, 0.0 }
 0x11c   :  { %v1210_v24 = vpop.f32.mrb[13].mxu0  ;;  %v1219_v41 = vadd.f32 %v6394_v22, %v7623_v15 }
 0x11d   :  { %v2450_v31 = vadd.f32 %v2449_v14, %v2195_v21  ;;  %v1211_v32 = vadd.f32 %v1210_v24, %v7623_v15  ;;  %v6395_v33 = vpop.f32.mrb[14].mxu0  ;;  %v6666_v4 = vpop.f32.mrb[12].mxu1  ;;  %v3493_v24 = vadd.f32 %v3492_v17, %v3366_v56 }
 0x11e   :  { %v1213_v36 = vpop.f32.mrb[15].mxu0  ;;  %v1222_v51 = vadd.f32 %v6395_v33, %v7623_v15  ;;  %v2199_v59 = vmax.f32 %v1219_v41, 0.0  ;;  %v2897_v11 = vpop.f32.mrb[13].mxu1  ;;  %v2893_v33 = vadd.f32 %v6663_v40, %v7663_v7  ;;  %v3370_v41 = vmax.f32 %v2890_v26, 0.0  ;;  %v7115_v40 = vld [vmem:[%s8894_s1 + $0x210] sm:$0xff]  }
 0x11f   :  { %v2197_v42 = vmax.f32 %v1211_v32, 0.0  ;;  %v2451_v43 = vadd.f32 %v2450_v31, %v2196_v30  ;;  %v1214_v44 = vadd.f32 %v1213_v36, %v7623_v15  ;;  %v6667_v19 = vpop.f32.mrb[14].mxu1  ;;  %v3494_v32 = vadd.f32 %v3493_v24, %v3367_v16 }
 0x120   :  { %6501 = vmatmul.mubr.bf16.gmra.mrb[120].mxu0 %v7673_v25  ;;  %v2200_v62 = vmax.f32 %v1222_v51, 0.0  ;;  %v2900_v23 = vpop.f32.mrb[15].mxu1 }
 0x121   :  { %v2452_v50 = vadd.f32 %v2451_v43, %v2197_v42  ;;  %v2198_v52 = vmax.f32 %v1214_v44, 0.0  ;;  %6504 = vmatprep.mubr.bf16.mxu0 %v7111_v34  ;;  %v3495_v42 = vadd.f32 %v3494_v32, %v3368_v27  ;;  %v2898_v43 = vadd.f32 %v2897_v11, %v7663_v7 }
 0x122   :  { %6773 = vmatmul.mubr.bf16.gmra.mrb[120].mxu1 %v7673_v25 }
 0x123   :  { %v2453_v60 = vadd.f32 %v2452_v50, %v2198_v52  ;;  %v6398_v61 = vpop.f32.mrb[16].mxu0  ;;  %6776 = vmatprep.mubr.bf16.mxu1 %v7111_v34  ;;  %v3371_v50 = vmax.f32 %v2893_v33, 0.0  ;;  %v3496_v51 = vadd.f32 %v3495_v42, %v3369_v35  ;;  %v2901_v52 = vadd.f32 %v2900_v23, %v7663_v7 }
 0x124   :  { %v1226_v57 = vpop.f32.mrb[17].mxu0  ;;  %v1235_v20 = vadd.f32 %v6398_v61, %v7623_v15  ;;  %v3372_v56 = vmax.f32 %v2898_v43, 0.0 }
 0x125   :  { %v2454_v3 = vadd.f32 %v2453_v60, %v2199_v59  ;;  %v1227_v5 = vadd.f32 %v1226_v57, %v7623_v15  ;;  %v6399_v6 = vpop.f32.mrb[18].mxu0  ;;  %v6670_v44 = vpop.f32.mrb[16].mxu1  ;;  %v3497_v61 = vadd.f32 %v3496_v51, %v3370_v41  ;;  %v2906_v57 = vadd.f32 %v6666_v4, %v7663_v7  ;;  %v7116_v4 = vld [vmem:[%s8894_s1 + $0x218] sm:$0xff]  }
 0x126   :  { %v1229_v13 = vpop.f32.mrb[19].mxu0  ;;  %v1238_v30 = vadd.f32 %v6399_v6, %v7623_v15  ;;  %v2203_v36 = vmax.f32 %v1235_v20, 0.0  ;;  %v2913_v47 = vpop.f32.mrb[17].mxu1  ;;  %v3373_v6 = vmax.f32 %v2901_v52, 0.0 }
 0x127   :  { %v2201_v21 = vmax.f32 %v1227_v5, 0.0  ;;  %v2455_v14 = vadd.f32 %v2454_v3, %v2200_v62  ;;  %v1230_v22 = vadd.f32 %v1229_v13, %v7623_v15  ;;  %v6671_v53 = vpop.f32.mrb[18].mxu1  ;;  %v3498_v3 = vadd.f32 %v3497_v61, %v3371_v50  ;;  %v7119_v50 = vld [vmem:[%s8894_s1 + $0x228] sm:$0xff]  }
 0x128   :  { %6505 = vmatmul.mubr.bf16.gmra.mrb[124].mxu0 %v7693_v0  ;;  %v2204_v45 = vmax.f32 %v1238_v30, 0.0  ;;  %v2916_v60 = vpop.f32.mrb[19].mxu1  ;;  %v2909_v5 = vadd.f32 %v6667_v19, %v7663_v7  ;;  %v3374_v17 = vmax.f32 %v2906_v57, 0.0  ;;  %v2914_v20 = vadd.f32 %v2913_v47, %v7663_v7  ;;  %v7118_v19 = vld [vmem:[%s8894_s1 + $0x220] sm:$0xff]  }
 0x129   :  { %v2456_v28 = vadd.f32 %v2455_v14, %v2201_v21  ;;  %v2202_v31 = vmax.f32 %v1230_v22, 0.0  ;;  %6508 = vmatprep.mubr.bf16.mxu0 %v7113_v8  ;;  %v3499_v18 = vadd.f32 %v3498_v3, %v3372_v56  ;;  %v2917_v30 = vadd.f32 %v2916_v60, %v7663_v7 }
 0x12a   :  { %6777 = vmatmul.mubr.bf16.gmra.mrb[124].mxu1 %v7693_v0  ;;  %v3375_v27 = vmax.f32 %v2909_v5, 0.0 }
 0x12b   :  { %v2457_v37 = vadd.f32 %v2456_v28, %v2202_v31  ;;  %v6402_v38 = vpop.f32.mrb[20].mxu0  ;;  %v3500_v28 = vadd.f32 %v3499_v18, %v3373_v6  ;;  %6796 = vmatprep.mubr.msk.bf16.mxu1 %vm7353_vm5, %v7352_v49 }
 0x12c   :  { %v1242_v39 = vpop.f32.mrb[21].mxu0  ;;  %v1251_v54 = vadd.f32 %v6402_v38, %v7623_v15 }
 0x12d   :  { %v2458_v25 = vadd.f32 %v2457_v37, %v2203_v36  ;;  %v1243_v34 = vadd.f32 %v1242_v39, %v7623_v15  ;;  %v6403_v46 = vpop.f32.mrb[22].mxu0  ;;  %v6674_v21 = vpop.f32.mrb[20].mxu1  ;;  %v3501_v38 = vadd.f32 %v3500_v28, %v3374_v17  ;;  %v2922_v39 = vadd.f32 %v6670_v44, %v7663_v7 }
 0x12e   :  { %v1245_v48 = vpop.f32.mrb[23].mxu0  ;;  %v1254_v2 = vadd.f32 %v6403_v46, %v7623_v15  ;;  %v2207_v8 = vmax.f32 %v1251_v54, 0.0  ;;  %v2929_v24 = vpop.f32.mrb[21].mxu1 }
 0x12f   :  { %v2205_v55 = vmax.f32 %v1243_v34, 0.0  ;;  %v2459_v58 = vadd.f32 %v2458_v25, %v2204_v45  ;;  %v1246_v59 = vadd.f32 %v1245_v48, %v7623_v15  ;;  %v6675_v31 = vpop.f32.mrb[22].mxu1  ;;  %v3502_v45 = vadd.f32 %v3501_v38, %v3375_v27  ;;  %v7122_v38 = vld [vmem:[%s8894_s1 + $0x240] sm:$0xff]  }
 0x130   :  { %6509 = vmatmul.mubr.bf16.gmra.mrb[128].mxu0 %v7114_v29  ;;  %v2208_v14 = vmax.f32 %v1254_v2, 0.0  ;;  %v2932_v37 = vpop.f32.mrb[23].mxu1  ;;  %v3376_v29 = vmax.f32 %v2914_v20, 0.0  ;;  %v2925_v25 = vadd.f32 %v6671_v53, %v7663_v7  ;;  %v3377_v34 = vmax.f32 %v2917_v30, 0.0  ;;  %v7120_v53 = vld [vmem:[%s8894_s1 + $0x230] sm:$0xff]  }
 0x131   :  { %v2460_v1 = vadd.f32 %v2459_v58, %v2205_v55  ;;  %v2206_v62 = vmax.f32 %v1246_v59, 0.0  ;;  %6512 = vmatprep.mubr.bf16.mxu0 %v7115_v40  ;;  %v3378_v51 = vmax.f32 %v2922_v39, 0.0  ;;  %v2930_v52 = vadd.f32 %v2929_v24, %v7663_v7 }
 0x132   :  { %v3503_v44 = vadd.f32 %v3502_v45, %v3376_v29  ;;  %v3379_v56 = vmax.f32 %v2925_v25, 0.0  ;;  %v2933_v2 = vadd.f32 %v2932_v37, %v7663_v7 }
 0x133   :  { %v2461_v11 = vadd.f32 %v2460_v1, %v2206_v62  ;;  %v6406_v13 = vpop.f32.mrb[24].mxu0 }
 0x134   :  { %v1258_v16 = vpop.f32.mrb[25].mxu0  ;;  %v1267_v32 = vadd.f32 %v6406_v13, %v7623_v15  ;;  %v3504_v1 = vadd.f32 %v3503_v44, %v3377_v34 }
 0x135   :  { %v2462_v22 = vadd.f32 %v2461_v11, %v2207_v8  ;;  %v1259_v0 = vadd.f32 %v1258_v16, %v7623_v15  ;;  %v6407_v23 = vpop.f32.mrb[26].mxu0  ;;  %v6678_v54 = vpop.f32.mrb[24].mxu1  ;;  %v2938_v16 = vadd.f32 %v6674_v21, %v7663_v7  ;;  %v7121_v21 = vld [vmem:[%s8894_s1 + $0x238] sm:$0xff]  }
 0x136   :  { %v1261_v26 = vpop.f32.mrb[27].mxu0  ;;  %v1270_v42 = vadd.f32 %v6407_v23, %v7623_v15  ;;  %v2211_v46 = vmax.f32 %v1267_v32, 0.0  ;;  %v2945_v61 = vpop.f32.mrb[25].mxu1  ;;  %v3505_v13 = vadd.f32 %v3504_v1, %v3378_v51  ;;  %v3381_v23 = vmax.f32 %v2933_v2, 0.0 }
 0x137   :  { %v2209_v33 = vmax.f32 %v1259_v0, 0.0  ;;  %v2463_v35 = vadd.f32 %v2462_v22, %v2208_v14  ;;  %v1262_v36 = vadd.f32 %v1261_v26, %v7623_v15  ;;  %v6679_v62 = vpop.f32.mrb[26].mxu1  ;;  %v7153_v14 = vld [vmem:[%s8895_s2 + $0xa8] sm:$0xff]   ;;  %v2941_v0 = vadd.f32 %v6675_v31, %v7663_v7 }
 0x138   :  { %6513 = vmatmul.mubr.bf16.gmra.mrb[132].mxu0 %v7116_v4  ;;  %v2212_v55 = vmax.f32 %v1270_v42, 0.0  ;;  %v2948_v11 = vpop.f32.mrb[27].mxu1  ;;  %v3380_v4 = vmax.f32 %v2930_v52, 0.0  ;;  %v3506_v22 = vadd.f32 %v3505_v13, %v3379_v56  ;;  %6791 = vmatpush3.bf16.msra.mxu1 %v7153_v14  ;;  %v3382_v28 = vmax.f32 %v2938_v16, 0.0  ;;  %v7123_v56 = vld [vmem:[%s8894_s1 + $0x248] sm:$0xff]  }
 0x139   :  { %v2464_v41 = vadd.f32 %v2463_v35, %v2209_v33  ;;  %v2210_v43 = vmax.f32 %v1262_v36, 0.0  ;;  %6516 = vmatprep.mubr.bf16.mxu0 %v7118_v19  ;;  %v2946_v32 = vadd.f32 %v2945_v61, %v7663_v7  ;;  %6792 = vmatprep.subr.bf16.mxu1 %v7352_v49 }
 0x13a   :  { %v3507_v30 = vadd.f32 %v3506_v22, %v3380_v4 }
 0x13b   :  { %v2465_v40 = vadd.f32 %v2464_v41, %v2210_v43  ;;  %v6410_v47 = vpop.f32.mrb[28].mxu0  ;;  %v3383_v41 = vmax.f32 %v2941_v0, 0.0  ;;  %v2949_v43 = vadd.f32 %v2948_v11, %v7663_v7 }
 0x13c   :  { %v1274_v48 = vpop.f32.mrb[29].mxu0  ;;  %v1283_v3 = vadd.f32 %v6410_v47, %v7623_v15  ;;  %v3508_v42 = vadd.f32 %v3507_v30, %v3381_v23 }
 0x13d   :  { %v2466_v58 = vadd.f32 %v2465_v40, %v2211_v46  ;;  %v1275_v59 = vadd.f32 %v1274_v48, %v7623_v15  ;;  %v6411_v60 = vpop.f32.mrb[30].mxu0  ;;  %v6682_v33 = vpop.f32.mrb[28].mxu1  ;;  %v2954_v48 = vadd.f32 %v6678_v54, %v7663_v7 }
 0x13e   :  { %v1277_v57 = vpop.f32.mrb[31].mxu0  ;;  %v1286_v18 = vadd.f32 %v6411_v60, %v7623_v15  ;;  %v2215_v19 = vmax.f32 %v1283_v3, 0.0  ;;  %v2961_v39 = vpop.f32.mrb[29].mxu1  ;;  %v3509_v47 = vadd.f32 %v3508_v42, %v3382_v28 }
 0x13f   :  { %v2213_v5 = vmax.f32 %v1275_v59, 0.0  ;;  %v2467_v6 = vadd.f32 %v2466_v58, %v2212_v55  ;;  %v1278_v8 = vadd.f32 %v1277_v57, %v7623_v15  ;;  %v6683_v45 = vpop.f32.mrb[30].mxu1  ;;  %v2957_v58 = vadd.f32 %v6679_v62, %v7663_v7  ;;  %v7124_v62 = vld [vmem:[%s8894_s1 + $0x250] sm:$0xff]  }
 0x140   :  { %6517 = vmatmul.mubr.bf16.gmra.mrb[136].mxu0 %v7119_v50  ;;  %v2216_v35 = vmax.f32 %v1286_v18, 0.0  ;;  %v2964_v40 = vpop.f32.mrb[31].mxu1  ;;  %v3384_v50 = vmax.f32 %v2946_v32, 0.0  ;;  %v3510_v55 = vadd.f32 %v3509_v47, %v3383_v41  ;;  %v3385_v59 = vmax.f32 %v2949_v43, 0.0 }
 0x141   :  { %v2468_v17 = vadd.f32 %v2467_v6, %v2213_v5  ;;  %v2214_v20 = vmax.f32 %v1278_v8, 0.0  ;;  %6520 = vmatprep.mubr.bf16.mxu0 %v7120_v53  ;;  %v3386_v1 = vmax.f32 %v2954_v48, 0.0  ;;  %v2962_v2 = vadd.f32 %v2961_v39, %v7663_v7 }
 0x142   :  { %v3511_v54 = vadd.f32 %v3510_v55, %v3384_v50  ;;  %v2965_v13 = vadd.f32 %v2964_v40, %v7663_v7  ;;  %v2973_v28 = vadd.f32 %v6683_v45, %v7663_v7  ;;  %v7125_v45 = vld [vmem:[%s8894_s1 + $0x258] sm:$0xff]   ;;  %v7127_v55 = vld [vmem:[%s8894_s1 + $0x260] sm:$0xff]  }
 0x143   :  { %v2469_v24 = vadd.f32 %v2468_v17, %v2214_v20  ;;  %v6414_v26 = vpop.f32.mrb[32].mxu0  ;;  %v3387_v17 = vmax.f32 %v2957_v58, 0.0  ;;  %v2970_v20 = vadd.f32 %v6682_v33, %v7663_v7 }
 0x144   :  { %v1290_v27 = vpop.f32.mrb[33].mxu0  ;;  %v1299_v34 = vadd.f32 %v6414_v26, %v7623_v15  ;;  %v3512_v18 = vadd.f32 %v3511_v54, %v3385_v59 }
 0x145   :  { %v2470_v36 = vadd.f32 %v2469_v24, %v2215_v19  ;;  %v1291_v31 = vadd.f32 %v1290_v27, %v7623_v15  ;;  %v6415_v37 = vpop.f32.mrb[34].mxu0  ;;  %v6686_v3 = vpop.f32.mrb[32].mxu1 }
 0x146   :  { %v1293_v29 = vpop.f32.mrb[35].mxu0  ;;  %v1302_v44 = vadd.f32 %v6415_v37, %v7623_v15  ;;  %v2219_v60 = vmax.f32 %v1299_v34, 0.0  ;;  %v2977_v16 = vpop.f32.mrb[33].mxu1  ;;  %v3513_v27 = vadd.f32 %v3512_v18, %v3386_v1  ;;  %v2986_v30 = vadd.f32 %v6686_v3, %v7663_v7 }
 0x147   :  { %v7765_v25 = vadd.f32 %v2470_v36, %v2216_v35  ;;  %v1294_v46 = vadd.f32 %v1293_v29, %v7623_v15  ;;  %v2217_v51 = vmax.f32 %v1291_v31, 0.0  ;;  %v2978_v14 = vadd.f32 %v2977_v16, %v7663_v7  ;;  %v6687_v22 = vpop.f32.mrb[34].mxu1 }
 0x148   :  { %6521 = vmatmul.mubr.bf16.gmra.mrb[140].mxu0 %v7121_v21  ;;  %v2220_v5 = vmax.f32 %v1302_v44, 0.0  ;;  %v2980_v26 = vpop.f32.mrb[35].mxu1  ;;  %v3388_v21 = vmax.f32 %v2962_v2, 0.0  ;;  %v3389_v36 = vmax.f32 %v2965_v13, 0.0  ;;  %v3514_v31 = vadd.f32 %v3513_v27, %v3387_v17  ;;  %v7128_v27 = vld [vmem:[%s8894_s1 + $0x268] sm:$0xff]  }
 0x149   :  { %v2218_v52 = vmax.f32 %v1294_v46, 0.0  ;;  %6524 = vmatprep.mubr.bf16.mxu0 %v7122_v38  ;;  %v3392_v37 = vmax.f32 %v2978_v14, 0.0  ;;  %v2989_v38 = vadd.f32 %v6687_v22, %v7663_v7  ;;  %v2981_v39 = vadd.f32 %v2980_v26, %v7663_v7 }
 0x14a   :  { %v3390_v34 = vmax.f32 %v2970_v20, 0.0  ;;  %v3515_v46 = vadd.f32 %v3514_v31, %v3388_v21  ;;  %v3394_v40 = vmax.f32 %v2986_v30, 0.0  ;;  %v7129_v31 = vld [vmem:[%s8894_s1 + $0x270] sm:$0xff]  }
 0x14b   :  { %v2478_v53 = vadd.f32 %v2218_v52, %v2217_v51  ;;  %v6418_v61 = vpop.f32.mrb[36].mxu0  ;;  %v3393_v47 = vmax.f32 %v2981_v39, 0.0 }
 0x14c   :  { %v1306_v57 = vpop.f32.mrb[37].mxu0  ;;  %v1315_v0 = vadd.f32 %v6418_v61, %v7623_v15  ;;  %v3395_v61 = vmax.f32 %v2989_v38, 0.0 }
 0x14d   :  { %v2479_v6 = vadd.f32 %v2478_v53, %v2219_v60  ;;  %v1307_v8 = vadd.f32 %v1306_v57, %v7623_v15  ;;  %v6419_v11 = vpop.f32.mrb[38].mxu0  ;;  %v6690_v48 = vpop.f32.mrb[36].mxu1  ;;  %v3391_v60 = vmax.f32 %v2973_v28, 0.0  ;;  %v3516_v53 = vadd.f32 %v3515_v46, %v3389_v36 }
 0x14e   :  { %v1309_v4 = vpop.f32.mrb[39].mxu0  ;;  %v1318_v33 = vadd.f32 %v6419_v11, %v7623_v15  ;;  %v2223_v29 = vmax.f32 %v1315_v0, 0.0  ;;  %v2993_v58 = vpop.f32.mrb[37].mxu1  ;;  %v3525_v57 = vadd.f32 %v3393_v47, %v3392_v37  ;;  %v3002_v11 = vadd.f32 %v6690_v48, %v7663_v7 }
 0x14f   :  { %v2221_v23 = vmax.f32 %v1307_v8, 0.0  ;;  %v2480_v19 = vadd.f32 %v2479_v6, %v2220_v5  ;;  %v1310_v24 = vadd.f32 %v1309_v4, %v7623_v15  ;;  %v3517_v6 = vadd.f32 %v3516_v53, %v3390_v34 }
 0x150   :  { %6525 = vmatmul.mubr.bf16.gmra.mrb[144].mxu0 %v7123_v56  ;;  %v2224_v50 = vmax.f32 %v1318_v33, 0.0  ;;  %v6691_v56 = vpop.f32.mrb[38].mxu1  ;;  %v3526_v8 = vadd.f32 %v3525_v57, %v3394_v40  ;;  %v3398_v21 = vmax.f32 %v3002_v11, 0.0 }
 0x151   :  { %v2481_v32 = vadd.f32 %v2480_v19, %v2221_v23  ;;  %v2222_v35 = vmax.f32 %v1310_v24, 0.0  ;;  %6528 = vmatprep.mubr.bf16.mxu0 %v7124_v62  ;;  %v2996_v5 = vpop.f32.mrb[39].mxu1  ;;  %v2994_v62 = vadd.f32 %v2993_v58, %v7663_v7  ;;  %v7803_v18 = vadd.f32 %v3517_v6, %v3391_v60 }
 0x152   :  { %v2997_v17 = vadd.f32 %v2996_v5, %v7663_v7  ;;  %v3527_v14 = vadd.f32 %v3526_v8, %v3395_v61  ;;  %v3005_v22 = vadd.f32 %v6691_v56, %v7663_v7 }
 0x153   :  { %v2482_v41 = vadd.f32 %v2481_v32, %v2222_v35  ;;  %v6422_v42 = vpop.f32.mrb[40].mxu0  ;;  %v3396_v20 = vmax.f32 %v2994_v62, 0.0 }
 0x154   :  { %v1322_v43 = vpop.f32.mrb[41].mxu0  ;;  %v1331_v1 = vadd.f32 %v6422_v42, %v7623_v15  ;;  %v3397_v24 = vmax.f32 %v2997_v17, 0.0  ;;  %v3399_v39 = vmax.f32 %v3005_v22, 0.0 }
 0x155   :  { %v2483_v51 = vadd.f32 %v2482_v41, %v2223_v29  ;;  %v1323_v44 = vadd.f32 %v1322_v43, %v7623_v15  ;;  %v6423_v52 = vpop.f32.mrb[42].mxu0  ;;  %v3528_v28 = vadd.f32 %v3527_v14, %v3396_v20  ;;  %v6694_v30 = vpop.f32.mrb[40].mxu1 }
 0x156   :  { %v1325_v59 = vpop.f32.mrb[43].mxu0  ;;  %v1334_v16 = vadd.f32 %v6423_v52, %v7623_v15  ;;  %v2227_v0 = vmax.f32 %v1331_v1, 0.0  ;;  %v3009_v37 = vpop.f32.mrb[41].mxu1  ;;  %v3018_v47 = vadd.f32 %v6694_v30, %v7663_v7 }
 0x157   :  { %v2225_v54 = vmax.f32 %v1323_v44, 0.0  ;;  %v2484_v2 = vadd.f32 %v2483_v51, %v2224_v50  ;;  %v1326_v3 = vadd.f32 %v1325_v59, %v7623_v15  ;;  %v3529_v29 = vadd.f32 %v3528_v28, %v3397_v24  ;;  %v6695_v41 = vpop.f32.mrb[42].mxu1 }
 0x158   :  { %6529 = vmatmul.mubr.bf16.gmra.mrb[148].mxu0 %v7125_v45  ;;  %v2228_v32 = vmax.f32 %v1334_v16, 0.0  ;;  %v3012_v46 = vpop.f32.mrb[43].mxu1  ;;  %v3010_v48 = vadd.f32 %v3009_v37, %v7663_v7  ;;  %v3021_v60 = vadd.f32 %v6695_v41, %v7663_v7 }
 0x159   :  { %v2485_v13 = vadd.f32 %v2484_v2, %v2225_v54  ;;  %v2226_v4 = vmax.f32 %v1326_v3, 0.0  ;;  %6532 = vmatprep.mubr.bf16.mxu0 %v7127_v55  ;;  %v3530_v40 = vadd.f32 %v3529_v29, %v3398_v21  ;;  %v3013_v52 = vadd.f32 %v3012_v46, %v7663_v7  ;;  %v7162_v55 = vld [vmem:[%s8895_s2 + $0xb0] sm:$0xff]   ;;  %v7130_v54 = vld [vmem:[%s8894_s1 + $0x278] sm:$0xff]  }
 0x15a   :  { %v3400_v58 = vmax.f32 %v3010_v48, 0.0  ;;  %6793 = vmatpush3.bf16.msra.mxu1 %v7162_v55  ;;  %v3402_v2 = vmax.f32 %v3018_v47, 0.0  ;;  %v3403_v17 = vmax.f32 %v3021_v60, 0.0 }
 0x15b   :  { %v2486_v23 = vadd.f32 %v2485_v13, %v2226_v4  ;;  %v6426_v19 = vpop.f32.mrb[44].mxu0  ;;  %v3531_v59 = vadd.f32 %v3530_v40, %v3399_v39  ;;  %v3401_v56 = vmax.f32 %v3013_v52, 0.0  ;;  %6794 = vmatprep.subr.bf16.mxu1 %v7352_v49  ;;  %v7131_v13 = vld [vmem:[%s8894_s1 + $0x280] sm:$0xff]  }
 0x15c   :  { %v1338_v26 = vpop.f32.mrb[45].mxu0  ;;  %v1347_v42 = vadd.f32 %v6426_v19, %v7623_v15 }
 0x15d   :  { %v2487_v33 = vadd.f32 %v2486_v23, %v2227_v0  ;;  %v1339_v35 = vadd.f32 %v1338_v26, %v7623_v15  ;;  %v6427_v36 = vpop.f32.mrb[46].mxu0  ;;  %v3532_v3 = vadd.f32 %v3531_v59, %v3400_v58  ;;  %v6698_v5 = vpop.f32.mrb[44].mxu1 }
 0x15e   :  { %v1341_v38 = vpop.f32.mrb[47].mxu0  ;;  %v1350_v51 = vadd.f32 %v6427_v36, %v7623_v15  ;;  %v2231_v53 = vmax.f32 %v1347_v42, 0.0  ;;  %v3025_v16 = vpop.f32.mrb[45].mxu1  ;;  %v7132_v42 = vld [vmem:[%s8894_s1 + $0x288] sm:$0xff]  }
 0x15f   :  { %v2229_v43 = vmax.f32 %v1339_v35, 0.0  ;;  %v2488_v45 = vadd.f32 %v2487_v33, %v2228_v32  ;;  %v1342_v34 = vadd.f32 %v1341_v38, %v7623_v15  ;;  %v3533_v20 = vadd.f32 %v3532_v3, %v3401_v56  ;;  %v6699_v14 = vpop.f32.mrb[46].mxu1 }
 0x160   :  { %6533 = vmatmul.mubr.bf16.gmra.mrb[152].mxu0 %v7128_v27  ;;  %v2232_v6 = vmax.f32 %v1350_v51, 0.0  ;;  %v3028_v24 = vpop.f32.mrb[47].mxu1  ;;  %v3034_v27 = vadd.f32 %v6698_v5, %v7663_v7  ;;  %v3026_v21 = vadd.f32 %v3025_v16, %v7663_v7 }
 0x161   :  { %v2489_v50 = vadd.f32 %v2488_v45, %v2229_v43  ;;  %v2230_v44 = vmax.f32 %v1342_v34, 0.0  ;;  %6536 = vmatprep.mubr.bf16.mxu0 %v7129_v31  ;;  %v3534_v26 = vadd.f32 %v3533_v20, %v3402_v2  ;;  %v3029_v33 = vadd.f32 %v3028_v24, %v7663_v7 }
 0x162   :  { %v3404_v35 = vmax.f32 %v3026_v21, 0.0  ;;  %v3037_v31 = vadd.f32 %v6699_v14, %v7663_v7  ;;  %v3406_v43 = vmax.f32 %v3034_v27, 0.0  ;;  %v7134_v14 = vld [vmem:[%s8894_s1 + $0x298] sm:$0xff]   ;;  %v7136_v21 = vld [vmem:[%s8894_s1 + $0x2a0] sm:$0xff]  }
 0x163   :  { %v2490_v61 = vadd.f32 %v2489_v50, %v2230_v44  ;;  %v6430_v57 = vpop.f32.mrb[48].mxu0  ;;  %v3535_v36 = vadd.f32 %v3534_v26, %v3403_v17  ;;  %v3405_v29 = vmax.f32 %v3029_v33, 0.0  ;;  %v7133_v50 = vld [vmem:[%s8894_s1 + $0x290] sm:$0xff]  }
 0x164   :  { %v1354_v1 = vpop.f32.mrb[49].mxu0  ;;  %v1363_v22 = vadd.f32 %v6430_v57, %v7623_v15  ;;  %v3407_v52 = vmax.f32 %v3037_v31, 0.0 }
 0x165   :  { %v2491_v8 = vadd.f32 %v2490_v61, %v2231_v53  ;;  %v1355_v11 = vadd.f32 %v1354_v1, %v7623_v15  ;;  %v6431_v62 = vpop.f32.mrb[50].mxu0  ;;  %v3536_v45 = vadd.f32 %v3535_v36, %v3404_v35  ;;  %v6702_v34 = vpop.f32.mrb[48].mxu1 }
 0x166   :  { %v1357_v4 = vpop.f32.mrb[51].mxu0  ;;  %v1366_v30 = vadd.f32 %v6431_v62, %v7623_v15  ;;  %v2235_v37 = vmax.f32 %v1363_v22, 0.0  ;;  %v3041_v51 = vpop.f32.mrb[49].mxu1 }
 0x167   :  { %v2233_v0 = vmax.f32 %v1355_v11, 0.0  ;;  %v2492_v23 = vadd.f32 %v2491_v8, %v2232_v6  ;;  %v1358_v19 = vadd.f32 %v1357_v4, %v7623_v15  ;;  %v3537_v55 = vadd.f32 %v3536_v45, %v3405_v29  ;;  %v6703_v59 = vpop.f32.mrb[50].mxu1 }
 0x168   :  { %6537 = vmatmul.mubr.bf16.gmra.mrb[156].mxu0 %v7130_v54  ;;  %v2236_v46 = vmax.f32 %v1366_v30, 0.0  ;;  %v3042_v58 = vadd.f32 %v3041_v51, %v7663_v7  ;;  %v3044_v56 = vpop.f32.mrb[51].mxu1  ;;  %v3050_v54 = vadd.f32 %v6702_v34, %v7663_v7  ;;  %v3053_v62 = vadd.f32 %v6703_v59, %v7663_v7 }
 0x169   :  { %v2493_v28 = vadd.f32 %v2492_v23, %v2233_v0  ;;  %v2234_v32 = vmax.f32 %v1358_v19, 0.0  ;;  %6540 = vmatprep.mubr.bf16.mxu0 %v7131_v13  ;;  %v3538_v1 = vadd.f32 %v3537_v55, %v3406_v43  ;;  %v3045_v8 = vadd.f32 %v3044_v56, %v7663_v7 }
 0x16a   :  { %v3408_v2 = vmax.f32 %v3042_v58, 0.0  ;;  %v3410_v22 = vmax.f32 %v3050_v54, 0.0  ;;  %v7137_v58 = vld [vmem:[%s8894_s1 + $0x2a8] sm:$0xff]   ;;  %v7138_v54 = vld [vmem:[%s8894_s1 + $0x2b0] sm:$0xff]  }
 0x16b   :  { %v2494_v38 = vadd.f32 %v2493_v28, %v2234_v32  ;;  %v6434_v39 = vpop.f32.mrb[52].mxu0  ;;  %v3539_v11 = vadd.f32 %v3538_v1, %v3407_v52  ;;  %v3409_v17 = vmax.f32 %v3045_v8, 0.0  ;;  %v3411_v32 = vmax.f32 %v3053_v62, 0.0 }
 0x16c   :  { %v1370_v41 = vpop.f32.mrb[53].mxu0  ;;  %v1379_v60 = vadd.f32 %v6434_v39, %v7623_v15 }
 0x16d   :  { %v2495_v40 = vadd.f32 %v2494_v38, %v2235_v37  ;;  %v1371_v47 = vadd.f32 %v1370_v41, %v7623_v15  ;;  %v6435_v48 = vpop.f32.mrb[54].mxu0  ;;  %v3540_v0 = vadd.f32 %v3539_v11, %v3408_v2  ;;  %v6706_v23 = vpop.f32.mrb[52].mxu1 }
 0x16e   :  { %v1373_v44 = vpop.f32.mrb[55].mxu0  ;;  %v1382_v5 = vadd.f32 %v6435_v48, %v7623_v15  ;;  %v2239_v13 = vmax.f32 %v1379_v60, 0.0  ;;  %v3057_v28 = vpop.f32.mrb[53].mxu1 }
 0x16f   :  { %v2237_v53 = vmax.f32 %v1371_v47, 0.0  ;;  %v2496_v61 = vadd.f32 %v2495_v40, %v2236_v46  ;;  %v1374_v57 = vadd.f32 %v1373_v44, %v7623_v15  ;;  %v3541_v33 = vadd.f32 %v3540_v0, %v3409_v17  ;;  %v6707_v36 = vpop.f32.mrb[54].mxu1 }
 0x170   :  { %6541 = vmatmul.mubr.bf16.gmra.mrb[160].mxu0 %v7132_v42  ;;  %v2240_v19 = vmax.f32 %v1382_v5, 0.0  ;;  %v3058_v35 = vadd.f32 %v3057_v28, %v7663_v7  ;;  %v3060_v29 = vpop.f32.mrb[55].mxu1  ;;  %v3066_v42 = vadd.f32 %v6706_v23, %v7663_v7  ;;  %v3069_v48 = vadd.f32 %v6707_v36, %v7663_v7 }
 0x171   :  { %v2497_v3 = vadd.f32 %v2496_v61, %v2237_v53  ;;  %v2238_v6 = vmax.f32 %v1374_v57, 0.0  ;;  %6544 = vmatprep.mubr.bf16.mxu0 %v7133_v50  ;;  %v3542_v41 = vadd.f32 %v3541_v33, %v3410_v22  ;;  %v3061_v40 = vadd.f32 %v3060_v29, %v7663_v7 }
 0x172   :  { %v3412_v43 = vmax.f32 %v3058_v35, 0.0  ;;  %v3414_v59 = vmax.f32 %v3066_v42, 0.0 }
 0x173   :  { %v2498_v16 = vadd.f32 %v2497_v3, %v2238_v6  ;;  %v6438_v4 = vpop.f32.mrb[56].mxu0  ;;  %v3543_v47 = vadd.f32 %v3542_v41, %v3411_v32  ;;  %v3413_v52 = vmax.f32 %v3061_v40, 0.0  ;;  %v2472_v3 = vrot.slane %v7765_v25, 4 }
 0x174   :  { %v1386_v20 = vpop.f32.mrb[57].mxu0  ;;  %v1395_v31 = vadd.f32 %v6438_v4, %v7623_v15  ;;  %v3415_v6 = vmax.f32 %v3069_v48, 0.0 }
 0x175   :  { %v2499_v24 = vadd.f32 %v2498_v16, %v2239_v13  ;;  %v1387_v26 = vadd.f32 %v1386_v20, %v7623_v15  ;;  %v6439_v27 = vpop.f32.mrb[58].mxu0  ;;  %v3544_v60 = vadd.f32 %v3543_v47, %v3412_v43  ;;  %v6710_v53 = vpop.f32.mrb[56].mxu1 }
 0x176   :  { %v1389_v30 = vpop.f32.mrb[59].mxu0  ;;  %v1398_v34 = vadd.f32 %v6439_v27, %v7623_v15  ;;  %v2243_v50 = vmax.f32 %v1395_v31, 0.0  ;;  %v3073_v2 = vpop.f32.mrb[57].mxu1  ;;  %v3082_v22 = vadd.f32 %v6710_v53, %v7663_v7  ;;  %v7171_v27 = vld [vmem:[%s8895_s2 + $0xb8] sm:$0xff]  }
 0x177   :  { %v2241_v37 = vmax.f32 %v1387_v26, 0.0  ;;  %v2500_v38 = vadd.f32 %v2499_v24, %v2240_v19  ;;  %v1390_v39 = vadd.f32 %v1389_v30, %v7623_v15  ;;  %v3545_v8 = vadd.f32 %v3544_v60, %v3413_v52  ;;  %v6711_v62 = vpop.f32.mrb[58].mxu1  ;;  %6795 = vmatpush3.bf16.msra.mxu1 %v7171_v27 }
 0x178   :  { %6545 = vmatmul.mubr.bf16.gmra.mrb[164].mxu0 %v7134_v14  ;;  %v2244_v61 = vmax.f32 %v1398_v34, 0.0  ;;  %v3074_v11 = vadd.f32 %v3073_v2, %v7663_v7  ;;  %v3076_v20 = vpop.f32.mrb[59].mxu1  ;;  %v3085_v28 = vadd.f32 %v6711_v62, %v7663_v7  ;;  %v2473_v30 = vadd.f32 %v2472_v3, %v7765_v25  ;;  %6800 = vmatprep.subr.bf16.mxu1 %v7352_v49 }
 0x179   :  { %v2501_v45 = vadd.f32 %v2500_v38, %v2241_v37  ;;  %v2242_v46 = vmax.f32 %v1390_v39, 0.0  ;;  %6548 = vmatprep.mubr.bf16.mxu0 %v7136_v21  ;;  %v3546_v14 = vadd.f32 %v3545_v8, %v3414_v59  ;;  %v3077_v26 = vadd.f32 %v3076_v20, %v7663_v7  ;;  %v7139_v37 = vld [vmem:[%s8894_s1 + $0x2b8] sm:$0xff]  }
 0x17a   :  { %v3416_v0 = vmax.f32 %v3074_v11, 0.0  ;;  %v3418_v38 = vmax.f32 %v3082_v22, 0.0  ;;  %v3419_v40 = vmax.f32 %v3085_v28, 0.0 }
 0x17b   :  { %v2502_v51 = vadd.f32 %v2501_v45, %v2242_v46  ;;  %v6442_v44 = vpop.f32.mrb[60].mxu0  ;;  %v3547_v21 = vadd.f32 %v3546_v14, %v3415_v6  ;;  %v3417_v36 = vmax.f32 %v3077_v26, 0.0  ;;  %v7140_v45 = vld [vmem:[%s8894_s1 + $0x2c0] sm:$0xff]   ;;  %v7142_v26 = vld [vmem:[%s8894_s1 + $0x2d0] sm:$0xff]  }
 0x17c   :  { %v1402_v55 = vpop.f32.mrb[61].mxu0  ;;  %v1411_v13 = vadd.f32 %v6442_v44, %v7623_v15 }
 0x17d   :  { %v2503_v57 = vadd.f32 %v2502_v51, %v2243_v50  ;;  %v1403_v56 = vadd.f32 %v1402_v55, %v7623_v15  ;;  %v6443_v1 = vpop.f32.mrb[62].mxu0  ;;  %v3548_v39 = vadd.f32 %v3547_v21, %v3416_v0  ;;  %v6714_v29 = vpop.f32.mrb[60].mxu1  ;;  %v2474_v51 = vrot.slane %v2473_v30, 2 }
 0x17e   :  { %v1405_v5 = vpop.f32.mrb[63].mxu0  ;;  %v1414_v19 = vadd.f32 %v6443_v1, %v7623_v15  ;;  %v2247_v32 = vmax.f32 %v1411_v13, 0.0  ;;  %v3089_v34 = vpop.f32.mrb[61].mxu1  ;;  %v3098_v53 = vadd.f32 %v6714_v29, %v7663_v7  ;;  %v7178_v29 = vld [vmem:[%s8895_s2 + $0x280] sm:$0xff]  }
 0x17f   :  { %v2245_v16 = vmax.f32 %v1403_v56, 0.0  ;;  %v2504_v4 = vadd.f32 %v2503_v57, %v2244_v61  ;;  %v1406_v17 = vadd.f32 %v1405_v5, %v7623_v15  ;;  %v3549_v47 = vadd.f32 %v3548_v39, %v3417_v36  ;;  %v6715_v50 = vpop.f32.mrb[62].mxu1  ;;  %6941 = vmatpush3.bf16.msra.mxu0 %v7178_v29 }
 0x180   :  { %6549 = vmatmul.mubr.bf16.gmra.mrb[168].mxu0 %v7137_v58  ;;  %v2248_v41 = vmax.f32 %v1414_v19, 0.0  ;;  %v3090_v48 = vadd.f32 %v3089_v34, %v7663_v7  ;;  %v3092_v58 = vpop.f32.mrb[63].mxu1  ;;  %v3101_v3 = vadd.f32 %v6715_v50, %v7663_v7  ;;  %v2475_v13 = vadd.f32 %v2474_v51, %v2473_v30  ;;  %6942 = vmatprep.subr.bf16.mxu0 %v7352_v49 }
 0x181   :  { %v2505_v23 = vadd.f32 %v2504_v4, %v2245_v16  ;;  %v2246_v24 = vmax.f32 %v1406_v17, 0.0  ;;  %6552 = vmatprep.mubr.bf16.mxu0 %v7138_v54  ;;  %v3550_v60 = vadd.f32 %v3549_v47, %v3418_v38  ;;  %v3093_v54 = vadd.f32 %v3092_v58, %v7663_v7  ;;  %v7141_v4 = vld [vmem:[%s8894_s1 + $0x2c8] sm:$0xff]  }
 0x182   :  { %v3420_v61 = vmax.f32 %v3090_v48, 0.0  ;;  %v3422_v17 = vmax.f32 %v3098_v53, 0.0  ;;  %v3423_v30 = vmax.f32 %v3101_v3, 0.0  ;;  %v7179_v58 = vld [vmem:[%s8895_s2 + $0x288] sm:$0xff]   ;;  %v7143_v53 = vld [vmem:[%s8894_s1 + $0x2d8] sm:$0xff]  }
 0x183   :  { %v2506_v33 = vadd.f32 %v2505_v23, %v2246_v24  ;;  %v6446_v35 = vpop.f32.mrb[64].mxu0  ;;  %v3551_v2 = vadd.f32 %v3550_v60, %v3419_v40  ;;  %v3421_v62 = vmax.f32 %v3093_v54, 0.0  ;;  %6943 = vmatpush3.bf16.msra.mxu0 %v7179_v58 }
 0x184   :  { %v1418_v31 = vpop.f32.mrb[65].mxu0  ;;  %v1427_v52 = vadd.f32 %v6446_v35, %v7623_v15  ;;  %6944 = vmatprep.subr.bf16.mxu0 %v7352_v49 }
 0x185   :  { %v2507_v42 = vadd.f32 %v2506_v33, %v2247_v32  ;;  %v1419_v43 = vadd.f32 %v1418_v31, %v7623_v15  ;;  %v6447_v25 = vpop.f32.mrb[66].mxu0  ;;  %v3552_v20 = vadd.f32 %v3551_v2, %v3420_v61  ;;  %v6718_v14 = vpop.f32.mrb[64].mxu1 }
 0x186   :  { %v1421_v46 = vpop.f32.mrb[67].mxu0  ;;  %v1430_v59 = vadd.f32 %v6447_v25, %v7623_v15  ;;  %v2251_v6 = vmax.f32 %v1427_v52, 0.0  ;;  %v3105_v27 = vpop.f32.mrb[65].mxu1 }
 0x187   :  { %v2508_v44 = vadd.f32 %v2507_v42, %v2248_v41  ;;  %v1422_v55 = vadd.f32 %v1421_v46, %v7623_v15  ;;  %v2249_v56 = vmax.f32 %v1419_v43, 0.0  ;;  %v3553_v32 = vadd.f32 %v3552_v20, %v3421_v62  ;;  %v6719_v35 = vpop.f32.mrb[66].mxu1 }
 0x188   :  { %6553 = vmatmul.mubr.bf16.gmra.mrb[172].mxu0 %v7139_v37  ;;  %v2252_v0 = vmax.f32 %v1430_v59, 0.0  ;;  %v3106_v33 = vadd.f32 %v3105_v27, %v7663_v7  ;;  %v3108_v39 = vpop.f32.mrb[67].mxu1  ;;  %v2476_v41 = vrot.slane %v2475_v13, 1  ;;  %v3114_v43 = vadd.f32 %v6718_v14, %v7663_v7 }
 0x189   :  { %v2509_v57 = vrot.slane %v2508_v44, 4  ;;  %v2250_v1 = vmax.f32 %v1422_v55, 0.0  ;;  %6556 = vmatprep.mubr.bf16.mxu0 %v7140_v45  ;;  %v3554_v42 = vadd.f32 %v3553_v32, %v3422_v17  ;;  %v3117_v48 = vadd.f32 %v6719_v35, %v7663_v7 }
 0x18a   :  { %v3424_v47 = vmax.f32 %v3106_v33, 0.0  ;;  %v3109_v50 = vadd.f32 %v3108_v39, %v7663_v7  ;;  %v2477_v59 = vadd.f32 %v2476_v41, %v2475_v13  ;;  %v3426_v61 = vmax.f32 %v3114_v43, 0.0  ;;  %v7146_v41 = vld [vmem:[%s8894_s1 + $0x2e8] sm:$0xff]  }
 0x18b   :  { %v2510_v5 = vadd.f32 %v2509_v57, %v2508_v44  ;;  %v2515_v8 = vadd.f32 %v2250_v1, %v2249_v56  ;;  %v6450_v11 = vpop.f32.mrb[68].mxu0  ;;  %v7915_v40 = vadd.f32 %v3554_v42, %v3423_v30  ;;  %v3427_v62 = vmax.f32 %v3117_v48, 0.0 }
 0x18c   :  { %v1434_v16 = vpop.f32.mrb[69].mxu0  ;;  %v1443_v21 = vadd.f32 %v6450_v11, %v7623_v15  ;;  %v3425_v57 = vmax.f32 %v3109_v50, 0.0  ;;  %v7147_v50 = vld [vmem:[%s8894_s1 + $0x2f0] sm:$0xff]  }
 0x18d   :  { %v2511_v22 = vrot.slane %v2510_v5, 2  ;;  %v2516_v23 = vadd.f32 %v2515_v8, %v2251_v6  ;;  %v1435_v19 = vadd.f32 %v1434_v16, %v7623_v15  ;;  %v6451_v24 = vpop.f32.mrb[70].mxu0  ;;  %v6722_v56 = vpop.f32.mrb[68].mxu1 }
 0x18e   :  { %v1437_v28 = vpop.f32.mrb[71].mxu0  ;;  %v1446_v34 = vadd.f32 %v6451_v24, %v7623_v15  ;;  %v2255_v44 = vmax.f32 %v1443_v21, 0.0  ;;  %v3121_v6 = vpop.f32.mrb[69].mxu1  ;;  %v3562_v13 = vadd.f32 %v3425_v57, %v3424_v47  ;;  %v3130_v24 = vadd.f32 %v6722_v56, %v7663_v7 }
 0x18f   :  { %v2512_v36 = vadd.f32 %v2511_v22, %v2510_v5  ;;  %v2253_v31 = vmax.f32 %v1435_v19, 0.0  ;;  %v2517_v37 = vadd.f32 %v2516_v23, %v2252_v0  ;;  %v1438_v38 = vadd.f32 %v1437_v28, %v7623_v15  ;;  %v7145_v5 = vld [vmem:[%s8894_s1 + $0x2e0] sm:$0xff]   ;;  %v6723_v16 = vpop.f32.mrb[70].mxu1  ;;  %v7182_v0 = vld [vmem:[%s8895_s2 + $0x290] sm:$0xff]  }
 0x190   :  { %6557 = vmatmul.mubr.bf16.gmra.mrb[176].mxu0 %v7141_v4  ;;  %v2256_v1 = vmax.f32 %v1446_v34, 0.0  ;;  %v3124_v22 = vpop.f32.mrb[71].mxu1  ;;  %v2738_v23 = vmul.f32 0.00390625, %v2477_v59  ;;  %v3563_v19 = vadd.f32 %v3562_v13, %v3426_v61  ;;  %v3133_v35 = vadd.f32 %v6723_v16, %v7663_v7 }
 0x191   :  { %v2513_v25 = vrot.slane %v2512_v36, 1  ;;  %v2518_v45 = vadd.f32 %v2517_v37, %v2253_v31  ;;  %v2254_v46 = vmax.f32 %v1438_v38, 0.0  ;;  %6560 = vmatprep.mubr.bf16.mxu0 %v7142_v26  ;;  %v3122_v26 = vadd.f32 %v3121_v6, %v7663_v7  ;;  %6945 = vmatpush3.bf16.msra.mxu0 %v7182_v0  ;;  %v7183_v6 = vld [vmem:[%s8895_s2 + $0x298] sm:$0xff]  }
 0x192   :  { %v3125_v30 = vadd.f32 %v3124_v22, %v7663_v7  ;;  %v3564_v33 = vadd.f32 %v3563_v19, %v3427_v62  ;;  %6946 = vmatprep.subr.bf16.mxu0 %v7352_v49  ;;  %v3430_v42 = vmax.f32 %v3130_v24, 0.0  ;;  %v3431_v58 = vmax.f32 %v3133_v35, 0.0  ;;  %v7186_v22 = vld [vmem:[%s8895_s2 + $0x2a0] sm:$0xff]  }
 0x193   :  { %v2514_v51 = vadd.f32 %v2513_v25, %v2512_v36  ;;  %v2519_v52 = vadd.f32 %v2518_v45, %v2254_v46  ;;  %v6454_v55 = vpop.f32.mrb[72].mxu0  ;;  %v3428_v32 = vmax.f32 %v3122_v26, 0.0 }
 0x194   :  { %v1450_v60 = vpop.f32.mrb[73].mxu0  ;;  %v1459_v4 = vadd.f32 %v6454_v55, %v7623_v15  ;;  %v3429_v39 = vmax.f32 %v3125_v30, 0.0  ;;  %v3519_v55 = vrot.slane %v7803_v18, 4 }
 0x195   :  { %v2520_v54 = vadd.f32 %v2519_v52, %v2255_v44  ;;  %v1451_v2 = vadd.f32 %v1450_v60, %v7623_v15  ;;  %v6455_v3 = vpop.f32.mrb[74].mxu0  ;;  %v7930_v8 = vmul.f32 0.00390625, %v2514_v51  ;;  %v3565_v43 = vadd.f32 %v3564_v33, %v3428_v32  ;;  %v6726_v25 = vpop.f32.mrb[72].mxu1  ;;  %6947 = vmatpush3.bf16.msra.mxu0 %v7183_v6  ;;  %v7150_v6 = vld [vmem:[%s8894_s1 + $0x308] sm:$0xff]  }
 0x196   :  { %v1453_v11 = vpop.f32.mrb[75].mxu0  ;;  %v1462_v21 = vadd.f32 %v6455_v3, %v7623_v15  ;;  %v2259_v31 = vmax.f32 %v1459_v4, 0.0  ;;  %v3137_v51 = vpop.f32.mrb[73].mxu1  ;;  %v3146_v3 = vadd.f32 %v6726_v25, %v7663_v7  ;;  %6948 = vmatprep.subr.bf16.mxu0 %v7352_v49 }
 0x197   :  { %v2257_v17 = vmax.f32 %v1451_v2, 0.0  ;;  %v2521_v20 = vadd.f32 %v2520_v54, %v2256_v1  ;;  %v1454_v14 = vadd.f32 %v1453_v11, %v7623_v15  ;;  %v3643_v36 = vsel %vm3642_vm0, %v7930_v8, %v2738_v23  ;;  %v6727_v60 = vpop.f32.mrb[74].mxu1 }
 0x198   :  { %6561 = vmatmul.mubr.bf16.gmra.mrb[180].mxu0 %v7143_v53  ;;  %v3646_v45 = vsel %vm3645_vm1, %v7930_v8, %v2738_v23  ;;  %v2260_v34 = vmax.f32 %v1462_v21, 0.0  ;;  %v3649_v44 = vsel %vm3648_vm2, %v7930_v8, %v2738_v23  ;;  %v3566_v59 = vadd.f32 %v3565_v43, %v3429_v39  ;;  %v3140_v1 = vpop.f32.mrb[75].mxu1 }
 0x199   :  { %v2522_v27 = vadd.f32 %v2521_v20, %v2257_v17  ;;  %v2258_v28 = vmax.f32 %v1454_v14, 0.0  ;;  %6564 = vmatprep.mubr.bf16.mxu0 %v7145_v5  ;;  %v3138_v5 = vadd.f32 %v3137_v51, %v7663_v7  ;;  %v3149_v13 = vadd.f32 %v6727_v60, %v7663_v7  ;;  %6949 = vmatpush3.bf16.msra.mxu0 %v7186_v22  ;;  %v7151_v22 = vld [vmem:[%s8894_s1 + $0x310] sm:$0xff]  }
 0x19a   :  { %v3567_v2 = vadd.f32 %v3566_v59, %v3430_v42  ;;  %v3141_v16 = vadd.f32 %v3140_v1, %v7663_v7  ;;  %v3652_v20 = vsel %vm3651_vm3, %v7930_v8, %v2738_v23  ;;  %v3655_v14 = vsel %vm3654_vm4, %v3643_v36, %v3646_v45  ;;  %v7148_v8 = vld [vmem:[%s8894_s1 + $0x2f8] sm:$0xff]   ;;  %6950 = vmatprep.subr.bf16.mxu0 %v7352_v49 }
 0x19b   :  { %v2523_v37 = vadd.f32 %v2522_v27, %v2258_v28  ;;  %v6458_v38 = vpop.f32.mrb[76].mxu0  ;;  %v3432_v4 = vmax.f32 %v3138_v5, 0.0  ;;  %v3657_v27 = vsel %vm3656_vm6, %v3655_v14, %v3649_v44  ;;  %v3556_v23 = vrot.slane %v7915_v40, 4 }
 0x19c   :  { %v1466_v29 = vpop.f32.mrb[77].mxu0  ;;  %v1475_v53 = vadd.f32 %v6458_v38, %v7623_v15  ;;  %v3568_v17 = vadd.f32 %v3567_v2, %v3431_v58  ;;  %v3433_v26 = vmax.f32 %v3141_v16, 0.0  ;;  %v3434_v28 = vmax.f32 %v3146_v3, 0.0  ;;  %v7149_v38 = vld [vmem:[%s8894_s1 + $0x300] sm:$0xff]  }
 0x19d   :  { %v2524_v46 = vadd.f32 %v2523_v37, %v2259_v31  ;;  %v1467_v47 = vadd.f32 %v1466_v29, %v7623_v15  ;;  %v6459_v48 = vpop.f32.mrb[78].mxu0  ;;  %v6730_v32 = vpop.f32.mrb[76].mxu1  ;;  %v7983_v33 = vsel %vm3658_vm7, %v3657_v27, %v3652_v20  ;;  %v3520_v29 = vadd.f32 %v3519_v55, %v7803_v18 }
 0x19e   :  { %v1469_v52 = vpop.f32.mrb[79].mxu0  ;;  %v1478_v54 = vadd.f32 %v6459_v48, %v7623_v15  ;;  %v2263_v0 = vmax.f32 %v1475_v53, 0.0  ;;  %v3569_v30 = vadd.f32 %v3568_v17, %v3432_v4  ;;  %v3153_v39 = vpop.f32.mrb[77].mxu1  ;;  %v3435_v42 = vmax.f32 %v3149_v13, 0.0 }
 0x19f   :  { %v2261_v61 = vmax.f32 %v1467_v47, 0.0  ;;  %v2525_v57 = vadd.f32 %v2524_v46, %v2260_v34  ;;  %v1470_v56 = vadd.f32 %v1469_v52, %v7623_v15  ;;  %v3154_v25 = vadd.f32 %v3153_v39, %v7663_v7  ;;  %v6731_v45 = vpop.f32.mrb[78].mxu1  ;;  %v7187_v34 = vld [vmem:[%s8895_s2 + $0x2a8] sm:$0xff]  }
 0x1a0   :  { %6565 = vmatmul.mubr.bf16.gmra.mrb[184].mxu0 %v7146_v41  ;;  %v2264_v35 = vmax.f32 %v1478_v54, 0.0  ;;  %v3570_v43 = vadd.f32 %v3569_v30, %v3433_v26  ;;  %v3156_v51 = vpop.f32.mrb[79].mxu1  ;;  %v3557_v18 = vadd.f32 %v3556_v23, %v7915_v40  ;;  %v3162_v52 = vadd.f32 %v6730_v32, %v7663_v7  ;;  %v7190_v40 = vld [vmem:[%s8895_s2 + $0x2b0] sm:$0xff]   ;;  %v7191_v23 = vld [vmem:[%s8895_s2 + $0x2b8] sm:$0xff]  }
 0x1a1   :  { %v2526_v11 = vadd.f32 %v2525_v57, %v2261_v61  ;;  %v2262_v62 = vmax.f32 %v1470_v56, 0.0  ;;  %6568 = vmatprep.mubr.bf16.mxu0 %v7147_v50  ;;  %v3436_v55 = vmax.f32 %v3154_v25, 0.0  ;;  %v3157_v53 = vadd.f32 %v3156_v51, %v7663_v7  ;;  %6951 = vmatpush3.bf16.msra.mxu0 %v7187_v34 }
 0x1a2   :  { %v3571_v44 = vadd.f32 %v3570_v43, %v3434_v28  ;;  %v3521_v61 = vrot.slane %v3520_v29, 2  ;;  %v3165_v56 = vadd.f32 %v6731_v45, %v7663_v7  ;;  %6952 = vmatprep.subr.bf16.mxu0 %v7352_v49 }
 0x1a3   :  { %v2527_v19 = vadd.f32 %v2526_v11, %v2262_v62  ;;  %v6462_v24 = vpop.f32.mrb[80].mxu0  ;;  %v3437_v3 = vmax.f32 %v3157_v53, 0.0  ;;  %v3558_v11 = vrot.slane %v3557_v18, 2  ;;  %v3438_v62 = vmax.f32 %v3162_v52, 0.0 }
 0x1a4   :  { %v1482_v21 = vpop.f32.mrb[81].mxu0  ;;  %v1491_v46 = vadd.f32 %v6462_v24, %v7623_v15  ;;  %v3572_v57 = vadd.f32 %v3571_v44, %v3435_v42  ;;  %v3439_v26 = vmax.f32 %v3165_v56, 0.0 }
 0x1a5   :  { %v2528_v36 = vadd.f32 %v2527_v19, %v2263_v0  ;;  %v1483_v31 = vadd.f32 %v1482_v21, %v7623_v15  ;;  %v6463_v37 = vpop.f32.mrb[82].mxu0  ;;  %v6734_v16 = vpop.f32.mrb[80].mxu1  ;;  %v3522_v19 = vadd.f32 %v3521_v61, %v3520_v29  ;;  %6953 = vmatpush3.bf16.msra.mxu0 %v7190_v40 }
 0x1a6   :  { %v1485_v41 = vpop.f32.mrb[83].mxu0  ;;  %v1494_v59 = vadd.f32 %v6463_v37, %v7623_v15  ;;  %v2267_v1 = vmax.f32 %v1491_v46, 0.0  ;;  %v3573_v13 = vadd.f32 %v3572_v57, %v3436_v55  ;;  %v3169_v0 = vpop.f32.mrb[81].mxu1  ;;  %6954 = vmatprep.subr.bf16.mxu0 %v7352_v49  ;;  %v7154_v57 = vld [vmem:[%s8894_s1 + $0x320] sm:$0xff]  }
 0x1a7   :  { %v2265_v47 = vmax.f32 %v1483_v31, 0.0  ;;  %v2529_v48 = vadd.f32 %v2528_v36, %v2264_v35  ;;  %v1486_v50 = vadd.f32 %v1485_v41, %v7623_v15  ;;  %v3170_v21 = vadd.f32 %v3169_v0, %v7663_v7 }
 0x1a8   :  { %6569 = vmatmul.mubr.bf16.gmra.mrb[188].mxu0 %v7148_v8  ;;  %v2268_v4 = vmax.f32 %v1494_v59, 0.0  ;;  %v3574_v27 = vadd.f32 %v3573_v13, %v3437_v3  ;;  %v6735_v8 = vpop.f32.mrb[82].mxu1  ;;  %v3559_v31 = vadd.f32 %v3558_v11, %v3557_v18  ;;  %v3523_v25 = vrot.slane %v3522_v19, 1  ;;  %v7152_v18 = vld [vmem:[%s8894_s1 + $0x318] sm:$0xff]  }
 0x1a9   :  { %v2530_v58 = vadd.f32 %v2529_v48, %v2265_v47  ;;  %v2266_v60 = vmax.f32 %v1486_v50, 0.0  ;;  %6572 = vmatprep.mubr.bf16.mxu0 %v7149_v38  ;;  %v3172_v36 = vpop.f32.mrb[83].mxu1  ;;  %v3178_v38 = vadd.f32 %v6734_v16, %v7663_v7  ;;  %v3440_v39 = vmax.f32 %v3170_v21, 0.0  ;;  %6955 = vmatpush3.bf16.msra.mxu0 %v7191_v23 }
 0x1aa   :  { %v3575_v37 = vadd.f32 %v3574_v27, %v3438_v62  ;;  %v3173_v43 = vadd.f32 %v3172_v36, %v7663_v7  ;;  %v3181_v34 = vadd.f32 %v6735_v8, %v7663_v7  ;;  %v3560_v44 = vrot.slane %v3559_v31, 1  ;;  %v7155_v36 = vld [vmem:[%s8894_s1 + $0x328] sm:$0xff]  }
 0x1ab   :  { %v2531_v54 = vadd.f32 %v2530_v58, %v2266_v60  ;;  %v6466_v2 = vpop.f32.mrb[84].mxu0  ;;  %v3442_v52 = vmax.f32 %v3178_v38, 0.0  ;;  %v3524_v40 = vadd.f32 %v3523_v25, %v3522_v19  ;;  %v7156_v25 = vld [vmem:[%s8894_s1 + $0x330] sm:$0xff]  }
 0x1ac   :  { %v1498_v5 = vpop.f32.mrb[85].mxu0  ;;  %v1507_v28 = vadd.f32 %v6466_v2, %v7623_v15  ;;  %v3576_v45 = vadd.f32 %v3575_v37, %v3439_v26  ;;  %v3441_v50 = vmax.f32 %v3173_v43, 0.0 }
 0x1ad   :  { %v2532_v17 = vadd.f32 %v2531_v54, %v2267_v1  ;;  %v1499_v20 = vadd.f32 %v1498_v5, %v7623_v15  ;;  %v6467_v14 = vpop.f32.mrb[86].mxu0  ;;  %v6738_v58 = vpop.f32.mrb[84].mxu1  ;;  %v3443_v54 = vmax.f32 %v3181_v34, 0.0 }
 0x1ae   :  { %v1501_v24 = vpop.f32.mrb[87].mxu0  ;;  %v1510_v41 = vadd.f32 %v6467_v14, %v7623_v15  ;;  %v2271_v46 = vmax.f32 %v1507_v28, 0.0  ;;  %v3577_v55 = vadd.f32 %v3576_v45, %v3440_v39  ;;  %v3185_v56 = vpop.f32.mrb[85].mxu1 }
 0x1af   :  { %v2269_v30 = vmax.f32 %v1499_v20, 0.0  ;;  %v2533_v32 = vadd.f32 %v2532_v17, %v2268_v4  ;;  %v1502_v35 = vadd.f32 %v1501_v24, %v7623_v15  ;;  %v3186_v3 = vadd.f32 %v3185_v56, %v7663_v7  ;;  %v6739_v5 = vpop.f32.mrb[86].mxu1 }
 0x1b0   :  { %6573 = vmatmul.mubr.bf16.gmra.mrb[192].mxu0 %v7150_v6  ;;  %v2272_v59 = vmax.f32 %v1510_v41, 0.0  ;;  %v3578_v2 = vadd.f32 %v3577_v55, %v3441_v50  ;;  %v3188_v16 = vpop.f32.mrb[87].mxu1  ;;  %v3561_v4 = vadd.f32 %v3560_v44, %v3559_v31  ;;  %v3194_v20 = vadd.f32 %v6738_v58, %v7663_v7 }
 0x1b1   :  { %v2534_v29 = vadd.f32 %v2533_v32, %v2269_v30  ;;  %v2270_v42 = vmax.f32 %v1502_v35, 0.0  ;;  %6576 = vmatprep.mubr.bf16.mxu0 %v7151_v22  ;;  %v3444_v14 = vmax.f32 %v3186_v3, 0.0  ;;  %v3189_v24 = vadd.f32 %v3188_v16, %v7663_v7 }
 0x1b2   :  { %v3579_v17 = vadd.f32 %v3578_v2, %v3442_v52  ;;  %v3197_v27 = vadd.f32 %v6739_v5, %v7663_v7  ;;  %v3636_v30 = vmul.f32 0.00390625, %v3524_v40  ;;  %v3446_v31 = vmax.f32 %v3194_v20, 0.0 }
 0x1b3   :  { %v2535_v47 = vadd.f32 %v2534_v29, %v2270_v42  ;;  %v6470_v48 = vpop.f32.mrb[88].mxu0  ;;  %v3445_v28 = vmax.f32 %v3189_v24, 0.0  ;;  %v3637_v43 = vmul.f32 0.00390625, %v3561_v4  ;;  %v7157_v4 = vld [vmem:[%s8894_s1 + $0x338] sm:$0xff]  }
 0x1b4   :  { %v1514_v51 = vpop.f32.mrb[89].mxu0  ;;  %v1523_v6 = vadd.f32 %v6470_v48, %v7623_v15  ;;  %v3580_v26 = vadd.f32 %v3579_v17, %v3443_v54 }
 0x1b5   :  { %v2536_v60 = vadd.f32 %v2535_v47, %v2271_v46  ;;  %v1515_v53 = vadd.f32 %v1514_v51, %v7623_v15  ;;  %v6471_v61 = vpop.f32.mrb[90].mxu0  ;;  %v6742_v38 = vpop.f32.mrb[88].mxu1  ;;  %v3447_v46 = vmax.f32 %v3197_v27, 0.0  ;;  %v3701_v40 = vsel %vm3642_vm0, %v3637_v43, %v3636_v30  ;;  %v7158_v27 = vld [vmem:[%s8894_s1 + $0x340] sm:$0xff]  }
 0x1b6   :  { %v1517_v1 = vpop.f32.mrb[91].mxu0  ;;  %v1526_v0 = vadd.f32 %v6471_v61, %v7623_v15  ;;  %v2275_v21 = vmax.f32 %v1523_v6, 0.0  ;;  %v3581_v37 = vadd.f32 %v3580_v26, %v3444_v14  ;;  %v3201_v45 = vpop.f32.mrb[89].mxu1  ;;  %v3210_v52 = vadd.f32 %v6742_v38, %v7663_v7 }
 0x1b7   :  { %v2273_v11 = vmax.f32 %v1515_v53, 0.0  ;;  %v2537_v62 = vadd.f32 %v2536_v60, %v2272_v59  ;;  %v1518_v13 = vadd.f32 %v1517_v1, %v7623_v15  ;;  %v3202_v48 = vadd.f32 %v3201_v45, %v7663_v7  ;;  %v6743_v50 = vpop.f32.mrb[90].mxu1 }
 0x1b8   :  { %6577 = vmatmul.mubr.bf16.gmra.mrb[196].mxu0 %v7152_v18  ;;  %v2276_v39 = vmax.f32 %v1526_v0, 0.0  ;;  %v3582_v47 = vadd.f32 %v3581_v37, %v3445_v28  ;;  %v3204_v55 = vpop.f32.mrb[91].mxu1  ;;  %v3213_v54 = vadd.f32 %v6743_v50, %v7663_v7  ;;  %v3703_v2 = vsel %vm3645_vm1, %v3637_v43, %v3636_v30 }
 0x1b9   :  { %v2538_v22 = vadd.f32 %v2537_v62, %v2273_v11  ;;  %v2274_v19 = vmax.f32 %v1518_v13, 0.0  ;;  %6580 = vmatprep.mubr.bf16.mxu0 %v7154_v57  ;;  %v3448_v53 = vmax.f32 %v3202_v48, 0.0  ;;  %v3205_v56 = vadd.f32 %v3204_v55, %v7663_v7 }
 0x1ba   :  { %v3583_v60 = vadd.f32 %v3582_v47, %v3446_v31  ;;  %v3705_v3 = vsel %vm3648_vm2, %v3637_v43, %v3636_v30  ;;  %v3707_v62 = vsel %vm3651_vm3, %v3637_v43, %v3636_v30  ;;  %v3709_v13 = vsel %vm3654_vm4, %v3701_v40, %v3703_v2 }
 0x1bb   :  { %v2539_v8 = vadd.f32 %v2538_v22, %v2274_v19  ;;  %v6474_v23 = vpop.f32.mrb[92].mxu0  ;;  %v3449_v11 = vmax.f32 %v3205_v56, 0.0  ;;  %v3450_v17 = vmax.f32 %v3210_v52, 0.0  ;;  %v3710_v22 = vsel %vm3656_vm6, %v3709_v13, %v3705_v3 }
 0x1bc   :  { %v1539_v32 = vadd.f32 %v6474_v23, %v7623_v15  ;;  %v1530_v35 = vpop.f32.mrb[93].mxu0  ;;  %v3584_v1 = vadd.f32 %v3583_v60, %v3447_v46  ;;  %v3451_v28 = vmax.f32 %v3213_v54, 0.0 }
 0x1bd   :  { %v2540_v29 = vadd.f32 %v2539_v8, %v2275_v21  ;;  %v1531_v41 = vadd.f32 %v1530_v35, %v7623_v15  ;;  %v6475_v42 = vpop.f32.mrb[94].mxu0  ;;  %v6746_v14 = vpop.f32.mrb[92].mxu1  ;;  %v8066_v8 = vsel %vm3658_vm7, %v3710_v22, %v3707_v62 }
 0x1be   :  { %v1533_v34 = vpop.f32.mrb[95].mxu0  ;;  %v2279_v58 = vmax.f32 %v1539_v32, 0.0  ;;  %v1542_v59 = vadd.f32 %v6475_v42, %v7623_v15  ;;  %v3585_v20 = vadd.f32 %v3584_v1, %v3448_v53  ;;  %v3217_v21 = vpop.f32.mrb[93].mxu1 }
 0x1bf   :  { %v2277_v51 = vmax.f32 %v1531_v41, 0.0  ;;  %v2541_v18 = vadd.f32 %v2540_v29, %v2276_v39  ;;  %v1534_v44 = vadd.f32 %v1533_v34, %v7623_v15  ;;  %v3218_v32 = vadd.f32 %v3217_v21, %v7663_v7  ;;  %v6747_v35 = vpop.f32.mrb[94].mxu1 }
 0x1c0   :  { %6581 = vmatmul.mubr.bf16.gmra.mrb[200].mxu0 %v7155_v36  ;;  %v2280_v0 = vmax.f32 %v1542_v59, 0.0  ;;  %v3586_v30 = vadd.f32 %v3585_v20, %v3449_v11  ;;  %v3220_v38 = vpop.f32.mrb[95].mxu1  ;;  %v3226_v29 = vadd.f32 %v6746_v14, %v7663_v7  ;;  %v3229_v46 = vadd.f32 %v6747_v35, %v7663_v7 }
 0x1c1   :  { %v2542_v61 = vadd.f32 %v2541_v18, %v2277_v51  ;;  %v2278_v57 = vmax.f32 %v1534_v44, 0.0  ;;  %6584 = vmatprep.mubr.bf16.mxu0 %v7156_v25  ;;  %v3452_v41 = vmax.f32 %v3218_v32, 0.0  ;;  %v3221_v45 = vadd.f32 %v3220_v38, %v7663_v7  ;;  %v7159_v44 = vld [vmem:[%s8894_s1 + $0x348] sm:$0xff]  }
 0x1c2   :  { %v3587_v39 = vadd.f32 %v3586_v30, %v3450_v17  ;;  %v3454_v52 = vmax.f32 %v3226_v29, 0.0  ;;  %v3455_v1 = vmax.f32 %v3229_v46, 0.0  ;;  %v7163_v29 = vld [vmem:[%s8894_s1 + $0x360] sm:$0xff]  }
 0x1c3   :  { %v2543_v5 = vadd.f32 %v2542_v61, %v2278_v57  ;;  %v6478_v6 = vpop.f32.mrb[96].mxu0  ;;  %v3453_v51 = vmax.f32 %v3221_v45, 0.0  ;;  %v7160_v57 = vld [vmem:[%s8894_s1 + $0x350] sm:$0xff]  }
 0x1c4   :  { %v1546_v16 = vpop.f32.mrb[97].mxu0  ;;  %v1555_v31 = vadd.f32 %v6478_v6, %v7623_v15  ;;  %v3588_v34 = vadd.f32 %v3587_v39, %v3451_v28  ;;  %v7161_v28 = vld [vmem:[%s8894_s1 + $0x358] sm:$0xff]  }
 0x1c5   :  { %v2544_v19 = vadd.f32 %v2543_v5, %v2279_v58  ;;  %v1547_v24 = vadd.f32 %v1546_v16, %v7623_v15  ;;  %v6479_v26 = vpop.f32.mrb[98].mxu0  ;;  %v6750_v58 = vpop.f32.mrb[96].mxu1 }
 0x1c6   :  { %v1549_v23 = vpop.f32.mrb[99].mxu0  ;;  %v1558_v43 = vadd.f32 %v6479_v26, %v7623_v15  ;;  %v2283_v47 = vmax.f32 %v1555_v31, 0.0  ;;  %v3589_v55 = vadd.f32 %v3588_v34, %v3452_v41  ;;  %v3233_v56 = vpop.f32.mrb[97].mxu1 }
 0x1c7   :  { %v8069_v36 = vadd.f32 %v2544_v19, %v2280_v0  ;;  %v1550_v37 = vadd.f32 %v1549_v23, %v7623_v15  ;;  %v2281_v42 = vmax.f32 %v1547_v24, 0.0  ;;  %v3234_v2 = vadd.f32 %v3233_v56, %v7663_v7  ;;  %v6751_v3 = vpop.f32.mrb[98].mxu1 }
 0x1c8   :  { %6585 = vmatmul.mubr.bf16.gmra.mrb[204].mxu0 %v7157_v4  ;;  %v2284_v59 = vmax.f32 %v1558_v43, 0.0  ;;  %v3590_v54 = vadd.f32 %v3589_v55, %v3453_v51  ;;  %v3236_v13 = vpop.f32.mrb[99].mxu1  ;;  %v3242_v4 = vadd.f32 %v6750_v58, %v7663_v7  ;;  %v3245_v19 = vadd.f32 %v6751_v3, %v7663_v7 }
 0x1c9   :  { %v2282_v25 = vmax.f32 %v1550_v37, 0.0  ;;  %6588 = vmatprep.mubr.bf16.mxu0 %v7158_v27  ;;  %v3456_v0 = vmax.f32 %v3234_v2, 0.0  ;;  %v3237_v24 = vadd.f32 %v3236_v13, %v7663_v7  ;;  %v7164_v2 = vld [vmem:[%s8894_s1 + $0x368] sm:$0xff]  }
 0x1ca   :  { %v3591_v16 = vadd.f32 %v3590_v54, %v3454_v52  ;;  %v3458_v30 = vmax.f32 %v3242_v4, 0.0  ;;  %v3459_v43 = vmax.f32 %v3245_v19, 0.0  ;;  %v7165_v4 = vld [vmem:[%s8894_s1 + $0x370] sm:$0xff]  }
 0x1cb   :  { %v2552_v48 = vadd.f32 %v2282_v25, %v2281_v42  ;;  %v6482_v50 = vpop.f32.mrb[100].mxu0  ;;  %v3457_v32 = vmax.f32 %v3237_v24, 0.0 }
 0x1cc   :  { %v1562_v18 = vpop.f32.mrb[101].mxu0  ;;  %v1571_v5 = vadd.f32 %v6482_v50, %v7623_v15  ;;  %v8089_v22 = vadd.f32 %v3591_v16, %v3455_v1 }
 0x1cd   :  { %v2553_v60 = vadd.f32 %v2552_v48, %v2283_v47  ;;  %v1563_v53 = vadd.f32 %v1562_v18, %v7623_v15  ;;  %v6483_v61 = vpop.f32.mrb[102].mxu0  ;;  %v6754_v35 = vpop.f32.mrb[100].mxu1  ;;  %v3599_v25 = vadd.f32 %v3457_v32, %v3456_v0 }
 0x1ce   :  { %v1565_v40 = vpop.f32.mrb[103].mxu0  ;;  %v1574_v20 = vadd.f32 %v6483_v61, %v7623_v15  ;;  %v2287_v26 = vmax.f32 %v1571_v5, 0.0  ;;  %v3249_v41 = vpop.f32.mrb[101].mxu1  ;;  %v3258_v18 = vadd.f32 %v6754_v35, %v7663_v7 }
 0x1cf   :  { %v2285_v6 = vmax.f32 %v1563_v53, 0.0  ;;  %v2554_v11 = vadd.f32 %v2553_v60, %v2284_v59  ;;  %v1566_v62 = vadd.f32 %v1565_v40, %v7623_v15  ;;  %v6755_v45 = vpop.f32.mrb[102].mxu1  ;;  %v3600_v51 = vadd.f32 %v3599_v25, %v3458_v30 }
 0x1d0   :  { %6589 = vmatmul.mubr.bf16.gmra.mrb[208].mxu0 %v7159_v44  ;;  %v2288_v31 = vmax.f32 %v1574_v20, 0.0  ;;  %v3252_v50 = vpop.f32.mrb[103].mxu1  ;;  %v3250_v44 = vadd.f32 %v3249_v41, %v7663_v7  ;;  %v3261_v61 = vadd.f32 %v6755_v45, %v7663_v7  ;;  %v3462_v3 = vmax.f32 %v3258_v18, 0.0 }
 0x1d1   :  { %v2555_v17 = vadd.f32 %v2554_v11, %v2285_v6  ;;  %v2286_v14 = vmax.f32 %v1566_v62, 0.0  ;;  %6592 = vmatprep.mubr.bf16.mxu0 %v7160_v57  ;;  %v3253_v59 = vadd.f32 %v3252_v50, %v7663_v7  ;;  %v3601_v53 = vadd.f32 %v3600_v51, %v3459_v43 }
 0x1d2   :  { %v3460_v60 = vmax.f32 %v3250_v44, 0.0 }
 0x1d3   :  { %v2556_v27 = vadd.f32 %v2555_v17, %v2286_v14  ;;  %v6486_v21 = vpop.f32.mrb[104].mxu0  ;;  %v3461_v1 = vmax.f32 %v3253_v59, 0.0  ;;  %v3463_v14 = vmax.f32 %v3261_v61, 0.0 }
 0x1d4   :  { %v1578_v23 = vpop.f32.mrb[105].mxu0  ;;  %v1587_v34 = vadd.f32 %v6486_v21, %v7623_v15  ;;  %v3602_v5 = vadd.f32 %v3601_v53, %v3460_v60 }
 0x1d5   :  { %v2557_v37 = vadd.f32 %v2556_v27, %v2287_v26  ;;  %v1579_v38 = vadd.f32 %v1578_v23, %v7623_v15  ;;  %v6487_v39 = vpop.f32.mrb[106].mxu0  ;;  %v6758_v6 = vpop.f32.mrb[104].mxu1 }
 0x1d6   :  { %v1581_v42 = vpop.f32.mrb[107].mxu0  ;;  %v1590_v55 = vadd.f32 %v6487_v39, %v7623_v15  ;;  %v2291_v57 = vmax.f32 %v1587_v34, 0.0  ;;  %v3265_v17 = vpop.f32.mrb[105].mxu1  ;;  %v3603_v0 = vadd.f32 %v3602_v5, %v3461_v1  ;;  %v3274_v30 = vadd.f32 %v6758_v6, %v7663_v7 }
 0x1d7   :  { %v2289_v46 = vmax.f32 %v1579_v38, 0.0  ;;  %v2558_v47 = vadd.f32 %v2557_v37, %v2288_v31  ;;  %v1582_v48 = vadd.f32 %v1581_v42, %v7623_v15  ;;  %v6759_v19 = vpop.f32.mrb[106].mxu1  ;;  %v3266_v32 = vadd.f32 %v3265_v17, %v7663_v7 }
 0x1d8   :  { %6593 = vmatmul.mubr.bf16.gmra.mrb[212].mxu0 %v7161_v28  ;;  %v2292_v11 = vmax.f32 %v1590_v55, 0.0  ;;  %v3268_v23 = vpop.f32.mrb[107].mxu1  ;;  %v3604_v28 = vadd.f32 %v3603_v0, %v3462_v3  ;;  %v3277_v41 = vadd.f32 %v6759_v19, %v7663_v7  ;;  %v7167_v55 = vld [vmem:[%s8894_s1 + $0x380] sm:$0xff]  }
 0x1d9   :  { %v2559_v52 = vadd.f32 %v2558_v47, %v2289_v46  ;;  %v2290_v58 = vmax.f32 %v1582_v48, 0.0  ;;  %6596 = vmatprep.mubr.bf16.mxu0 %v7163_v29  ;;  %v3269_v38 = vadd.f32 %v3268_v23, %v7663_v7  ;;  %v3464_v39 = vmax.f32 %v3266_v32, 0.0  ;;  %v7166_v46 = vld [vmem:[%s8894_s1 + $0x378] sm:$0xff]  }
 0x1da   :  { %v3605_v29 = vadd.f32 %v3604_v28, %v3463_v14  ;;  %v3466_v47 = vmax.f32 %v3274_v30, 0.0  ;;  %v3467_v60 = vmax.f32 %v3277_v41, 0.0 }
 0x1db   :  { %v2560_v56 = vadd.f32 %v2559_v52, %v2290_v58  ;;  %v6490_v40 = vpop.f32.mrb[108].mxu0  ;;  %v3465_v45 = vmax.f32 %v3269_v38, 0.0 }
 0x1dc   :  { %v1594_v54 = vpop.f32.mrb[109].mxu0  ;;  %v1603_v24 = vadd.f32 %v6490_v40, %v7623_v15  ;;  %v3606_v48 = vadd.f32 %v3605_v29, %v3464_v39 }
 0x1dd   :  { %v2561_v62 = vadd.f32 %v2560_v56, %v2291_v57  ;;  %v1595_v13 = vadd.f32 %v1594_v54, %v7623_v15  ;;  %v6491_v16 = vpop.f32.mrb[110].mxu0  ;;  %v6762_v50 = vpop.f32.mrb[108].mxu1 }
 0x1de   :  { %v1597_v20 = vpop.f32.mrb[111].mxu0  ;;  %v1606_v31 = vadd.f32 %v6491_v16, %v7623_v15  ;;  %v2295_v42 = vmax.f32 %v1603_v24, 0.0  ;;  %v3281_v58 = vpop.f32.mrb[109].mxu1  ;;  %v3607_v53 = vadd.f32 %v3606_v48, %v3465_v45  ;;  %v3290_v5 = vadd.f32 %v6762_v50, %v7663_v7 }
 0x1df   :  { %v2293_v26 = vmax.f32 %v1595_v13, 0.0  ;;  %v2562_v27 = vadd.f32 %v2561_v62, %v2292_v11  ;;  %v1598_v21 = vadd.f32 %v1597_v20, %v7623_v15  ;;  %v3282_v61 = vadd.f32 %v3281_v58, %v7663_v7  ;;  %v6763_v57 = vpop.f32.mrb[110].mxu1 }
 0x1e0   :  { %6597 = vmatmul.mubr.bf16.gmra.mrb[216].mxu0 %v7164_v2  ;;  %v2296_v51 = vmax.f32 %v1606_v31, 0.0  ;;  %v3284_v2 = vpop.f32.mrb[111].mxu1  ;;  %v3608_v3 = vadd.f32 %v3607_v53, %v3466_v47  ;;  %v3293_v17 = vadd.f32 %v6763_v57, %v7663_v7  ;;  %v7169_v31 = vld [vmem:[%s8894_s1 + $0x390] sm:$0xff]  }
 0x1e1   :  { %v2563_v35 = vadd.f32 %v2562_v27, %v2293_v26  ;;  %v2294_v37 = vmax.f32 %v1598_v21, 0.0  ;;  %6600 = vmatprep.mubr.bf16.mxu0 %v7165_v4  ;;  %v3468_v6 = vmax.f32 %v3282_v61, 0.0  ;;  %v3285_v16 = vadd.f32 %v3284_v2, %v7663_v7  ;;  %v7168_v26 = vld [vmem:[%s8894_s1 + $0x388] sm:$0xff]  }
 0x1e2   :  { %v3609_v4 = vadd.f32 %v3608_v3, %v3467_v60  ;;  %v3470_v27 = vmax.f32 %v3290_v5, 0.0  ;;  %v3471_v39 = vmax.f32 %v3293_v17, 0.0 }
 0x1e3   :  { %v2564_v43 = vadd.f32 %v2563_v35, %v2294_v37  ;;  %v6494_v25 = vpop.f32.mrb[112].mxu0  ;;  %v3469_v19 = vmax.f32 %v3285_v16, 0.0 }
 0x1e4   :  { %v1610_v34 = vpop.f32.mrb[113].mxu0  ;;  %v1619_v56 = vadd.f32 %v6494_v25, %v7623_v15  ;;  %v3610_v21 = vadd.f32 %v3609_v4, %v3468_v6 }
 0x1e5   :  { %v2565_v18 = vadd.f32 %v2564_v43, %v2295_v42  ;;  %v1611_v44 = vadd.f32 %v1610_v34, %v7623_v15  ;;  %v6495_v52 = vpop.f32.mrb[114].mxu0  ;;  %v6766_v23 = vpop.f32.mrb[112].mxu1 }
 0x1e6   :  { %v1613_v59 = vpop.f32.mrb[115].mxu0  ;;  %v1622_v62 = vadd.f32 %v6495_v52, %v7623_v15  ;;  %v2299_v20 = vmax.f32 %v1619_v56, 0.0  ;;  %v3297_v37 = vpop.f32.mrb[113].mxu1  ;;  %v3611_v29 = vadd.f32 %v3610_v21, %v3469_v19  ;;  %v3306_v48 = vadd.f32 %v6766_v23, %v7663_v7  ;;  %v7170_v56 = vld [vmem:[%s8894_s1 + $0x398] sm:$0xff]  }
 0x1e7   :  { %v2297_v40 = vmax.f32 %v1611_v44, 0.0  ;;  %v2566_v1 = vadd.f32 %v2565_v18, %v2296_v51  ;;  %v1614_v54 = vadd.f32 %v1613_v59, %v7623_v15  ;;  %v3298_v41 = vadd.f32 %v3297_v37, %v7663_v7  ;;  %v6767_v42 = vpop.f32.mrb[114].mxu1 }
 0x1e8   :  { %6601 = vmatmul.mubr.bf16.gmra.mrb[220].mxu0 %v7166_v46  ;;  %v2300_v28 = vmax.f32 %v1622_v62, 0.0  ;;  %v3300_v46 = vpop.f32.mrb[115].mxu1  ;;  %v3612_v47 = vadd.f32 %v3611_v29, %v3470_v27  ;;  %v3309_v58 = vadd.f32 %v6767_v42, %v7663_v7 }
 0x1e9   :  { %v2567_v11 = vadd.f32 %v2566_v1, %v2297_v40  ;;  %v2298_v13 = vmax.f32 %v1614_v54, 0.0  ;;  %6604 = vmatprep.mubr.bf16.mxu0 %v7167_v55  ;;  %v3472_v50 = vmax.f32 %v3298_v41, 0.0  ;;  %v3301_v52 = vadd.f32 %v3300_v46, %v7663_v7 }
 0x1ea   :  { %v3613_v55 = vadd.f32 %v3612_v47, %v3471_v39  ;;  %v3474_v40 = vmax.f32 %v3306_v48, 0.0  ;;  %v3475_v16 = vmax.f32 %v3309_v58, 0.0 }
 0x1eb   :  { %v2568_v14 = vadd.f32 %v2567_v11, %v2298_v13  ;;  %v6498_v0 = vpop.f32.mrb[116].mxu0  ;;  %v3473_v61 = vmax.f32 %v3301_v52, 0.0  ;;  %v7172_v11 = vld [vmem:[%s8894_s1 + $0x3a0] sm:$0xff]  }
 0x1ec   :  { %v1626_v24 = vpop.f32.mrb[117].mxu0  ;;  %v1635_v43 = vadd.f32 %v6498_v0, %v7623_v15  ;;  %v3614_v1 = vadd.f32 %v3613_v55, %v3472_v50 }
 0x1ed   :  { %v2569_v30 = vadd.f32 %v2568_v14, %v2299_v20  ;;  %v1627_v32 = vadd.f32 %v1626_v24, %v7623_v15  ;;  %v6499_v35 = vpop.f32.mrb[118].mxu0  ;;  %v6770_v54 = vpop.f32.mrb[116].mxu1 }
 0x1ee   :  { %v1629_v38 = vpop.f32.mrb[119].mxu0  ;;  %v1638_v18 = vadd.f32 %v6499_v35, %v7623_v15  ;;  %v2303_v59 = vmax.f32 %v1635_v43, 0.0  ;;  %v3313_v62 = vpop.f32.mrb[117].mxu1  ;;  %v3615_v4 = vadd.f32 %v3614_v1, %v3473_v61  ;;  %v3322_v21 = vadd.f32 %v6770_v54, %v7663_v7 }
 0x1ef   :  { %v2301_v25 = vmax.f32 %v1627_v32, 0.0  ;;  %v2570_v45 = vadd.f32 %v2569_v30, %v2300_v28  ;;  %v1630_v34 = vadd.f32 %v1629_v38, %v7623_v15  ;;  %v3314_v17 = vadd.f32 %v3313_v62, %v7663_v7  ;;  %v6771_v20 = vpop.f32.mrb[118].mxu1 }
 0x1f0   :  { %6605 = vmatmul.mubr.bf16.gmra.mrb[224].mxu0 %v7168_v26  ;;  %v2304_v2 = vmax.f32 %v1638_v18, 0.0  ;;  %v3316_v26 = vpop.f32.mrb[119].mxu1  ;;  %v3616_v27 = vadd.f32 %v3615_v4, %v3474_v40  ;;  %v3325_v38 = vadd.f32 %v6771_v20, %v7663_v7  ;;  %v7174_v18 = vld [vmem:[%s8894_s1 + $0x3b0] sm:$0xff]   ;;  %v3593_v4 = vrot.slane %v8089_v22, 4 }
 0x1f1   :  { %v2571_v51 = vadd.f32 %v2570_v45, %v2301_v25  ;;  %v2302_v44 = vmax.f32 %v1630_v34, 0.0  ;;  %6608 = vmatprep.mubr.bf16.mxu0 %v7169_v31  ;;  %v3476_v23 = vmax.f32 %v3314_v17, 0.0  ;;  %v3317_v35 = vadd.f32 %v3316_v26, %v7663_v7  ;;  %v7173_v25 = vld [vmem:[%s8894_s1 + $0x3a8] sm:$0xff]  }
 0x1f2   :  { %v2546_v31 = vrot.slane %v8069_v36, 4  ;;  %v3617_v37 = vadd.f32 %v3616_v27, %v3475_v16  ;;  %v3478_v45 = vmax.f32 %v3322_v21, 0.0  ;;  %v3479_v58 = vmax.f32 %v3325_v38, 0.0 }
 0x1f3   :  { %v2572_v60 = vadd.f32 %v2571_v51, %v2302_v44  ;;  %v6502_v53 = vpop.f32.mrb[120].mxu0  ;;  %v3477_v42 = vmax.f32 %v3317_v35, 0.0 }
 0x1f4   :  { %v1642_v57 = vpop.f32.mrb[121].mxu0  ;;  %v1651_v14 = vadd.f32 %v6502_v53, %v7623_v15  ;;  %v3618_v34 = vadd.f32 %v3617_v37, %v3476_v23  ;;  %v2547_v52 = vadd.f32 %v2546_v31, %v8069_v36 }
 0x1f5   :  { %v2573_v3 = vadd.f32 %v2572_v60, %v2303_v59  ;;  %v1643_v5 = vadd.f32 %v1642_v57, %v7623_v15  ;;  %v6503_v6 = vpop.f32.mrb[122].mxu0  ;;  %v6774_v46 = vpop.f32.mrb[120].mxu1 }
 0x1f6   :  { %v1645_v13 = vpop.f32.mrb[123].mxu0  ;;  %v1654_v30 = vadd.f32 %v6503_v6, %v7623_v15  ;;  %v2307_v39 = vmax.f32 %v1651_v14, 0.0  ;;  %v3329_v44 = vpop.f32.mrb[121].mxu1  ;;  %v3619_v59 = vadd.f32 %v3618_v34, %v3477_v42  ;;  %v2548_v62 = vrot.slane %v2547_v52, 2 }
 0x1f7   :  { %v2305_v0 = vmax.f32 %v1643_v5, 0.0  ;;  %v2574_v19 = vadd.f32 %v2573_v3, %v2304_v2  ;;  %v1646_v24 = vadd.f32 %v1645_v13, %v7623_v15  ;;  %v3330_v60 = vadd.f32 %v3329_v44, %v7663_v7  ;;  %v6775_v53 = vpop.f32.mrb[122].mxu1 }
 0x1f8   :  { %6609 = vmatmul.mubr.bf16.gmra.mrb[228].mxu0 %v7170_v56  ;;  %v2308_v47 = vmax.f32 %v1654_v30, 0.0  ;;  %v3332_v1 = vpop.f32.mrb[123].mxu1  ;;  %v3620_v54 = vadd.f32 %v3619_v59, %v3478_v45  ;;  %v3338_v2 = vadd.f32 %v6774_v46, %v7663_v7  ;;  %v3341_v16 = vadd.f32 %v6775_v53, %v7663_v7  ;;  %v7176_v30 = vld [vmem:[%s8894_s1 + $0x3c0] sm:$0xff]  }
 0x1f9   :  { %v2575_v28 = vadd.f32 %v2574_v19, %v2305_v0  ;;  %v2306_v32 = vmax.f32 %v1646_v24, 0.0  ;;  %6612 = vmatprep.mubr.bf16.mxu0 %v7172_v11  ;;  %v3480_v3 = vmax.f32 %v3330_v60, 0.0  ;;  %v3333_v11 = vadd.f32 %v3332_v1, %v7663_v7  ;;  %v7175_v19 = vld [vmem:[%s8894_s1 + $0x3b8] sm:$0xff]  }
 0x1fa   :  { %v3621_v13 = vadd.f32 %v3620_v54, %v3479_v58  ;;  %v3482_v24 = vmax.f32 %v3338_v2, 0.0  ;;  %v3483_v37 = vmax.f32 %v3341_v16, 0.0  ;;  %v2549_v42 = vadd.f32 %v2548_v62, %v2547_v52 }
 0x1fb   :  { %v2576_v29 = vadd.f32 %v2575_v28, %v2306_v32  ;;  %v6506_v41 = vpop.f32.mrb[124].mxu0  ;;  %v3481_v14 = vmax.f32 %v3333_v11, 0.0 }
 0x1fc   :  { %v1658_v43 = vpop.f32.mrb[125].mxu0  ;;  %v1667_v61 = vadd.f32 %v6506_v41, %v7623_v15  ;;  %v3622_v26 = vadd.f32 %v3621_v13, %v3480_v3 }
 0x1fd   :  { %v2577_v48 = vadd.f32 %v2576_v29, %v2307_v39  ;;  %v1659_v50 = vadd.f32 %v1658_v43, %v7623_v15  ;;  %v6507_v51 = vpop.f32.mrb[126].mxu0  ;;  %v6778_v27 = vpop.f32.mrb[124].mxu1  ;;  %v3594_v43 = vadd.f32 %v3593_v4, %v8089_v22 }
 0x1fe   :  { %v1661_v55 = vpop.f32.mrb[127].mxu0  ;;  %v1670_v36 = vadd.f32 %v6507_v51, %v7623_v15  ;;  %v2311_v17 = vmax.f32 %v1667_v61, 0.0  ;;  %v3345_v32 = vpop.f32.mrb[125].mxu1  ;;  %v3623_v38 = vadd.f32 %v3622_v26, %v3481_v14 }
 0x1ff   :  { %v2309_v57 = vmax.f32 %v1659_v50, 0.0  ;;  %v2578_v56 = vadd.f32 %v2577_v48, %v2308_v47  ;;  %v1662_v40 = vadd.f32 %v1661_v55, %v7623_v15  ;;  %v3346_v39 = vadd.f32 %v3345_v32, %v7663_v7  ;;  %v6779_v29 = vpop.f32.mrb[126].mxu1 }
 0x200   :  { %6613 = vmatmul.mubr.bf16.gmra.mrb[232].mxu0 %v7173_v25  ;;  %v2312_v23 = vmax.f32 %v1670_v36, 0.0  ;;  %v3348_v45 = vpop.f32.mrb[127].mxu1  ;;  %v3624_v46 = vadd.f32 %v3623_v38, %v3482_v24  ;;  %v3354_v47 = vadd.f32 %v6778_v27, %v7663_v7  ;;  %v3357_v22 = vadd.f32 %v6779_v29, %v7663_v7  ;;  %v7181_v38 = vld [vmem:[%s8894_s1 + $0x3d8] sm:$0xff]  }
 0x201   :  { %v2579_v5 = vadd.f32 %v2578_v56, %v2309_v57  ;;  %v2310_v6 = vmax.f32 %v1662_v40, 0.0  ;;  %6616 = vmatprep.mubr.bf16.mxu0 %v7174_v18  ;;  %v3484_v48 = vmax.f32 %v3346_v39, 0.0  ;;  %v3349_v50 = vadd.f32 %v3348_v45, %v7663_v7  ;;  %v7177_v40 = vld [vmem:[%s8894_s1 + $0x3c8] sm:$0xff]  }
 0x202   :  { %v3625_v55 = vadd.f32 %v3624_v46, %v3483_v37  ;;  %v2550_v57 = vrot.slane %v2549_v42, 1  ;;  %v3595_v56 = vrot.slane %v3594_v43, 2  ;;  %v3486_v1 = vmax.f32 %v3354_v47, 0.0 }
 0x203   :  { %v2580_v20 = vadd.f32 %v2579_v5, %v2310_v6  ;;  %v6510_v0 = vpop.f32.mrb[128].mxu0  ;;  %v3485_v58 = vmax.f32 %v3349_v50, 0.0  ;;  %v7180_v5 = vld [vmem:[%s8894_s1 + $0x3d0] sm:$0xff]   ;;  %v3487_v62 = vmax.f32 %v3357_v22, 0.0 }
 0x204   :  { %v1674_v21 = vpop.f32.mrb[129].mxu0  ;;  %v1683_v34 = vadd.f32 %v6510_v0, %v7623_v15  ;;  %v3626_v54 = vadd.f32 %v3625_v55, %v3484_v48  ;;  %v2551_v0 = vadd.f32 %v2550_v57, %v2549_v42  ;;  %v3596_v26 = vadd.f32 %v3595_v56, %v3594_v43 }
 0x205   :  { %v2581_v28 = vadd.f32 %v2580_v20, %v2311_v17  ;;  %v1675_v35 = vadd.f32 %v1674_v21, %v7623_v15  ;;  %v6511_v31 = vpop.f32.mrb[130].mxu0 }
 0x206   :  { %v1677_v41 = vpop.f32.mrb[131].mxu0  ;;  %v1686_v44 = vadd.f32 %v6511_v31, %v7623_v15  ;;  %v2315_v60 = vmax.f32 %v1683_v34, 0.0  ;;  %v3627_v13 = vadd.f32 %v3626_v54, %v3485_v58  ;;  %v2740_v37 = vmul.f32 0.00390625, %v2551_v0 }
 0x207   :  { %v2582_v25 = vadd.f32 %v2581_v28, %v2312_v23  ;;  %v2313_v18 = vmax.f32 %v1675_v35, 0.0  ;;  %v1678_v52 = vadd.f32 %v1677_v41, %v7623_v15  ;;  %v3597_v42 = vrot.slane %v3596_v26, 1 }
 0x208   :  { %6617 = vmatmul.mubr.bf16.gmra.mrb[236].mxu0 %v7175_v19  ;;  %v2316_v7 = vmax.f32 %v1686_v44, 0.0  ;;  %v3628_v19 = vadd.f32 %v3627_v13, %v3486_v1  ;;  %v7188_v13 = vld [vmem:[%s8894_s1 + $0x3f0] sm:$0xff]  }
 0x209   :  { %v2583_v51 = vrot.slane %v2582_v25, 4  ;;  %6620 = vmatprep.mubr.bf16.mxu0 %v7176_v30  ;;  %v2314_v53 = vmax.f32 %v1678_v52, 0.0 }
 0x20a   :  { %v3629_v28 = vadd.f32 %v3628_v19, %v3487_v62 }
 0x20b   :  { %v2584_v59 = vadd.f32 %v2583_v51, %v2582_v25  ;;  %v6514_v61 = vpop.f32.mrb[132].mxu0  ;;  %v2589_v36 = vadd.f32 %v2314_v53, %v2313_v18  ;;  %v7184_v25 = vld [vmem:[%s8894_s1 + $0x3e0] sm:$0xff]   ;;  %v3598_v53 = vadd.f32 %v3597_v42, %v3596_v26 }
 0x20c   :  { %v1690_v2 = vpop.f32.mrb[133].mxu0  ;;  %v1699_v24 = vadd.f32 %v6514_v61, %v7623_v15  ;;  %v3630_v39 = vrot.slane %v3629_v28, 4 }
 0x20d   :  { %v2585_v3 = vrot.slane %v2584_v59, 2  ;;  %v1691_v6 = vadd.f32 %v1690_v2, %v7623_v15  ;;  %v6515_v11 = vpop.f32.mrb[134].mxu0  ;;  %v2590_v17 = vadd.f32 %v2589_v36, %v2315_v60  ;;  %v7185_v36 = vld [vmem:[%s8894_s1 + $0x3e8] sm:$0xff]  }
 0x20e   :  { %v1693_v16 = vpop.f32.mrb[135].mxu0  ;;  %v1702_v30 = vadd.f32 %v6515_v11, %v7623_v15  ;;  %v2319_v29 = vmax.f32 %v1699_v24, 0.0  ;;  %v3631_v47 = vadd.f32 %v3630_v39, %v3629_v28 }
 0x20f   :  { %v2586_v4 = vadd.f32 %v2585_v3, %v2584_v59  ;;  %v2317_v20 = vmax.f32 %v1691_v6, 0.0  ;;  %v1694_v14 = vadd.f32 %v1693_v16, %v7623_v15  ;;  %v2591_v21 = vadd.f32 %v2590_v17, %v2316_v7 }
 0x210   :  { %6621 = vmatmul.mubr.bf16.gmra.mrb[240].mxu0 %v7177_v40  ;;  %v2320_v48 = vmax.f32 %v1702_v30, 0.0  ;;  %v3632_v22 = vrot.slane %v3631_v47, 2  ;;  %v3638_v17 = vmul.f32 0.00390625, %v3598_v53 }
 0x211   :  { %v2587_v27 = vrot.slane %v2586_v4, 1  ;;  %6624 = vmatprep.mubr.bf16.mxu0 %v7180_v5  ;;  %v2318_v23 = vmax.f32 %v1694_v14, 0.0  ;;  %v2592_v35 = vadd.f32 %v2591_v21, %v2317_v20 }
 0x212   :  { %v3633_v56 = vadd.f32 %v3632_v22, %v3631_v47 }
 0x213   :  { %v2588_v32 = vadd.f32 %v2587_v27, %v2586_v4  ;;  %v6518_v31 = vpop.f32.mrb[136].mxu0  ;;  %v2593_v45 = vadd.f32 %v2592_v35, %v2318_v23 }
 0x214   :  { %v1706_v41 = vpop.f32.mrb[137].mxu0  ;;  %v1715_v50 = vadd.f32 %v6518_v31, %v7623_v15  ;;  %v3634_v7 = vrot.slane %v3633_v56, 1 }
 0x215   :  { %v2741_v43 = vmul.f32 0.00390625, %v2588_v32  ;;  %v1707_v34 = vadd.f32 %v1706_v41, %v7623_v15  ;;  %v6519_v46 = vpop.f32.mrb[138].mxu0  ;;  %v2594_v59 = vadd.f32 %v2593_v45, %v2319_v29  ;;  %v7189_v41 = vld [vmem:[%s8894_s1 + $0x3f8] sm:$0xff]  }
 0x216   :  { %v1709_v51 = vpop.f32.mrb[139].mxu0  ;;  %v1718_v54 = vadd.f32 %v6519_v46, %v7623_v15  ;;  %v2323_v6 = vmax.f32 %v1715_v50, 0.0  ;;  %v3635_v20 = vadd.f32 %v3634_v7, %v3633_v56 }
 0x217   :  { %v3662_v18 = vsel %vm3642_vm0, %v2741_v43, %v2740_v37  ;;  %v3664_v44 = vsel %vm3645_vm1, %v2741_v43, %v2740_v37  ;;  %v3666_v52 = vsel %vm3648_vm2, %v2741_v43, %v2740_v37  ;;  %v3668_v55 = vsel %vm3651_vm3, %v2741_v43, %v2740_v37 }
 0x218   :  { %6625 = vmatmul.mubr.bf16.gmra.mrb[244].mxu0 %v7181_v38  ;;  %v3670_v58 = vsel %vm3654_vm4, %v3662_v18, %v3664_v44  ;;  %v2321_v60 = vmax.f32 %v1707_v34, 0.0  ;;  %v1710_v57 = vadd.f32 %v1709_v51, %v7623_v15  ;;  %v2595_v1 = vadd.f32 %v2594_v59, %v2320_v48 }
 0x219   :  { %v3671_v61 = vsel %vm3656_vm6, %v3670_v58, %v3666_v52  ;;  %6628 = vmatprep.mubr.bf16.mxu0 %v7184_v25  ;;  %v2324_v14 = vmax.f32 %v1718_v54, 0.0  ;;  %v3639_v26 = vmul.f32 0.00390625, %v3635_v20  ;;  %v8258_v54 = vpack.c.bf16 %v7983_v33, %v7983_v33 }
 0x21a   :  { %v3672_v40 = vsel %vm3658_vm7, %v3671_v61, %v3668_v55  ;;  %v2322_v3 = vmax.f32 %v1710_v57, 0.0  ;;  %v2596_v11 = vadd.f32 %v2595_v1, %v2321_v60 }
 0x21b   :  { %v3759_v2 = vpack.c.bf16 %v3672_v40, %v7983_v33  ;;  %v6522_v5 = vpop.f32.mrb[140].mxu0  ;;  %v3714_v35 = vsel %vm3642_vm0, %v3639_v26, %v3638_v17  ;;  %v3716_v31 = vsel %vm3645_vm1, %v3639_v26, %v3638_v17  ;;  %v3718_v37 = vsel %vm3648_vm2, %v3639_v26, %v3638_v17 }
 0x21c   :  { %v1722_v62 = vpop.f32.mrb[141].mxu0  ;;  %v2597_v0 = vadd.f32 %v2596_v11, %v2322_v3  ;;  %v1731_v21 = vadd.f32 %v6522_v5, %v7623_v15  ;;  %v3720_v39 = vsel %vm3651_vm3, %v3639_v26, %v3638_v17  ;;  %v3722_v29 = vsel %vm3654_vm4, %v3714_v35, %v3716_v31 }
 0x21d   :  { %6797 = vmatmul.mubr.bf16.vlgmr.msra.gmra.mrb[128].mxu1 %v3759_v2  ;;  %v1723_v16 = vadd.f32 %v1722_v62, %v7623_v15  ;;  %v6523_v4 = vpop.f32.mrb[142].mxu0  ;;  %v3723_v45 = vsel %vm3656_vm6, %v3722_v29, %v3718_v37 }
 0x21e   :  { %v1725_v19 = vpop.f32.mrb[143].mxu0  ;;  %6816 = vmatprep.mubr.msk.bf16.mxu1 %vm7353_vm5, %v7352_v49  ;;  %v2598_v27 = vadd.f32 %v2597_v0, %v2323_v6  ;;  %v1734_v28 = vadd.f32 %v6523_v4, %v7623_v15  ;;  %v2327_v42 = vmax.f32 %v1731_v21, 0.0  ;;  %v8246_v47 = vsel %vm3658_vm7, %v3723_v45, %v3720_v39 }
 0x21f   :  { %v1726_v24 = vadd.f32 %v1725_v19, %v7623_v15  ;;  %v2325_v23 = vmax.f32 %v1723_v16, 0.0  ;;  %v4308_v18 = vpack.c.bf16 %v8246_v47, %v8066_v8  ;;  %v7226_v8 = vld [vmem:[%s8895_s2 + $0x350] sm:$0xff]   ;;  %v7227_v47 = vld [vmem:[%s8895_s2 + $0x358] sm:$0xff]  }
 0x220   :  { %6629 = vmatmul.mubr.bf16.gmra.mrb[248].mxu0 %v7185_v36  ;;  %v2599_v32 = vadd.f32 %v2598_v27, %v2324_v14  ;;  %v2328_v48 = vmax.f32 %v1734_v28, 0.0 }
 0x221   :  { %6632 = vmatprep.mubr.bf16.mxu0 %v7188_v13  ;;  %v2326_v30 = vmax.f32 %v1726_v24, 0.0 }
 0x222   :  { %v2600_v43 = vadd.f32 %v2599_v32, %v2325_v23 }
 0x223   :  { %v6526_v38 = vpop.f32.mrb[144].mxu0 }
 0x224   :  { %v1738_v25 = vpop.f32.mrb[145].mxu0  ;;  %v2601_v50 = vadd.f32 %v2600_v43, %v2326_v30  ;;  %v1747_v55 = vadd.f32 %v6526_v38, %v7623_v15 }
 0x225   :  { %v1739_v34 = vadd.f32 %v1738_v25, %v7623_v15  ;;  %v6527_v46 = vpop.f32.mrb[146].mxu0 }
 0x226   :  { %v1741_v51 = vpop.f32.mrb[147].mxu0  ;;  %v2602_v52 = vadd.f32 %v2601_v50, %v2327_v42  ;;  %v1750_v59 = vadd.f32 %v6527_v46, %v7623_v15  ;;  %v2331_v61 = vmax.f32 %v1747_v55, 0.0 }
 0x227   :  { %v1742_v44 = vadd.f32 %v1741_v51, %v7623_v15  ;;  %v2329_v22 = vmax.f32 %v1739_v34, 0.0 }
 0x228   :  { %6633 = vmatmul.mubr.bf16.gmra.mrb[252].mxu0 %v7189_v41  ;;  %v2603_v58 = vadd.f32 %v2602_v52, %v2328_v48  ;;  %v2332_v2 = vmax.f32 %v1750_v59, 0.0 }
 0x229   :  { %6956 = vmatprep.mubr.msk.bf16.mxu0 %vm7353_vm5, %v7352_v49  ;;  %v2330_v60 = vmax.f32 %v1742_v44, 0.0 }
 0x22a   :  { %v2604_v57 = vadd.f32 %v2603_v58, %v2329_v22 }
 0x22b   :  { %v6530_v53 = vpop.f32.mrb[148].mxu0 }
 0x22c   :  { %v1754_v56 = vpop.f32.mrb[149].mxu0  ;;  %v2605_v3 = vadd.f32 %v2604_v57, %v2330_v60  ;;  %v1763_v6 = vadd.f32 %v6530_v53, %v7623_v15 }
 0x22d   :  { %v1755_v40 = vadd.f32 %v1754_v56, %v7623_v15  ;;  %v6531_v1 = vpop.f32.mrb[150].mxu0 }
 0x22e   :  { %v1757_v5 = vpop.f32.mrb[151].mxu0  ;;  %v2606_v36 = vadd.f32 %v2605_v3, %v2331_v61  ;;  %v1766_v13 = vadd.f32 %v6531_v1, %v7623_v15  ;;  %v2335_v17 = vmax.f32 %v1763_v6, 0.0 }
 0x22f   :  { %v1758_v7 = vadd.f32 %v1757_v5, %v7623_v15  ;;  %v2333_v11 = vmax.f32 %v1755_v40, 0.0 }
 0x230   :  { %6957 = vmatmul.mubr.bf16.vlgmr.msra.gmra.mrb[0].mxu0 %v8258_v54  ;;  %v2607_v62 = vadd.f32 %v2606_v36, %v2332_v2  ;;  %v2336_v24 = vmax.f32 %v1766_v13, 0.0 }
 0x231   :  { %v2334_v16 = vmax.f32 %v1758_v7, 0.0 }
 0x232   :  { %v2608_v20 = vadd.f32 %v2607_v62, %v2333_v11 }
 0x233   :  { %v6534_v4 = vpop.f32.mrb[152].mxu0 }
 0x234   :  { %v1770_v14 = vpop.f32.mrb[153].mxu0  ;;  %v2609_v26 = vadd.f32 %v2608_v20, %v2334_v16  ;;  %v1779_v28 = vadd.f32 %v6534_v4, %v7623_v15 }
 0x235   :  { %v1771_v0 = vadd.f32 %v1770_v14, %v7623_v15  ;;  %v6535_v19 = vpop.f32.mrb[154].mxu0 }
 0x236   :  { %v1773_v27 = vpop.f32.mrb[155].mxu0  ;;  %v2610_v23 = vadd.f32 %v2609_v26, %v2335_v17  ;;  %v1782_v35 = vadd.f32 %v6535_v19, %v7623_v15  ;;  %v2339_v38 = vmax.f32 %v1779_v28, 0.0 }
 0x237   :  { %v1774_v21 = vadd.f32 %v1773_v27, %v7623_v15  ;;  %v2337_v30 = vmax.f32 %v1771_v0, 0.0 }
 0x238   :  { %v2611_v32 = vadd.f32 %v2610_v23, %v2336_v24  ;;  %v2340_v43 = vmax.f32 %v1782_v35, 0.0 }
 0x239   :  { %v2338_v31 = vmax.f32 %v1774_v21, 0.0 }
 0x23a   :  { %v2612_v39 = vadd.f32 %v2611_v32, %v2337_v30 }
 0x23b   :  { %v6538_v37 = vpop.f32.mrb[156].mxu0 }
 0x23c   :  { %v1786_v29 = vpop.f32.mrb[157].mxu0  ;;  %v2613_v25 = vadd.f32 %v2612_v39, %v2338_v31  ;;  %v1795_v48 = vadd.f32 %v6538_v37, %v7623_v15 }
 0x23d   :  { %v1787_v41 = vadd.f32 %v1786_v29, %v7623_v15  ;;  %v6539_v42 = vpop.f32.mrb[158].mxu0 }
 0x23e   :  { %v1789_v45 = vpop.f32.mrb[159].mxu0  ;;  %v2614_v46 = vadd.f32 %v2613_v25, %v2339_v38  ;;  %v1798_v44 = vadd.f32 %v6539_v42, %v7623_v15  ;;  %v2343_v22 = vmax.f32 %v1795_v48, 0.0 }
 0x23f   :  { %v1790_v34 = vadd.f32 %v1789_v45, %v7623_v15  ;;  %v2341_v50 = vmax.f32 %v1787_v41, 0.0 }
 0x240   :  { %v2615_v51 = vadd.f32 %v2614_v46, %v2340_v43  ;;  %v2344_v57 = vmax.f32 %v1798_v44, 0.0 }
 0x241   :  { %v2342_v52 = vmax.f32 %v1790_v34, 0.0 }
 0x242   :  { %v2616_v58 = vadd.f32 %v2615_v51, %v2341_v50 }
 0x243   :  { %v6542_v55 = vpop.f32.mrb[160].mxu0 }
 0x244   :  { %v1802_v59 = vpop.f32.mrb[161].mxu0  ;;  %v1811_v60 = vadd.f32 %v6542_v55, %v7623_v15  ;;  %v2617_v56 = vadd.f32 %v2616_v58, %v2342_v52 }
 0x245   :  { %v1803_v53 = vadd.f32 %v1802_v59, %v7623_v15  ;;  %v6543_v61 = vpop.f32.mrb[162].mxu0 }
 0x246   :  { %v1805_v40 = vpop.f32.mrb[163].mxu0  ;;  %v1814_v2 = vadd.f32 %v6543_v61, %v7623_v15  ;;  %v2618_v5 = vadd.f32 %v2617_v56, %v2343_v22  ;;  %v2347_v7 = vmax.f32 %v1811_v60, 0.0 }
 0x247   :  { %v2345_v1 = vmax.f32 %v1803_v53, 0.0  ;;  %v1806_v3 = vadd.f32 %v1805_v40, %v7623_v15 }
 0x248   :  { %v8276_v6 = vadd.f32 %v2618_v5, %v2344_v57  ;;  %v2348_v11 = vmax.f32 %v1814_v2, 0.0 }
 0x249   :  { %v2346_v36 = vmax.f32 %v1806_v3, 0.0 }
 0x24b   :  { %v2626_v62 = vadd.f32 %v2346_v36, %v2345_v1  ;;  %v6546_v13 = vpop.f32.mrb[164].mxu0 }
 0x24c   :  { %v1818_v16 = vpop.f32.mrb[165].mxu0  ;;  %v1827_v17 = vadd.f32 %v6546_v13, %v7623_v15 }
 0x24d   :  { %v2627_v4 = vadd.f32 %v2626_v62, %v2347_v7  ;;  %v1819_v20 = vadd.f32 %v1818_v16, %v7623_v15  ;;  %v6547_v14 = vpop.f32.mrb[166].mxu0 }
 0x24e   :  { %v1821_v0 = vpop.f32.mrb[167].mxu0  ;;  %v1830_v26 = vadd.f32 %v6547_v14, %v7623_v15  ;;  %v2351_v21 = vmax.f32 %v1827_v17, 0.0 }
 0x24f   :  { %v2349_v19 = vmax.f32 %v1819_v20, 0.0  ;;  %v2628_v24 = vadd.f32 %v2627_v4, %v2348_v11  ;;  %v1822_v27 = vadd.f32 %v1821_v0, %v7623_v15 }
 0x250   :  { %v2352_v30 = vmax.f32 %v1830_v26, 0.0 }
 0x251   :  { %v2629_v23 = vadd.f32 %v2628_v24, %v2349_v19  ;;  %v2350_v28 = vmax.f32 %v1822_v27, 0.0 }
 0x253   :  { %v2630_v32 = vadd.f32 %v2629_v23, %v2350_v28  ;;  %v6550_v35 = vpop.f32.mrb[168].mxu0 }
 0x254   :  { %v1834_v31 = vpop.f32.mrb[169].mxu0  ;;  %v1843_v38 = vadd.f32 %v6550_v35, %v7623_v15 }
 0x255   :  { %v2631_v37 = vadd.f32 %v2630_v32, %v2351_v21  ;;  %v1835_v39 = vadd.f32 %v1834_v31, %v7623_v15  ;;  %v6551_v29 = vpop.f32.mrb[170].mxu0 }
 0x256   :  { %v1837_v41 = vpop.f32.mrb[171].mxu0  ;;  %v1846_v25 = vadd.f32 %v6551_v29, %v7623_v15  ;;  %v2355_v34 = vmax.f32 %v1843_v38, 0.0 }
 0x257   :  { %v2353_v42 = vmax.f32 %v1835_v39, 0.0  ;;  %v2632_v43 = vadd.f32 %v2631_v37, %v2352_v30  ;;  %v1838_v45 = vadd.f32 %v1837_v41, %v7623_v15 }
 0x258   :  { %v2356_v50 = vmax.f32 %v1846_v25, 0.0 }
 0x259   :  { %v2633_v46 = vadd.f32 %v2632_v43, %v2353_v42  ;;  %v2354_v48 = vmax.f32 %v1838_v45, 0.0 }
 0x25b   :  { %v2634_v51 = vadd.f32 %v2633_v46, %v2354_v48  ;;  %v6554_v44 = vpop.f32.mrb[172].mxu0 }
 0x25c   :  { %v1850_v52 = vpop.f32.mrb[173].mxu0  ;;  %v1859_v22 = vadd.f32 %v6554_v44, %v7623_v15 }
 0x25d   :  { %v2635_v55 = vadd.f32 %v2634_v51, %v2355_v34  ;;  %v1851_v58 = vadd.f32 %v1850_v52, %v7623_v15  ;;  %v6555_v59 = vpop.f32.mrb[174].mxu0 }
 0x25e   :  { %v1853_v60 = vpop.f32.mrb[175].mxu0  ;;  %v1862_v57 = vadd.f32 %v6555_v59, %v7623_v15  ;;  %v2359_v40 = vmax.f32 %v1859_v22, 0.0 }
 0x25f   :  { %v2357_v53 = vmax.f32 %v1851_v58, 0.0  ;;  %v2636_v61 = vadd.f32 %v2635_v55, %v2356_v50  ;;  %v1854_v56 = vadd.f32 %v1853_v60, %v7623_v15 }
 0x260   :  { %v2360_v3 = vmax.f32 %v1862_v57, 0.0 }
 0x261   :  { %v2637_v1 = vadd.f32 %v2636_v61, %v2357_v53  ;;  %v2358_v2 = vmax.f32 %v1854_v56, 0.0  ;;  %v2620_v56 = vrot.slane %v8276_v6, 4 }
 0x263   :  { %v2638_v5 = vadd.f32 %v2637_v1, %v2358_v2  ;;  %v6558_v7 = vpop.f32.mrb[176].mxu0 }
 0x264   :  { %v1866_v36 = vpop.f32.mrb[177].mxu0  ;;  %v1875_v62 = vadd.f32 %v6558_v7, %v7623_v15 }
 0x265   :  { %v2639_v11 = vadd.f32 %v2638_v5, %v2359_v40  ;;  %v1867_v13 = vadd.f32 %v1866_v36, %v7623_v15  ;;  %v6559_v16 = vpop.f32.mrb[178].mxu0 }
 0x266   :  { %v1869_v4 = vpop.f32.mrb[179].mxu0  ;;  %v1878_v14 = vadd.f32 %v6559_v16, %v7623_v15  ;;  %v2363_v19 = vmax.f32 %v1875_v62, 0.0  ;;  %v2621_v62 = vadd.f32 %v2620_v56, %v8276_v6 }
 0x267   :  { %v2361_v17 = vmax.f32 %v1867_v13, 0.0  ;;  %v2640_v20 = vadd.f32 %v2639_v11, %v2360_v3  ;;  %v1870_v0 = vadd.f32 %v1869_v4, %v7623_v15 }
 0x268   :  { %v2364_v27 = vmax.f32 %v1878_v14, 0.0 }
 0x269   :  { %v2641_v24 = vadd.f32 %v2640_v20, %v2361_v17  ;;  %v2362_v26 = vmax.f32 %v1870_v0, 0.0 }
 0x26b   :  { %v2642_v21 = vadd.f32 %v2641_v24, %v2362_v26  ;;  %v6562_v23 = vpop.f32.mrb[180].mxu0  ;;  %v2622_v24 = vrot.slane %v2621_v62, 2 }
 0x26c   :  { %v1882_v28 = vpop.f32.mrb[181].mxu0  ;;  %v1891_v32 = vadd.f32 %v6562_v23, %v7623_v15 }
 0x26d   :  { %v2643_v30 = vadd.f32 %v2642_v21, %v2363_v19  ;;  %v1883_v35 = vadd.f32 %v1882_v28, %v7623_v15  ;;  %v6563_v31 = vpop.f32.mrb[182].mxu0 }
 0x26e   :  { %v1885_v37 = vpop.f32.mrb[183].mxu0  ;;  %v1894_v29 = vadd.f32 %v6563_v31, %v7623_v15  ;;  %v2367_v42 = vmax.f32 %v1891_v32, 0.0 }
 0x26f   :  { %v2365_v38 = vmax.f32 %v1883_v35, 0.0  ;;  %v2644_v39 = vadd.f32 %v2643_v30, %v2364_v27  ;;  %v1886_v41 = vadd.f32 %v1885_v37, %v7623_v15  ;;  %v2623_v35 = vadd.f32 %v2622_v24, %v2621_v62 }
 0x270   :  { %v2368_v45 = vmax.f32 %v1894_v29, 0.0 }
 0x271   :  { %v2645_v43 = vadd.f32 %v2644_v39, %v2365_v38  ;;  %v2366_v25 = vmax.f32 %v1886_v41, 0.0 }
 0x273   :  { %v2646_v34 = vadd.f32 %v2645_v43, %v2366_v25  ;;  %v6566_v46 = vpop.f32.mrb[184].mxu0  ;;  %v2624_v25 = vrot.slane %v2623_v35, 1 }
 0x274   :  { %v1898_v48 = vpop.f32.mrb[185].mxu0  ;;  %v1907_v51 = vadd.f32 %v6566_v46, %v7623_v15 }
 0x275   :  { %v2647_v50 = vadd.f32 %v2646_v34, %v2367_v42  ;;  %v1899_v44 = vadd.f32 %v1898_v48, %v7623_v15  ;;  %v6567_v52 = vpop.f32.mrb[186].mxu0 }
 0x276   :  { %v1901_v55 = vpop.f32.mrb[187].mxu0  ;;  %v1910_v59 = vadd.f32 %v6567_v52, %v7623_v15  ;;  %v2371_v53 = vmax.f32 %v1907_v51, 0.0 }
 0x277   :  { %v2369_v22 = vmax.f32 %v1899_v44, 0.0  ;;  %v2648_v58 = vadd.f32 %v2647_v50, %v2368_v45  ;;  %v1902_v60 = vadd.f32 %v1901_v55, %v7623_v15 }
 0x278   :  { %v2372_v40 = vmax.f32 %v1910_v59, 0.0 }
 0x279   :  { %v2649_v61 = vadd.f32 %v2648_v58, %v2369_v22  ;;  %v2370_v57 = vmax.f32 %v1902_v60, 0.0  ;;  %v2625_v58 = vadd.f32 %v2624_v25, %v2623_v35 }
 0x27b   :  { %v2650_v1 = vadd.f32 %v2649_v61, %v2370_v57  ;;  %v6570_v2 = vpop.f32.mrb[188].mxu0 }
 0x27c   :  { %v1914_v3 = vpop.f32.mrb[189].mxu0  ;;  %v1923_v7 = vadd.f32 %v6570_v2, %v7623_v15 }
 0x27d   :  { %v2651_v5 = vadd.f32 %v2650_v1, %v2371_v53  ;;  %v1915_v36 = vadd.f32 %v1914_v3, %v7623_v15  ;;  %v6571_v11 = vpop.f32.mrb[190].mxu0 }
 0x27e   :  { %v1917_v13 = vpop.f32.mrb[191].mxu0  ;;  %v1926_v17 = vadd.f32 %v6571_v11, %v7623_v15  ;;  %v2375_v14 = vmax.f32 %v1923_v7, 0.0 }
 0x27f   :  { %v2373_v16 = vmax.f32 %v1915_v36, 0.0  ;;  %v2652_v4 = vadd.f32 %v2651_v5, %v2372_v40  ;;  %v1918_v20 = vadd.f32 %v1917_v13, %v7623_v15  ;;  %v2742_v5 = vmul.f32 0.00390625, %v2625_v58 }
 0x280   :  { %v2376_v26 = vmax.f32 %v1926_v17, 0.0 }
 0x281   :  { %v2653_v0 = vadd.f32 %v2652_v4, %v2373_v16  ;;  %v2374_v19 = vmax.f32 %v1918_v20, 0.0 }
 0x283   :  { %v2654_v27 = vadd.f32 %v2653_v0, %v2374_v19  ;;  %v6574_v21 = vpop.f32.mrb[192].mxu0  ;;  %v7192_v19 = vld [vmem:[%s8895_s2 + $0xc0] sm:$0xff]  }
 0x284   :  { %v1930_v23 = vpop.f32.mrb[193].mxu0  ;;  %v1939_v30 = vadd.f32 %v6574_v21, %v7623_v15  ;;  %6801 = vmatpush3.bf16.msra.mxu1 %v7192_v19 }
 0x285   :  { %v2655_v28 = vadd.f32 %v2654_v27, %v2375_v14  ;;  %v1931_v6 = vadd.f32 %v1930_v23, %v7623_v15  ;;  %v6575_v32 = vpop.f32.mrb[194].mxu0  ;;  %6802 = vmatprep.subr.bf16.mxu1 %v7352_v49 }
 0x286   :  { %v1933_v31 = vpop.f32.mrb[195].mxu0  ;;  %v1942_v39 = vadd.f32 %v6575_v32, %v7623_v15  ;;  %v2379_v42 = vmax.f32 %v1939_v30, 0.0 }
 0x287   :  { %v2656_v37 = vadd.f32 %v2655_v28, %v2376_v26  ;;  %v2377_v38 = vmax.f32 %v1931_v6, 0.0  ;;  %v1934_v29 = vadd.f32 %v1933_v31, %v7623_v15 }
 0x288   :  { %v2380_v34 = vmax.f32 %v1942_v39, 0.0 }
 0x289   :  { %v2657_v41 = vrot.slane %v2656_v37, 4  ;;  %v2378_v43 = vmax.f32 %v1934_v29, 0.0 }
 0x28b   :  { %v2658_v45 = vadd.f32 %v2657_v41, %v2656_v37  ;;  %v2663_v46 = vadd.f32 %v2378_v43, %v2377_v38  ;;  %v6578_v48 = vpop.f32.mrb[196].mxu0  ;;  %v7193_v38 = vld [vmem:[%s8895_s2 + $0xc8] sm:$0xff]  }
 0x28c   :  { %v1946_v50 = vpop.f32.mrb[197].mxu0  ;;  %v1955_v52 = vadd.f32 %v6578_v48, %v7623_v15  ;;  %6803 = vmatpush3.bf16.msra.mxu1 %v7193_v38 }
 0x28d   :  { %v2659_v51 = vrot.slane %v2658_v45, 2  ;;  %v2664_v44 = vadd.f32 %v2663_v46, %v2379_v42  ;;  %v1947_v55 = vadd.f32 %v1946_v50, %v7623_v15  ;;  %v6579_v22 = vpop.f32.mrb[198].mxu0  ;;  %6804 = vmatprep.subr.bf16.mxu1 %v7352_v49  ;;  %v7194_v50 = vld [vmem:[%s8895_s2 + $0xd0] sm:$0xff]  }
 0x28e   :  { %v1949_v59 = vpop.f32.mrb[199].mxu0  ;;  %v1958_v56 = vadd.f32 %v6579_v22, %v7623_v15  ;;  %v2383_v1 = vmax.f32 %v1955_v52, 0.0 }
 0x28f   :  { %v2660_v60 = vadd.f32 %v2659_v51, %v2658_v45  ;;  %v2381_v53 = vmax.f32 %v1947_v55, 0.0  ;;  %v2665_v61 = vadd.f32 %v2664_v44, %v2380_v34  ;;  %v1950_v57 = vadd.f32 %v1949_v59, %v7623_v15  ;;  %v7195_v59 = vld [vmem:[%s8895_s2 + $0xd8] sm:$0xff]  }
 0x290   :  { %v2384_v62 = vmax.f32 %v1958_v56, 0.0  ;;  %6805 = vmatpush3.bf16.msra.mxu1 %v7194_v50 }
 0x291   :  { %v2661_v40 = vrot.slane %v2660_v60, 1  ;;  %v2666_v2 = vadd.f32 %v2665_v61, %v2381_v53  ;;  %v2382_v3 = vmax.f32 %v1950_v57, 0.0  ;;  %6806 = vmatprep.subr.bf16.mxu1 %v7352_v49 }
 0x293   :  { %v2662_v7 = vadd.f32 %v2661_v40, %v2660_v60  ;;  %v2667_v36 = vadd.f32 %v2666_v2, %v2382_v3  ;;  %v6582_v11 = vpop.f32.mrb[200].mxu0 }
 0x294   :  { %v1962_v13 = vpop.f32.mrb[201].mxu0  ;;  %v1971_v14 = vadd.f32 %v6582_v11, %v7623_v15  ;;  %6807 = vmatpush3.bf16.msra.mxu1 %v7195_v59 }
 0x295   :  { %v2743_v16 = vmul.f32 0.00390625, %v2662_v7  ;;  %v2668_v4 = vadd.f32 %v2667_v36, %v2383_v1  ;;  %v1963_v17 = vadd.f32 %v1962_v13, %v7623_v15  ;;  %v6583_v20 = vpop.f32.mrb[202].mxu0  ;;  %6808 = vmatprep.subr.bf16.mxu1 %v7352_v49 }
 0x296   :  { %v1965_v0 = vpop.f32.mrb[203].mxu0  ;;  %v1974_v32 = vadd.f32 %v6583_v20, %v7623_v15  ;;  %v2387_v29 = vmax.f32 %v1971_v14, 0.0 }
 0x297   :  { %v3675_v24 = vsel %vm3642_vm0, %v2743_v16, %v2742_v5  ;;  %v3677_v26 = vsel %vm3645_vm1, %v2743_v16, %v2742_v5  ;;  %v3679_v27 = vsel %vm3648_vm2, %v2743_v16, %v2742_v5  ;;  %v3681_v21 = vsel %vm3651_vm3, %v2743_v16, %v2742_v5  ;;  %v7196_v5 = vld [vmem:[%s8895_s2 + $0xe0] sm:$0xff]  }
 0x298   :  { %v3683_v23 = vsel %vm3654_vm4, %v3675_v24, %v3677_v26  ;;  %v2385_v28 = vmax.f32 %v1963_v17, 0.0  ;;  %v2669_v30 = vadd.f32 %v2668_v4, %v2384_v62  ;;  %v1966_v35 = vadd.f32 %v1965_v0, %v7623_v15  ;;  %6809 = vmatpush3.bf16.msra.mxu1 %v7196_v5  ;;  %v7197_v17 = vld [vmem:[%s8895_s2 + $0xe8] sm:$0xff]  }
 0x299   :  { %v3684_v6 = vsel %vm3656_vm6, %v3683_v23, %v3679_v27  ;;  %v2388_v25 = vmax.f32 %v1974_v32, 0.0  ;;  %6810 = vmatprep.subr.bf16.mxu1 %v7352_v49 }
 0x29a   :  { %v3685_v31 = vsel %vm3658_vm7, %v3684_v6, %v3681_v21  ;;  %v2670_v37 = vadd.f32 %v2669_v30, %v2385_v28  ;;  %v2386_v41 = vmax.f32 %v1966_v35, 0.0  ;;  %v7198_v28 = vld [vmem:[%s8895_s2 + $0xf0] sm:$0xff]  }
 0x29b   :  { %v5249_v39 = vpack.c.bf16 %v3685_v31, %v7983_v33  ;;  %v6586_v42 = vpop.f32.mrb[204].mxu0 }
 0x29c   :  { %v1978_v43 = vpop.f32.mrb[205].mxu0  ;;  %v2671_v45 = vadd.f32 %v2670_v37, %v2386_v41  ;;  %v1987_v33 = vadd.f32 %v6586_v42, %v7623_v15  ;;  %6811 = vmatpush3.bf16.msra.mxu1 %v7197_v17 }
 0x29d   :  { %6996 = vmatprep.mubr.bf16.mxu0 %v5249_v39  ;;  %v1979_v34 = vadd.f32 %v1978_v43, %v7623_v15  ;;  %v6587_v46 = vpop.f32.mrb[206].mxu0  ;;  %6812 = vmatprep.subr.bf16.mxu1 %v7352_v49  ;;  %v7199_v39 = vld [vmem:[%s8895_s2 + $0xf8] sm:$0xff]  }
 0x29e   :  { %v1981_v48 = vpop.f32.mrb[207].mxu0  ;;  %v2672_v51 = vadd.f32 %v2671_v45, %v2387_v29  ;;  %v1990_v22 = vadd.f32 %v6587_v46, %v7623_v15  ;;  %v2391_v60 = vmax.f32 %v1987_v33, 0.0 }
 0x29f   :  { %v2389_v44 = vmax.f32 %v1979_v34, 0.0  ;;  %v1982_v52 = vadd.f32 %v1981_v48, %v7623_v15 }
 0x2a0   :  { %v2673_v55 = vadd.f32 %v2672_v51, %v2388_v25  ;;  %v2392_v56 = vmax.f32 %v1990_v22, 0.0  ;;  %6813 = vmatpush3.bf16.msra.mxu1 %v7198_v28 }
 0x2a1   :  { %v2390_v58 = vmax.f32 %v1982_v52, 0.0  ;;  %6814 = vmatprep.subr.bf16.mxu1 %v7352_v49 }
 0x2a2   :  { %v2674_v53 = vadd.f32 %v2673_v55, %v2389_v44 }
 0x2a3   :  { %v6590_v61 = vpop.f32.mrb[208].mxu0 }
 0x2a4   :  { %v1994_v57 = vpop.f32.mrb[209].mxu0  ;;  %v2675_v40 = vadd.f32 %v2674_v53, %v2390_v58  ;;  %v2003_v36 = vadd.f32 %v6590_v61, %v7623_v15  ;;  %6815 = vmatpush3.bf16.msra.mxu1 %v7199_v39 }
 0x2a5   :  { %v1995_v1 = vadd.f32 %v1994_v57, %v7623_v15  ;;  %v6591_v2 = vpop.f32.mrb[210].mxu0  ;;  %6820 = vmatprep.subr.bf16.mxu1 %v7352_v49 }
 0x2a6   :  { %v1997_v3 = vpop.f32.mrb[211].mxu0  ;;  %v2676_v7 = vadd.f32 %v2675_v40, %v2391_v60  ;;  %v2006_v16 = vadd.f32 %v6591_v2, %v7623_v15  ;;  %v2395_v20 = vmax.f32 %v2003_v36, 0.0 }
 0x2a7   :  { %v2393_v11 = vmax.f32 %v1995_v1, 0.0  ;;  %v1998_v62 = vadd.f32 %v1997_v3, %v7623_v15 }
 0x2a8   :  { %v2677_v13 = vadd.f32 %v2676_v7, %v2392_v56  ;;  %v2396_v24 = vmax.f32 %v2006_v16, 0.0 }
 0x2a9   :  { %v2394_v4 = vmax.f32 %v1998_v62, 0.0 }
 0x2aa   :  { %v2678_v14 = vadd.f32 %v2677_v13, %v2393_v11 }
 0x2ab   :  { %v6594_v0 = vpop.f32.mrb[212].mxu0 }
 0x2ac   :  { %v2010_v19 = vpop.f32.mrb[213].mxu0  ;;  %v2679_v26 = vadd.f32 %v2678_v14, %v2394_v4  ;;  %v2019_v6 = vadd.f32 %v6594_v0, %v7623_v15 }
 0x2ad   :  { %v2011_v27 = vadd.f32 %v2010_v19, %v7623_v15  ;;  %v6595_v21 = vpop.f32.mrb[214].mxu0 }
 0x2ae   :  { %v2013_v23 = vpop.f32.mrb[215].mxu0  ;;  %v2680_v30 = vadd.f32 %v2679_v26, %v2395_v20  ;;  %v2022_v37 = vadd.f32 %v6595_v21, %v7623_v15  ;;  %v2399_v29 = vmax.f32 %v2019_v6, 0.0 }
 0x2af   :  { %v2397_v32 = vmax.f32 %v2011_v27, 0.0  ;;  %v2014_v35 = vadd.f32 %v2013_v23, %v7623_v15 }
 0x2b0   :  { %v2681_v31 = vadd.f32 %v2680_v30, %v2396_v24  ;;  %v2400_v25 = vmax.f32 %v2022_v37, 0.0 }
 0x2b1   :  { %v2398_v38 = vmax.f32 %v2014_v35, 0.0 }
 0x2b2   :  { %v2682_v41 = vadd.f32 %v2681_v31, %v2397_v32 }
 0x2b3   :  { %v6598_v42 = vpop.f32.mrb[216].mxu0 }
 0x2b4   :  { %v2026_v43 = vpop.f32.mrb[217].mxu0  ;;  %v2683_v45 = vadd.f32 %v2682_v41, %v2398_v38  ;;  %v2035_v51 = vadd.f32 %v6598_v42, %v7623_v15 }
 0x2b5   :  { %v2027_v34 = vadd.f32 %v2026_v43, %v7623_v15  ;;  %v6599_v46 = vpop.f32.mrb[218].mxu0 }
 0x2b6   :  { %v2029_v48 = vpop.f32.mrb[219].mxu0  ;;  %v2684_v50 = vadd.f32 %v2683_v45, %v2399_v29  ;;  %v2038_v55 = vadd.f32 %v6599_v46, %v7623_v15  ;;  %v2403_v58 = vmax.f32 %v2035_v51, 0.0 }
 0x2b7   :  { %v2401_v33 = vmax.f32 %v2027_v34, 0.0  ;;  %v2030_v44 = vadd.f32 %v2029_v48, %v7623_v15 }
 0x2b8   :  { %v2685_v52 = vadd.f32 %v2684_v50, %v2400_v25  ;;  %v2404_v61 = vmax.f32 %v2038_v55, 0.0 }
 0x2b9   :  { %v2402_v22 = vmax.f32 %v2030_v44, 0.0 }
 0x2ba   :  { %v2686_v59 = vadd.f32 %v2685_v52, %v2401_v33 }
 0x2bb   :  { %v6602_v60 = vpop.f32.mrb[220].mxu0 }
 0x2bc   :  { %v2042_v53 = vpop.f32.mrb[221].mxu0  ;;  %v2687_v57 = vadd.f32 %v2686_v59, %v2402_v22  ;;  %v2051_v3 = vadd.f32 %v6602_v60, %v7623_v15 }
 0x2bd   :  { %v2043_v56 = vadd.f32 %v2042_v53, %v7623_v15  ;;  %v6603_v40 = vpop.f32.mrb[222].mxu0 }
 0x2be   :  { %v2045_v1 = vpop.f32.mrb[223].mxu0  ;;  %v2688_v2 = vadd.f32 %v2687_v57, %v2403_v58  ;;  %v2054_v11 = vadd.f32 %v6603_v40, %v7623_v15  ;;  %v2407_v13 = vmax.f32 %v2051_v3, 0.0 }
 0x2bf   :  { %v2405_v5 = vmax.f32 %v2043_v56, 0.0  ;;  %v2046_v7 = vadd.f32 %v2045_v1, %v7623_v15 }
 0x2c0   :  { %v2689_v36 = vadd.f32 %v2688_v2, %v2404_v61  ;;  %v2408_v20 = vmax.f32 %v2054_v11, 0.0 }
 0x2c1   :  { %v2406_v62 = vmax.f32 %v2046_v7, 0.0 }
 0x2c2   :  { %v2690_v16 = vadd.f32 %v2689_v36, %v2405_v5 }
 0x2c3   :  { %v6606_v4 = vpop.f32.mrb[224].mxu0 }
 0x2c4   :  { %v2058_v17 = vpop.f32.mrb[225].mxu0  ;;  %v2691_v14 = vadd.f32 %v2690_v16, %v2406_v62  ;;  %v2067_v0 = vadd.f32 %v6606_v4, %v7623_v15 }
 0x2c5   :  { %v2059_v19 = vadd.f32 %v2058_v17, %v7623_v15  ;;  %v6607_v24 = vpop.f32.mrb[226].mxu0 }
 0x2c6   :  { %v2061_v26 = vpop.f32.mrb[227].mxu0  ;;  %v2692_v27 = vadd.f32 %v2691_v14, %v2407_v13  ;;  %v2070_v23 = vadd.f32 %v6607_v24, %v7623_v15  ;;  %v2411_v6 = vmax.f32 %v2067_v0, 0.0 }
 0x2c7   :  { %v2409_v21 = vmax.f32 %v2059_v19, 0.0  ;;  %v2062_v28 = vadd.f32 %v2061_v26, %v7623_v15 }
 0x2c8   :  { %v8384_v30 = vadd.f32 %v2692_v27, %v2408_v20  ;;  %v2412_v35 = vmax.f32 %v2070_v23, 0.0 }
 0x2c9   :  { %v2410_v32 = vmax.f32 %v2062_v28, 0.0 }
 0x2cb   :  { %v2700_v31 = vadd.f32 %v2410_v32, %v2409_v21  ;;  %v6610_v37 = vpop.f32.mrb[228].mxu0 }
 0x2cc   :  { %v2074_v38 = vpop.f32.mrb[229].mxu0  ;;  %v2083_v29 = vadd.f32 %v6610_v37, %v7623_v15 }
 0x2cd   :  { %v2701_v39 = vadd.f32 %v2700_v31, %v2411_v6  ;;  %v2075_v41 = vadd.f32 %v2074_v38, %v7623_v15  ;;  %v6611_v42 = vpop.f32.mrb[230].mxu0 }
 0x2ce   :  { %v2077_v43 = vpop.f32.mrb[231].mxu0  ;;  %v2086_v34 = vadd.f32 %v6611_v42, %v7623_v15  ;;  %v2415_v48 = vmax.f32 %v2083_v29, 0.0 }
 0x2cf   :  { %v2413_v25 = vmax.f32 %v2075_v41, 0.0  ;;  %v2702_v45 = vadd.f32 %v2701_v39, %v2412_v35  ;;  %v2078_v46 = vadd.f32 %v2077_v43, %v7623_v15  ;;  %v8403_v43 = vsub.s32 2, %v7605_v10 }
 0x2d0   :  { %v2416_v33 = vmax.f32 %v2086_v34, 0.0 }
 0x2d1   :  { %v2703_v50 = vadd.f32 %v2702_v45, %v2413_v25  ;;  %v2414_v51 = vmax.f32 %v2078_v46, 0.0 }
 0x2d3   :  { %v2704_v44 = vadd.f32 %v2703_v50, %v2414_v51  ;;  %v6614_v52 = vpop.f32.mrb[232].mxu0 }
 0x2d4   :  { %v2090_v55 = vpop.f32.mrb[233].mxu0  ;;  %v2099_v58 = vadd.f32 %v6614_v52, %v7623_v15 }
 0x2d5   :  { %v2705_v22 = vadd.f32 %v2704_v44, %v2415_v48  ;;  %v2091_v59 = vadd.f32 %v2090_v55, %v7623_v15  ;;  %v6615_v60 = vpop.f32.mrb[234].mxu0 }
 0x2d6   :  { %v2093_v53 = vpop.f32.mrb[235].mxu0  ;;  %v2102_v56 = vadd.f32 %v6615_v60, %v7623_v15  ;;  %v2419_v1 = vmax.f32 %v2099_v58, 0.0 }
 0x2d7   :  { %v2417_v61 = vmax.f32 %v2091_v59, 0.0  ;;  %v2706_v57 = vadd.f32 %v2705_v22, %v2416_v33  ;;  %v2094_v40 = vadd.f32 %v2093_v53, %v7623_v15  ;;  %v8408_v33 = vld [vmem:[%s8896_s3] sm:$0xff] }
 0x2d8   :  { %v2420_v5 = vmax.f32 %v2102_v56, 0.0  ;;  %v3763_v44 = vrot.slane %v8408_v33, %v8403_v43 }
 0x2d9   :  { %v2707_v2 = vadd.f32 %v2706_v57, %v2417_v61  ;;  %v2418_v3 = vmax.f32 %v2094_v40, 0.0 }
 0x2db   :  { %v2708_v7 = vadd.f32 %v2707_v2, %v2418_v3  ;;  %v6618_v36 = vpop.f32.mrb[236].mxu0 }
 0x2dc   :  { %v2106_v11 = vpop.f32.mrb[237].mxu0  ;;  %v2115_v13 = vadd.f32 %v6618_v36, %v7623_v15 }
 0x2dd   :  { %v2709_v62 = vadd.f32 %v2708_v7, %v2419_v1  ;;  %v2107_v16 = vadd.f32 %v2106_v11, %v7623_v15  ;;  %v6619_v4 = vpop.f32.mrb[238].mxu0 }
 0x2de   :  { %v2109_v17 = vpop.f32.mrb[239].mxu0  ;;  %v2118_v0 = vadd.f32 %v6619_v4, %v7623_v15  ;;  %v2423_v24 = vmax.f32 %v2115_v13, 0.0 }
 0x2df   :  { %v2421_v20 = vmax.f32 %v2107_v16, 0.0  ;;  %v2710_v14 = vadd.f32 %v2709_v62, %v2420_v5  ;;  %v2110_v19 = vadd.f32 %v2109_v17, %v7623_v15 }
 0x2e0   :  { %v2424_v21 = vmax.f32 %v2118_v0, 0.0 }
 0x2e1   :  { %v2711_v26 = vadd.f32 %v2710_v14, %v2421_v20  ;;  %v2422_v27 = vmax.f32 %v2110_v19, 0.0 }
 0x2e3   :  { %v2712_v23 = vadd.f32 %v2711_v26, %v2422_v27  ;;  %v6622_v28 = vpop.f32.mrb[240].mxu0 }
 0x2e4   :  { %v2122_v6 = vpop.f32.mrb[241].mxu0  ;;  %v2131_v35 = vadd.f32 %v6622_v28, %v7623_v15 }
 0x2e5   :  { %v2713_v32 = vadd.f32 %v2712_v23, %v2423_v24  ;;  %v2123_v31 = vadd.f32 %v2122_v6, %v7623_v15  ;;  %v6623_v37 = vpop.f32.mrb[242].mxu0 }
 0x2e6   :  { %v2125_v38 = vpop.f32.mrb[243].mxu0  ;;  %v2134_v41 = vadd.f32 %v6623_v37, %v7623_v15  ;;  %v2427_v25 = vmax.f32 %v2131_v35, 0.0 }
 0x2e7   :  { %v2425_v39 = vmax.f32 %v2123_v31, 0.0  ;;  %v2714_v29 = vadd.f32 %v2713_v32, %v2424_v21  ;;  %v2126_v42 = vadd.f32 %v2125_v38, %v7623_v15 }
 0x2e8   :  { %v2428_v46 = vmax.f32 %v2134_v41, 0.0 }
 0x2e9   :  { %v2715_v45 = vadd.f32 %v2714_v29, %v2425_v39  ;;  %v2426_v34 = vmax.f32 %v2126_v42, 0.0 }
 0x2eb   :  { %v2716_v48 = vadd.f32 %v2715_v45, %v2426_v34  ;;  %v6626_v50 = vpop.f32.mrb[244].mxu0  ;;  %v2694_v45 = vrot.slane %v8384_v30, 4 }
 0x2ec   :  { %v2138_v51 = vpop.f32.mrb[245].mxu0  ;;  %v2147_v55 = vadd.f32 %v6626_v50, %v7623_v15 }
 0x2ed   :  { %v2717_v52 = vadd.f32 %v2716_v48, %v2427_v25  ;;  %v2139_v22 = vadd.f32 %v2138_v51, %v7623_v15  ;;  %v6627_v58 = vpop.f32.mrb[246].mxu0 }
 0x2ee   :  { %v2141_v59 = vpop.f32.mrb[247].mxu0  ;;  %v2150_v61 = vadd.f32 %v6627_v58, %v7623_v15  ;;  %v2431_v2 = vmax.f32 %v2147_v55, 0.0 }
 0x2ef   :  { %v2429_v60 = vmax.f32 %v2139_v22, 0.0  ;;  %v2718_v53 = vadd.f32 %v2717_v52, %v2428_v46  ;;  %v2142_v57 = vadd.f32 %v2141_v59, %v7623_v15 }
 0x2f0   :  { %v3846_v56 = vpop.f32.mrb[128].mxu1  ;;  %v2432_v13 = vmax.f32 %v2150_v61, 0.0 }
 0x2f1   :  { %v3847_v40 = vadd.f32 %v3846_v56, %v3763_v44  ;;  %v6798_v1 = vpop.f32.mrb[129].mxu1  ;;  %v2719_v3 = vadd.f32 %v2718_v53, %v2429_v60  ;;  %v2430_v5 = vmax.f32 %v2142_v57, 0.0  ;;  %v2695_v57 = vadd.f32 %v2694_v45, %v8384_v30 }
 0x2f2   :  { %v3849_v7 = vpop.f32.mrb[130].mxu1 }
 0x2f3   :  { %v3853_v36 = vrot.slane %v3847_v40, 4  ;;  %v3850_v11 = vadd.f32 %v3849_v7, %v3763_v44  ;;  %v6799_v62 = vpop.f32.mrb[131].mxu1  ;;  %v2720_v16 = vadd.f32 %v2719_v3, %v2430_v5  ;;  %v6630_v4 = vpop.f32.mrb[248].mxu0 }
 0x2f4   :  { %v2154_v17 = vpop.f32.mrb[249].mxu0  ;;  %v2163_v26 = vadd.f32 %v6630_v4, %v7623_v15  ;;  %v2696_v4 = vrot.slane %v2695_v57, 2 }
 0x2f5   :  { %v3854_v20 = vadd.f32 %v3853_v36, %v3847_v40  ;;  %v3859_v14 = vrot.slane %v3850_v11, 4  ;;  %v2721_v0 = vadd.f32 %v2720_v16, %v2431_v2  ;;  %v2155_v19 = vadd.f32 %v2154_v17, %v7623_v15  ;;  %v6631_v24 = vpop.f32.mrb[250].mxu0 }
 0x2f6   :  { %v2157_v27 = vpop.f32.mrb[251].mxu0  ;;  %v2166_v32 = vadd.f32 %v6631_v24, %v7623_v15  ;;  %v2435_v39 = vmax.f32 %v2163_v26, 0.0 }
 0x2f7   :  { %v3855_v21 = vrot.slane %v3854_v20, 2  ;;  %v3860_v23 = vadd.f32 %v3859_v14, %v3850_v11  ;;  %v2433_v28 = vmax.f32 %v2155_v19, 0.0  ;;  %v2722_v6 = vadd.f32 %v2721_v0, %v2432_v13 }
 0x2f8   :  { %v2158_v35 = vadd.f32 %v2157_v27, %v7623_v15  ;;  %v2436_v34 = vmax.f32 %v2166_v32, 0.0 }
 0x2f9   :  { %v3856_v31 = vadd.f32 %v3855_v21, %v3854_v20  ;;  %v3861_v37 = vrot.slane %v3860_v23, 2  ;;  %v2723_v38 = vadd.f32 %v2722_v6, %v2433_v28 }
 0x2fa   :  { %v2434_v29 = vmax.f32 %v2158_v35, 0.0 }
 0x2fb   :  { %v3857_v41 = vrot.slane %v3856_v31, 1  ;;  %v3862_v42 = vadd.f32 %v3861_v37, %v3860_v23  ;;  %v6634_v25 = vpop.f32.mrb[252].mxu0 }
 0x2fc   :  { %v2724_v46 = vadd.f32 %v2723_v38, %v2434_v29  ;;  %v2170_v48 = vpop.f32.mrb[253].mxu0  ;;  %v2179_v22 = vadd.f32 %v6634_v25, %v7623_v15 }
 0x2fd   :  { %v3858_v50 = vadd.f32 %v3857_v41, %v3856_v31  ;;  %v3863_v51 = vrot.slane %v3862_v42, 1  ;;  %v2171_v44 = vadd.f32 %v2170_v48, %v7623_v15  ;;  %v6635_v52 = vpop.f32.mrb[254].mxu0 }
 0x2fe   :  { %v2725_v55 = vadd.f32 %v2724_v46, %v2435_v39  ;;  %v2173_v58 = vpop.f32.mrb[255].mxu0  ;;  %v2182_v1 = vadd.f32 %v6635_v52, %v7623_v15  ;;  %v2439_v7 = vmax.f32 %v2179_v22, 0.0 }
 0x2ff   :  { %v3866_v59 = vmul.f32 0.125, %v3858_v50  ;;  %v3864_v60 = vadd.f32 %v3863_v51, %v3862_v42  ;;  %v2437_v53 = vmax.f32 %v2171_v44, 0.0  ;;  %v2174_v61 = vadd.f32 %v2173_v58, %v7623_v15 }
 0x300   :  { %v2726_v56 = vadd.f32 %v2725_v55, %v2436_v34  ;;  %v2440_v17 = vmax.f32 %v2182_v1, 0.0  ;;  %v8441_v1 = vsub.s32 4, %v7605_v10 }
 0x301   :  { %v3868_v2 = vsub.f32 %v3847_v40, %v3866_v59  ;;  %v3867_v3 = vmul.f32 0.125, %v3864_v60  ;;  %v2438_v5 = vmax.f32 %v2174_v61, 0.0  ;;  %v2697_v40 = vadd.f32 %v2696_v4, %v2695_v57 }
 0x302   :  { %v2727_v36 = vadd.f32 %v2726_v56, %v2437_v53  ;;  %v8434_v61 = vsub.s32 3, %v7605_v10 }
 0x303   :  { %v3870_v62 = vmul.f32 %v3868_v2, %v3868_v2  ;;  %v3869_v13 = vsub.f32 %v3850_v11, %v3867_v3  ;;  %v8426_v16 = vpop.f32.mrb[0].mxu0  ;;  %v2698_v35 = vrot.slane %v2697_v40, 1 }
 0x304   :  { %v2728_v20 = vadd.f32 %v2727_v36, %v2438_v5  ;;  %v6958_v14 = vpop.f32.mrb[1].mxu0  ;;  %v3895_v3 = vrot.slane %v8408_v33, %v8434_v61  ;;  %v3901_v36 = vrot.slane %v8408_v33, %v8441_v1 }
 0x305   :  { %v3872_v0 = vrot.slane %v3870_v62, 4  ;;  %v3871_v19 = vmul.f32 %v3869_v13, %v3869_v13  ;;  %v4998_v24 = vpop.f32.mrb[2].mxu0  ;;  %v2699_v42 = vadd.f32 %v2698_v35, %v2697_v40  ;;  %v7205_v40 = vld [vmem:[%s8895_s2 + $0x128] sm:$0xff]  }
 0x306   :  { %v2729_v30 = vadd.f32 %v2728_v20, %v2439_v7  ;;  %v6959_v26 = vpop.f32.mrb[3].mxu0 }
 0x307   :  { %v3873_v27 = vadd.f32 %v3872_v0, %v3870_v62  ;;  %v3878_v15 = vrot.slane %v3871_v19, 4  ;;  %v2744_v51 = vmul.f32 0.00390625, %v2699_v42  ;;  %v7210_v42 = vld [vmem:[%s8895_s2 + $0x150] sm:$0xff]  }
 0x308   :  { %v2730_v21 = vadd.f32 %v2729_v30, %v2440_v17  ;;  %v7200_v30 = vld [vmem:[%s8895_s2 + $0x100] sm:$0xff]  }
 0x309   :  { %v3874_v23 = vrot.slane %v3873_v27, 2  ;;  %v3879_v28 = vadd.f32 %v3878_v15, %v3871_v19  ;;  %v7204_v15 = vld [vmem:[%s8895_s2 + $0x120] sm:$0xff]  }
 0x30a   :  { %v2731_v6 = vrot.slane %v2730_v21, 4 }
 0x30b   :  { %v3875_v32 = vadd.f32 %v3874_v23, %v3873_v27  ;;  %v3880_v11 = vrot.slane %v3879_v28, 2  ;;  %v7203_v27 = vld [vmem:[%s8895_s2 + $0x118] sm:$0xff]  }
 0x30c   :  { %v2732_v31 = vadd.f32 %v2731_v6, %v2730_v21  ;;  %v7206_v21 = vld [vmem:[%s8895_s2 + $0x130] sm:$0xff]   ;;  %v7207_v23 = vld [vmem:[%s8895_s2 + $0x138] sm:$0xff]  }
 0x30d   :  { %v3876_v37 = vrot.slane %v3875_v32, 1  ;;  %v3881_v38 = vadd.f32 %v3880_v11, %v3879_v28  ;;  %v8482_v28 = vsub.s32 5, %v7605_v10 }
 0x30e   :  { %v2733_v39 = vrot.slane %v2732_v31, 2 }
 0x30f   :  { %v3877_v29 = vadd.f32 %v3876_v37, %v3875_v32  ;;  %v3882_v41 = vrot.slane %v3881_v38, 1  ;;  %v3910_v6 = vrot.slane %v8408_v33, %v8482_v28 }
 0x310   :  { %v2734_v25 = vadd.f32 %v2733_v39, %v2732_v31 }
 0x311   :  { %v3884_v45 = vmul.f32 0.125, %v3877_v29  ;;  %v3883_v34 = vadd.f32 %v3882_v41, %v3881_v38  ;;  %v7208_v29 = vld [vmem:[%s8895_s2 + $0x140] sm:$0xff]   ;;  %v7209_v41 = vld [vmem:[%s8895_s2 + $0x148] sm:$0xff]  }
 0x312   :  { %v2735_v46 = vrot.slane %v2734_v25, 1 }
 0x313   :  { %v3886_v48 = vadd.f32 1e-05, %v3884_v45  ;;  %v3885_v50 = vmul.f32 0.125, %v3883_v34  ;;  %v7212_v45 = vld [vmem:[%s8895_s2 + $0x160] sm:$0xff]   ;;  %v7213_v34 = vld [vmem:[%s8895_s2 + $0x168] sm:$0xff]  }
 0x314   :  { %v2736_v44 = vadd.f32 %v2735_v46, %v2734_v25  ;;  %v7211_v25 = vld [vmem:[%s8895_s2 + $0x158] sm:$0xff]   ;;  %v7214_v46 = vld [vmem:[%s8895_s2 + $0x170] sm:$0xff]  }
 0x315   :  { %7272 = vrsqrt.f32 %v3886_v48  ;;  %v3887_v52 = vadd.f32 1e-05, %v3885_v50  ;;  %v7215_v48 = vld [vmem:[%s8895_s2 + $0x178] sm:$0xff]   ;;  %v8521_v50 = vsub.s32 6, %v7605_v10 }
 0x316   :  { %v2745_v55 = vmul.f32 0.00390625, %v2736_v44 }
 0x317   :  { %7274 = vrsqrt.f32 %v3887_v52 }
 0x318   :  { %v3688_v22 = vsel %vm3642_vm0, %v2745_v55, %v2744_v51  ;;  %v3690_v58 = vsel %vm3645_vm1, %v2745_v55, %v2744_v51  ;;  %v3692_v59 = vsel %vm3648_vm2, %v2745_v55, %v2744_v51  ;;  %v3694_v60 = vsel %vm3651_vm3, %v2745_v55, %v2744_v51 }
 0x319   :  { %v3696_v53 = vsel %vm3654_vm4, %v3688_v22, %v3690_v58  ;;  %v4038_v51 = vrot.slane %v8408_v33, %v8521_v50 }
 0x31a   :  { %v3697_v57 = vsel %vm3656_vm6, %v3696_v53, %v3692_v59 }
 0x31b   :  { %v8438_v56 = vsel %vm3658_vm7, %v3697_v57, %v3694_v60 }
 0x31f   :  { %v7273_v5 = vpop.eup %7272 }
 0x320   :  { %v3890_v7 = vmul.f32 %v7273_v5, %v3868_v2  ;;  %v7201_v2 = vld [vmem:[%s8895_s2 + $0x108] sm:$0xff]  }
 0x321   :  { %v7275_v62 = vpop.eup %7274 }
 0x322   :  { %v3896_v4 = vmul.f32 %v3895_v3, %v3890_v7  ;;  %v3891_v17 = vmul.f32 %v7275_v62, %v3869_v13  ;;  %v7202_v13 = vld [vmem:[%s8895_s2 + $0x110] sm:$0xff]  }
 0x324   :  { %v3897_v20 = vmul.f32 %v3895_v3, %v3891_v17  ;;  %v3902_v14 = vadd.f32 %v3901_v36, %v3896_v4 }
 0x326   :  { %v3903_v0 = vadd.f32 %v3901_v36, %v3897_v20  ;;  %v3904_v19 = vmax.f32 %v3902_v14, 0.0 }
 0x328   :  { %v3905_v24 = vmax.f32 %v3903_v0, 0.0 }
 0x32a   :  { %v3906_v26 = vpack.c.bf16 %v3905_v24, %v3904_v19 }
 0x32c   :  { %6817 = vmatmul.mubr.bf16.vlgmr.msra.gmra.mrb[132].mxu1 %v3906_v26 }
 0x32d   :  { %6821 = vmatpush3.bf16.msra.mxu1 %v7200_v30  ;;  %6836 = vmatprep.mubr.msk.bf16.mxu1 %vm7353_vm5, %v7352_v49 }
 0x32e   :  { %6822 = vmatprep.subr.bf16.mxu1 %v7352_v49 }
 0x331   :  { %6823 = vmatpush3.bf16.msra.mxu1 %v7201_v2 }
 0x332   :  { %6824 = vmatprep.subr.bf16.mxu1 %v7352_v49 }
 0x335   :  { %6825 = vmatpush3.bf16.msra.mxu1 %v7202_v13 }
 0x336   :  { %6826 = vmatprep.subr.bf16.mxu1 %v7352_v49 }
 0x339   :  { %6827 = vmatpush3.bf16.msra.mxu1 %v7203_v27 }
 0x33a   :  { %6828 = vmatprep.subr.bf16.mxu1 %v7352_v49 }
 0x33d   :  { %6829 = vmatpush3.bf16.msra.mxu1 %v7204_v15 }
 0x33e   :  { %6830 = vmatprep.subr.bf16.mxu1 %v7352_v49 }
 0x341   :  { %6831 = vmatpush3.bf16.msra.mxu1 %v7205_v40 }
 0x342   :  { %6832 = vmatprep.subr.bf16.mxu1 %v7352_v49 }
 0x345   :  { %6833 = vmatpush3.bf16.msra.mxu1 %v7206_v21 }
 0x346   :  { %6834 = vmatprep.subr.bf16.mxu1 %v7352_v49 }
 0x349   :  { %6835 = vmatpush3.bf16.msra.mxu1 %v7207_v23 }
 0x34a   :  { %6840 = vmatprep.subr.bf16.mxu1 %v7352_v49 }
 0x3ff   :  { %v3993_v32 = vpop.f32.mrb[132].mxu1 }
 0x400   :  { %v6818_v11 = vpop.f32.mrb[133].mxu1  ;;  %v3994_v31 = vadd.f32 %v3993_v32, %v3910_v6 }
 0x401   :  { %v3996_v35 = vpop.f32.mrb[134].mxu1 }
 0x402   :  { %v3997_v37 = vadd.f32 %v3996_v35, %v3910_v6  ;;  %v6819_v38 = vpop.f32.mrb[135].mxu1 }
 0x404   :  { %v4034_v39 = vpack.c.bf16 %v3997_v37, %v3994_v31 }
 0x406   :  { %6837 = vmatmul.mubr.bf16.vlgmr.msra.gmra.mrb[136].mxu1 %v4034_v39 }
 0x407   :  { %6856 = vmatprep.mubr.msk.bf16.mxu1 %vm7353_vm5, %v7352_v49  ;;  %6841 = vmatpush3.bf16.msra.mxu1 %v7208_v29 }
 0x408   :  { %6842 = vmatprep.subr.bf16.mxu1 %v7352_v49 }
 0x40b   :  { %6843 = vmatpush3.bf16.msra.mxu1 %v7209_v41 }
 0x40c   :  { %6844 = vmatprep.subr.bf16.mxu1 %v7352_v49 }
 0x40f   :  { %6845 = vmatpush3.bf16.msra.mxu1 %v7210_v42  ;;  %v8526_v42 = vsub.s32 7, %v7605_v10 }
 0x410   :  { %6846 = vmatprep.subr.bf16.mxu1 %v7352_v49 }
 0x413   :  { %6847 = vmatpush3.bf16.msra.mxu1 %v7211_v25  ;;  %v8531_v25 = vld [vmem:[%s8896_s3 + $0x8] sm:$0xff] }
 0x414   :  { %6848 = vmatprep.subr.bf16.mxu1 %v7352_v49 }
 0x417   :  { %6849 = vmatpush3.bf16.msra.mxu1 %v7212_v45  ;;  %v4169_v45 = vrot.slane %v8408_v33, %v8526_v42  ;;  %v7217_v33 = vld [vmem:[%s8895_s2 + $0x308] sm:$0xff]  }
 0x418   :  { %6850 = vmatprep.subr.bf16.mxu1 %v7352_v49 }
 0x41b   :  { %6851 = vmatpush3.bf16.msra.mxu1 %v7213_v34 }
 0x41c   :  { %6852 = vmatprep.subr.bf16.mxu1 %v7352_v49 }
 0x41f   :  { %6853 = vmatpush3.bf16.msra.mxu1 %v7214_v46 }
 0x420   :  { %6854 = vmatprep.subr.bf16.mxu1 %v7352_v49 }
 0x423   :  { %6855 = vmatpush3.bf16.msra.mxu1 %v7215_v48  ;;  %v4175_v48 = vrot.slane %v8531_v25, %v7611_v12 }
 0x424   :  { %6860 = vmatprep.subr.bf16.mxu1 %v7352_v49 }
 0x4d9   :  { %v4121_v44 = vpop.f32.mrb[136].mxu1 }
 0x4da   :  { %v4122_v52 = vadd.f32 %v4121_v44, %v4038_v51  ;;  %v6838_v55 = vpop.f32.mrb[137].mxu1 }
 0x4db   :  { %v4124_v22 = vpop.f32.mrb[138].mxu1 }
 0x4dc   :  { %v4128_v58 = vrot.slane %v4122_v52, 4  ;;  %v4125_v59 = vadd.f32 %v4124_v22, %v4038_v51  ;;  %v6839_v60 = vpop.f32.mrb[139].mxu1 }
 0x4de   :  { %v4129_v53 = vadd.f32 %v4128_v58, %v4122_v52  ;;  %v4134_v57 = vrot.slane %v4125_v59, 4 }
 0x4e0   :  { %v4130_v3 = vrot.slane %v4129_v53, 2  ;;  %v4135_v5 = vadd.f32 %v4134_v57, %v4125_v59 }
 0x4e2   :  { %v4131_v7 = vadd.f32 %v4130_v3, %v4129_v53  ;;  %v4136_v36 = vrot.slane %v4135_v5, 2  ;;  %v7216_v53 = vld [vmem:[%s8895_s2 + $0x300] sm:$0xff]   ;;  %v7218_v3 = vld [vmem:[%s8895_s2 + $0x310] sm:$0xff]  }
 0x4e4   :  { %v4132_v62 = vrot.slane %v4131_v7, 1  ;;  %v4137_v4 = vadd.f32 %v4136_v36, %v4135_v5  ;;  %v7219_v5 = vld [vmem:[%s8895_s2 + $0x318] sm:$0xff]   ;;  %v7221_v36 = vld [vmem:[%s8895_s2 + $0x328] sm:$0xff]  }
 0x4e6   :  { %v4133_v17 = vadd.f32 %v4132_v62, %v4131_v7  ;;  %v4138_v20 = vrot.slane %v4137_v4, 1  ;;  %v7220_v7 = vld [vmem:[%s8895_s2 + $0x320] sm:$0xff]   ;;  %v7222_v62 = vld [vmem:[%s8895_s2 + $0x330] sm:$0xff]  }
 0x4e8   :  { %v4140_v14 = vmul.f32 0.125, %v4133_v17  ;;  %v4139_v0 = vadd.f32 %v4138_v20, %v4137_v4  ;;  %v7223_v4 = vld [vmem:[%s8895_s2 + $0x338] sm:$0xff]   ;;  %v7224_v17 = vld [vmem:[%s8895_s2 + $0x340] sm:$0xff]   ;;  %v7225_v20 = vld [vmem:[%s8895_s2 + $0x348] sm:$0xff]  }
 0x4ea   :  { %v4142_v19 = vsub.f32 %v4122_v52, %v4140_v14  ;;  %v4141_v24 = vmul.f32 0.125, %v4139_v0  ;;  %v7229_v14 = vld [vmem:[%s8895_s2 + $0x368] sm:$0xff]   ;;  %v7230_v0 = vld [vmem:[%s8895_s2 + $0x370] sm:$0xff]  }
 0x4ec   :  { %v4144_v30 = vmul.f32 %v4142_v19, %v4142_v19  ;;  %v4143_v26 = vsub.f32 %v4125_v59, %v4141_v24  ;;  %v4184_v24 = vrot.slane %v8531_v25, %v7657_v63 }
 0x4ee   :  { %v4146_v2 = vrot.slane %v4144_v30, 4  ;;  %v4145_v13 = vmul.f32 %v4143_v26, %v4143_v26 }
 0x4f0   :  { %v4147_v27 = vadd.f32 %v4146_v2, %v4144_v30  ;;  %v4152_v15 = vrot.slane %v4145_v13, 4 }
 0x4f2   :  { %v4148_v40 = vrot.slane %v4147_v27, 2  ;;  %v4153_v21 = vadd.f32 %v4152_v15, %v4145_v13 }
 0x4f4   :  { %v4149_v23 = vadd.f32 %v4148_v40, %v4147_v27  ;;  %v4154_v6 = vrot.slane %v4153_v21, 2 }
 0x4f6   :  { %v4150_v32 = vrot.slane %v4149_v23, 1  ;;  %v4155_v11 = vadd.f32 %v4154_v6, %v4153_v21  ;;  %v8619_v21 = vld [vmem:[%s8896_s3 + $0x10] sm:$0xff] }
 0x4f8   :  { %v4151_v35 = vadd.f32 %v4150_v32, %v4149_v23  ;;  %v4156_v31 = vrot.slane %v4155_v11, 1  ;;  %v4312_v23 = vrot.slane %v8619_v21, %v8521_v50 }
 0x4fa   :  { %v4158_v37 = vmul.f32 0.125, %v4151_v35  ;;  %v4157_v38 = vadd.f32 %v4156_v31, %v4155_v11  ;;  %v7240_v31 = vld [vmem:[%s8895_s2 + $0x180] sm:$0xff]  }
 0x4fb   :  { %6980 = vmatprep.subr.bf16.mxu0 %v7240_v31 }
 0x4fc   :  { %v4160_v39 = vadd.f32 1e-05, %v4158_v37  ;;  %v4159_v29 = vmul.f32 0.125, %v4157_v38  ;;  %v7241_v37 = vld [vmem:[%s8895_s2 + $0x188] sm:$0xff]   ;;  %6981 = vmatpush3.bf16.msra.mxu0 %v7240_v31  ;;  %v4443_v31 = vrot.slane %v8619_v21, %v8526_v42 }
 0x4fd   :  { %6982 = vmatprep.subr.bf16.mxu0 %v7241_v37 }
 0x4fe   :  { %7276 = vrsqrt.f32 %v4160_v39  ;;  %v4161_v41 = vadd.f32 1e-05, %v4159_v29 }
 0x500   :  { %7278 = vrsqrt.f32 %v4161_v41  ;;  %6983 = vmatpush3.bf16.msra.mxu0 %v7241_v37 }
 0x508   :  { %v7277_v34 = vpop.eup %7276 }
 0x509   :  { %v4164_v46 = vmul.f32 %v7277_v34, %v4142_v19  ;;  %v7231_v19 = vld [vmem:[%s8895_s2 + $0x378] sm:$0xff]   ;;  %v7242_v34 = vld [vmem:[%s8895_s2 + $0x190] sm:$0xff]  }
 0x50a   :  { %v7279_v51 = vpop.eup %7278  ;;  %6984 = vmatprep.subr.bf16.mxu0 %v7242_v34 }
 0x50b   :  { %v4170_v44 = vmul.f32 %v4169_v45, %v4164_v46  ;;  %v4165_v52 = vmul.f32 %v7279_v51, %v4143_v26  ;;  %6985 = vmatpush3.bf16.msra.mxu0 %v7242_v34 }
 0x50d   :  { %v4171_v55 = vmul.f32 %v4169_v45, %v4165_v52  ;;  %v4176_v22 = vadd.f32 %v4175_v48, %v4170_v44  ;;  %v7243_v52 = vld [vmem:[%s8895_s2 + $0x198] sm:$0xff]  }
 0x50e   :  { %6986 = vmatprep.subr.bf16.mxu0 %v7243_v52 }
 0x50f   :  { %v4177_v58 = vadd.f32 %v4175_v48, %v4171_v55  ;;  %v4178_v59 = vmax.f32 %v4176_v22, 0.0  ;;  %6987 = vmatpush3.bf16.msra.mxu0 %v7243_v52 }
 0x511   :  { %v4179_v60 = vmax.f32 %v4177_v58, 0.0 }
 0x513   :  { %v4180_v57 = vpack.c.bf16 %v4179_v60, %v4178_v59  ;;  %v7244_v60 = vld [vmem:[%s8895_s2 + $0x1a0] sm:$0xff]  }
 0x514   :  { %6988 = vmatprep.subr.bf16.mxu0 %v7244_v60 }
 0x515   :  { %6857 = vmatmul.mubr.bf16.vlgmr.msra.gmra.mrb[140].mxu1 %v4180_v57  ;;  %6989 = vmatpush3.bf16.msra.mxu0 %v7244_v60  ;;  %v7237_v60 = vld [vmem:[%s8895_s2 + $0x228] sm:$0xff]  }
 0x516   :  { %6861 = vmatpush3.bf16.msra.mxu1 %v7216_v53  ;;  %6876 = vmatprep.mubr.msk.bf16.mxu1 %vm7353_vm5, %v7352_v49 }
 0x517   :  { %6862 = vmatprep.subr.bf16.mxu1 %v7352_v49 }
 0x51a   :  { %6863 = vmatpush3.bf16.msra.mxu1 %v7217_v33 }
 0x51b   :  { %6864 = vmatprep.subr.bf16.mxu1 %v7352_v49 }
 0x51e   :  { %6865 = vmatpush3.bf16.msra.mxu1 %v7218_v3 }
 0x51f   :  { %6866 = vmatprep.subr.bf16.mxu1 %v7352_v49 }
 0x522   :  { %6867 = vmatpush3.bf16.msra.mxu1 %v7219_v5  ;;  %v7245_v5 = vld [vmem:[%s8895_s2 + $0x1a8] sm:$0xff]  }
 0x523   :  { %6868 = vmatprep.subr.bf16.mxu1 %v7352_v49  ;;  %6990 = vmatprep.subr.bf16.mxu0 %v7245_v5 }
 0x524   :  { %6991 = vmatpush3.bf16.msra.mxu0 %v7245_v5  ;;  %v7251_v5 = vld [vmem:[%s8895_s2 + $0x258] sm:$0xff]  }
 0x526   :  { %6869 = vmatpush3.bf16.msra.mxu1 %v7220_v7 }
 0x527   :  { %6870 = vmatprep.subr.bf16.mxu1 %v7352_v49 }
 0x52a   :  { %6871 = vmatpush3.bf16.msra.mxu1 %v7221_v36 }
 0x52b   :  { %6872 = vmatprep.subr.bf16.mxu1 %v7352_v49 }
 0x52e   :  { %6873 = vmatpush3.bf16.msra.mxu1 %v7222_v62 }
 0x52f   :  { %6874 = vmatprep.subr.bf16.mxu1 %v7352_v49 }
 0x532   :  { %6875 = vmatpush3.bf16.msra.mxu1 %v7223_v4 }
 0x533   :  { %6880 = vmatprep.subr.bf16.mxu1 %v7352_v49 }
 0x535   :  { %6877 = vmatmul.mubr.bf16.vlgmr.msra.gmra.mrb[144].mxu1 %v4308_v18  ;;  %v7228_v18 = vld [vmem:[%s8895_s2 + $0x360] sm:$0xff]  }
 0x536   :  { %6896 = vmatprep.mubr.msk.bf16.mxu1 %vm7353_vm5, %v7352_v49  ;;  %6881 = vmatpush3.bf16.msra.mxu1 %v7224_v17  ;;  %v7246_v17 = vld [vmem:[%s8895_s2 + $0x1b0] sm:$0xff]  }
 0x537   :  { %6882 = vmatprep.subr.bf16.mxu1 %v7352_v49  ;;  %6992 = vmatprep.subr.bf16.mxu0 %v7246_v17 }
 0x538   :  { %6993 = vmatpush3.bf16.msra.mxu0 %v7246_v17 }
 0x53a   :  { %6883 = vmatpush3.bf16.msra.mxu1 %v7225_v20 }
 0x53b   :  { %6884 = vmatprep.subr.bf16.mxu1 %v7352_v49 }
 0x53e   :  { %6885 = vmatpush3.bf16.msra.mxu1 %v7226_v8 }
 0x53f   :  { %6886 = vmatprep.subr.bf16.mxu1 %v7352_v49 }
 0x542   :  { %6887 = vmatpush3.bf16.msra.mxu1 %v7227_v47 }
 0x543   :  { %6888 = vmatprep.subr.bf16.mxu1 %v7352_v49 }
 0x546   :  { %6889 = vmatpush3.bf16.msra.mxu1 %v7228_v18 }
 0x547   :  { %6890 = vmatprep.subr.bf16.mxu1 %v7352_v49 }
 0x54a   :  { %6891 = vmatpush3.bf16.msra.mxu1 %v7229_v14  ;;  %v7247_v14 = vld [vmem:[%s8895_s2 + $0x1b8] sm:$0xff]  }
 0x54b   :  { %6892 = vmatprep.subr.bf16.mxu1 %v7352_v49  ;;  %6994 = vmatprep.subr.bf16.mxu0 %v7247_v14 }
 0x54c   :  { %6995 = vmatpush3.bf16.msra.mxu0 %v7247_v14 }
 0x54e   :  { %6893 = vmatpush3.bf16.msra.mxu1 %v7230_v0 }
 0x54f   :  { %6894 = vmatprep.subr.bf16.mxu1 %v7352_v49 }
 0x552   :  { %6895 = vmatpush3.bf16.msra.mxu1 %v7231_v19 }
 0x553   :  { %6900 = vmatprep.subr.bf16.mxu1 %v7352_v49 }
 0x5e8   :  { %v4267_v30 = vpop.f32.mrb[140].mxu1 }
 0x5e9   :  { %v8610_v26 = vadd.f32 %v4267_v30, %v4184_v24  ;;  %v6858_v2 = vpop.f32.mrb[141].mxu1 }
 0x5ea   :  { %v4270_v13 = vpop.f32.mrb[142].mxu1 }
 0x5eb   :  { %v8612_v27 = vadd.f32 %v4270_v13, %v4184_v24  ;;  %v6859_v15 = vpop.f32.mrb[143].mxu1  ;;  %v4548_v40 = vmul.f32 %v8610_v26, %v8610_v26 }
 0x5ec   :  { %v5250_v15 = vpack.c.bf16 %v8438_v56, %v8438_v56 }
 0x5ed   :  { %4549 = vadd.xlane.f32.xlu1 %v4548_v40 }
 0x5ee   :  { %6997 = vmatmul.mubr.bf16.vlgmr.msra.gmra.mrb[4].mxu0 %v5250_v15 }
 0x608   :  { %v4395_v6 = vpop.f32.mrb[144].mxu1 }
 0x609   :  { %v4396_v32 = vadd.f32 %v4395_v6, %v4312_v23  ;;  %v6878_v11 = vpop.f32.mrb[145].mxu1 }
 0x60a   :  { %v4398_v35 = vpop.f32.mrb[146].mxu1 }
 0x60b   :  { %v4402_v38 = vrot.slane %v4396_v32, 4  ;;  %v4399_v39 = vadd.f32 %v4398_v35, %v4312_v23  ;;  %v6879_v29 = vpop.f32.mrb[147].mxu1  ;;  %v8652_v35 = vld [vmem:[%s8896_s3 + $0x18] sm:$0x3] }
 0x60c   :  { %v4449_v56 = vrot.slane %v8652_v35, %v7611_v12 }
 0x60d   :  { %v4403_v41 = vadd.f32 %v4402_v38, %v4396_v32  ;;  %v4408_v45 = vrot.slane %v4399_v39, 4 }
 0x60f   :  { %v4404_v46 = vrot.slane %v4403_v41, 2  ;;  %v4409_v48 = vadd.f32 %v4408_v45, %v4399_v39 }
 0x611   :  { %v4405_v51 = vadd.f32 %v4404_v46, %v4403_v41  ;;  %v4410_v44 = vrot.slane %v4409_v48, 2 }
 0x613   :  { %v4406_v55 = vrot.slane %v4405_v51, 1  ;;  %v4411_v22 = vadd.f32 %v4410_v44, %v4409_v48  ;;  %v7232_v44 = vld [vmem:[%s8895_s2 + $0x200] sm:$0xff]  }
 0x615   :  { %v4407_v58 = vadd.f32 %v4406_v55, %v4405_v51  ;;  %v4412_v59 = vrot.slane %v4411_v22, 1  ;;  %v7233_v55 = vld [vmem:[%s8895_s2 + $0x208] sm:$0xff]  }
 0x617   :  { %v4414_v53 = vmul.f32 0.125, %v4407_v58  ;;  %v4413_v57 = vadd.f32 %v4412_v59, %v4411_v22  ;;  %v7234_v22 = vld [vmem:[%s8895_s2 + $0x210] sm:$0xff]   ;;  %v7235_v58 = vld [vmem:[%s8895_s2 + $0x218] sm:$0xff]   ;;  %v7236_v59 = vld [vmem:[%s8895_s2 + $0x220] sm:$0xff]  }
 0x619   :  { %v4416_v33 = vsub.f32 %v4396_v32, %v4414_v53  ;;  %v4415_v3 = vmul.f32 0.125, %v4413_v57  ;;  %v7238_v53 = vld [vmem:[%s8895_s2 + $0x230] sm:$0xff]   ;;  %v7239_v57 = vld [vmem:[%s8895_s2 + $0x238] sm:$0xff]  }
 0x61b   :  { %v4418_v7 = vmul.f32 %v4416_v33, %v4416_v33  ;;  %v4417_v36 = vsub.f32 %v4399_v39, %v4415_v3  ;;  %v7249_v3 = vld [vmem:[%s8895_s2 + $0x248] sm:$0xff]  }
 0x61d   :  { %v4420_v62 = vrot.slane %v4418_v7, 4  ;;  %v4419_v4 = vmul.f32 %v4417_v36, %v4417_v36 }
 0x61f   :  { %v4421_v20 = vadd.f32 %v4420_v62, %v4418_v7  ;;  %v4426_v8 = vrot.slane %v4419_v4, 4  ;;  %v7252_v7 = vld [vmem:[%s8895_s2 + $0x260] sm:$0xff]   ;;  %v7254_v62 = vld [vmem:[%s8895_s2 + $0x270] sm:$0xff]  }
 0x621   :  { %v4422_v47 = vrot.slane %v4421_v20, 2  ;;  %v4427_v18 = vadd.f32 %v4426_v8, %v4419_v4  ;;  %v7255_v4 = vld [vmem:[%s8895_s2 + $0x278] sm:$0xff]  }
 0x623   :  { %v4423_v0 = vadd.f32 %v4422_v47, %v4421_v20  ;;  %v4428_v19 = vrot.slane %v4427_v18, 2  ;;  %v4458_v20 = vrot.slane %v8652_v35, %v7657_v63 }
 0x625   :  { %v4424_v24 = vrot.slane %v4423_v0, 1  ;;  %v4429_v30 = vadd.f32 %v4428_v19, %v4427_v18 }
 0x627   :  { %v4425_v2 = vadd.f32 %v4424_v24, %v4423_v0  ;;  %v4430_v13 = vrot.slane %v4429_v30, 1 }
 0x629   :  { %v4432_v40 = vmul.f32 0.125, %v4425_v2  ;;  %v4431_v23 = vadd.f32 %v4430_v13, %v4429_v30  ;;  %v4912_v30 = vrot.slane %v8619_v21, %v8403_v43 }
 0x62b   :  { %v4434_v6 = vadd.f32 1e-05, %v4432_v40  ;;  %v4433_v32 = vmul.f32 0.125, %v4431_v23  ;;  %v4996_v2 = vadd.f32 %v8426_v16, %v4912_v30  ;;  %v4663_v40 = vrot.slane %v8531_v25, %v8521_v50 }
 0x62d   :  { %7280 = vrsqrt.f32 %v4434_v6  ;;  %v4435_v11 = vadd.f32 1e-05, %v4433_v32  ;;  %v5001_v13 = vrot.slane %v4996_v2, 4 }
 0x62f   :  { %7282 = vrsqrt.f32 %v4435_v11  ;;  %v5002_v15 = vadd.f32 %v5001_v13, %v4996_v2 }
 0x631   :  { %v5003_v23 = vrot.slane %v5002_v15, 2 }
 0x637   :  { %v7281_v37 = vpop.eup %7280 }
 0x638   :  { %v4438_v38 = vmul.f32 %v7281_v37, %v4416_v33  ;;  %v7248_v33 = vld [vmem:[%s8895_s2 + $0x240] sm:$0xff]  }
 0x639   :  { %v7283_v39 = vpop.eup %7282 }
 0x63a   :  { %v4444_v29 = vmul.f32 %v4443_v31, %v4438_v38  ;;  %v4439_v41 = vmul.f32 %v7283_v39, %v4417_v36  ;;  %v7253_v36 = vld [vmem:[%s8895_s2 + $0x268] sm:$0xff]  }
 0x63c   :  { %v4445_v45 = vmul.f32 %v4443_v31, %v4439_v41  ;;  %v4450_v34 = vadd.f32 %v4449_v56, %v4444_v29  ;;  %v5004_v31 = vadd.f32 %v5003_v23, %v5002_v15  ;;  %v5254_v41 = vrot.slane %v8531_v25, %v8403_v43 }
 0x63e   :  { %v4451_v46 = vadd.f32 %v4449_v56, %v4445_v45  ;;  %v4452_v48 = vmax.f32 %v4450_v34, 0.0  ;;  %v5005_v39 = vrot.slane %v5004_v31, 1 }
 0x640   :  { %v4453_v51 = vmax.f32 %v4451_v46, 0.0  ;;  %v5006_v50 = vadd.f32 %v5005_v39, %v5004_v31 }
 0x642   :  { %v4454_v52 = vpack.c.bf16 %v4453_v51, %v4452_v48 }
 0x644   :  { %6897 = vmatmul.mubr.bf16.vlgmr.msra.gmra.mrb[148].mxu1 %v4454_v52 }
 0x645   :  { %6901 = vmatpush3.bf16.msra.mxu1 %v7232_v44  ;;  %6916 = vmatprep.mubr.msk.bf16.mxu1 %vm7353_vm5, %v7352_v49 }
 0x646   :  { %6902 = vmatprep.subr.bf16.mxu1 %v7352_v49 }
 0x649   :  { %6903 = vmatpush3.bf16.msra.mxu1 %v7233_v55 }
 0x64a   :  { %6904 = vmatprep.subr.bf16.mxu1 %v7352_v49 }
 0x64d   :  { %6905 = vmatpush3.bf16.msra.mxu1 %v7234_v22 }
 0x64e   :  { %6906 = vmatprep.subr.bf16.mxu1 %v7352_v49 }
 0x651   :  { %6907 = vmatpush3.bf16.msra.mxu1 %v7235_v58 }
 0x652   :  { %6908 = vmatprep.subr.bf16.mxu1 %v7352_v49 }
 0x655   :  { %6909 = vmatpush3.bf16.msra.mxu1 %v7236_v59 }
 0x656   :  { %6910 = vmatprep.subr.bf16.mxu1 %v7352_v49 }
 0x659   :  { %6911 = vmatpush3.bf16.msra.mxu1 %v7237_v60  ;;  %v5007_v60 = vmul.f32 0.125, %v5006_v50 }
 0x65a   :  { %6912 = vmatprep.subr.bf16.mxu1 %v7352_v49 }
 0x65d   :  { %6913 = vmatpush3.bf16.msra.mxu1 %v7238_v53 }
 0x65e   :  { %6914 = vmatprep.subr.bf16.mxu1 %v7352_v49 }
 0x661   :  { %6915 = vmatpush3.bf16.msra.mxu1 %v7239_v57 }
 0x662   :  { %6920 = vmatprep.subr.bf16.mxu1 %v7352_v49 }
 0x664   :  { %6917 = vmatmul.mubr.bf16.vlgmr.msra.gmra.mrb[152].mxu1 %v8258_v54  ;;  %v7250_v54 = vld [vmem:[%s8895_s2 + $0x250] sm:$0xff]  }
 0x665   :  { %6936 = vmatprep.mubr.msk.bf16.mxu1 %vm7353_vm5, %v7352_v49  ;;  %6921 = vmatpush3.bf16.msra.mxu1 %v7248_v33 }
 0x666   :  { %6922 = vmatprep.subr.bf16.mxu1 %v7352_v49 }
 0x669   :  { %6923 = vmatpush3.bf16.msra.mxu1 %v7249_v3 }
 0x66a   :  { %6924 = vmatprep.subr.bf16.mxu1 %v7352_v49 }
 0x66d   :  { %6925 = vmatpush3.bf16.msra.mxu1 %v7250_v54 }
 0x66e   :  { %6926 = vmatprep.subr.bf16.mxu1 %v7352_v49 }
 0x671   :  { %6927 = vmatpush3.bf16.msra.mxu1 %v7251_v5 }
 0x672   :  { %6928 = vmatprep.subr.bf16.mxu1 %v7352_v49 }
 0x675   :  { %6929 = vmatpush3.bf16.msra.mxu1 %v7252_v7  ;;  %v8744_v7 = vsub.f32 %v4996_v2, %v5007_v60 }
 0x676   :  { %6930 = vmatprep.subr.bf16.mxu1 %v7352_v49 }
 0x679   :  { %6931 = vmatpush3.bf16.msra.mxu1 %v7253_v36 }
 0x67a   :  { %6932 = vmatprep.subr.bf16.mxu1 %v7352_v49 }
 0x67d   :  { %6933 = vmatpush3.bf16.msra.mxu1 %v7254_v62 }
 0x67e   :  { %6934 = vmatprep.subr.bf16.mxu1 %v7352_v49 }
 0x681   :  { %6935 = vmatpush3.bf16.msra.mxu1 %v7255_v4 }
 0x682   :  { %6960 = vmatprep.subr.bf16.mxu1 %v7352_v49 }
 0x6c1   :  { %v6998_v16 = vpop.f32.mrb[4].mxu0 }
 0x6c2   :  { %v5337_v34 = vpop.f32.mrb[5].mxu0  ;;  %v5346_v54 = vadd.f32 %v6998_v16, %v5254_v41 }
 0x6c3   :  { %v5338_v46 = vadd.f32 %v5337_v34, %v5254_v41  ;;  %v6999_v48 = vpop.f32.mrb[6].mxu0 }
 0x6c4   :  { %v5340_v44 = vpop.f32.mrb[7].mxu0 }
 0x6c5   :  { %v5351_v52 = vrot.slane %v5338_v46, 4  ;;  %v5341_v55 = vadd.f32 %v5340_v44, %v5254_v41 }
 0x6c7   :  { %v5352_v58 = vadd.f32 %v5351_v52, %v5338_v46  ;;  %v5357_v59 = vrot.slane %v5341_v55, 4 }
 0x6c9   :  { %v5353_v57 = vrot.slane %v5352_v58, 2  ;;  %v5358_v33 = vadd.f32 %v5357_v59, %v5341_v55 }
 0x6cb   :  { %v5354_v43 = vadd.f32 %v5353_v57, %v5352_v58  ;;  %v5359_v5 = vrot.slane %v5358_v33, 2 }
 0x6cd   :  { %v5355_v62 = vrot.slane %v5354_v43, 1  ;;  %v5360_v4 = vadd.f32 %v5359_v5, %v5358_v33 }
 0x717   :  { %v4541_v17 = vpop.f32.mrb[148].mxu1 }
 0x718   :  { %v6898_v8 = vpop.f32.mrb[149].mxu1  ;;  %v8731_v0 = vadd.f32 %v4541_v17, %v4458_v20 }
 0x719   :  { %v4544_v47 = vpop.f32.mrb[150].mxu1  ;;  %v5356_v8 = vadd.f32 %v5355_v62, %v5354_v43 }
 0x71a   :  { %v8729_v18 = vadd.f32 %v4544_v47, %v4458_v20  ;;  %v6899_v14 = vpop.f32.mrb[151].mxu1  ;;  %v4592_v24 = vmul.f32 %v8731_v0, %v8731_v0  ;;  %v5363_v20 = vrot.slane %v5346_v54, 4  ;;  %v5361_v47 = vrot.slane %v5360_v4, 1 }
 0x71b   :  { %v5009_v14 = vmul.f32 %v8744_v7, %v8744_v7 }
 0x71c   :  { %v4561_v19 = vmul.f32 %v8729_v18, %v8729_v18  ;;  %v5362_v30 = vadd.f32 %v5361_v47, %v5360_v4  ;;  %v5364_v15 = vadd.f32 %v5363_v20, %v5346_v54  ;;  %v4774_v4 = vrot.slane %v8531_v25, %v8526_v42  ;;  %v7256_v42 = vld [vmem:[%s8895_s2 + $0x2c0] sm:$0xff]  }
 0x71e   :  { %4562 = vadd.xlane.f32.xlu1 %v4561_v19  ;;  %v5370_v23 = vmul.f32 0.125, %v5362_v30  ;;  %v5365_v31 = vrot.slane %v5364_v15, 2 }
 0x722   :  { %4593 = vadd.xlane.f32.xlu1 %v4592_v24  ;;  %v5369_v24 = vmul.f32 0.125, %v5356_v8 }
 0x737   :  { %v4746_v6 = vpop.f32.mrb[152].mxu1 }
 0x738   :  { %v4747_v32 = vadd.f32 %v4746_v6, %v4663_v40  ;;  %v6918_v11 = vpop.f32.mrb[153].mxu1  ;;  %v5372_v40 = vsub.f32 %v5338_v46, %v5369_v24  ;;  %v5010_v6 = vrot.slane %v5009_v14, 4 }
 0x739   :  { %v4749_v35 = vpop.f32.mrb[154].mxu1  ;;  %v5373_v11 = vsub.f32 %v5341_v55, %v5370_v23 }
 0x73a   :  { %v4752_v37 = vrot.slane %v4747_v32, 4  ;;  %v6919_v38 = vpop.f32.mrb[155].mxu1 }
 0x73b   :  { %v5376_v38 = vmul.f32 %v5373_v11, %v5373_v11 }
 0x73c   :  { %v4753_v56 = vadd.f32 %v4752_v37, %v4747_v32 }
 0x73d   :  { %v5384_v41 = vrot.slane %v5376_v38, 4 }
 0x73e   :  { %v4754_v29 = vrot.slane %v4753_v56, 2 }
 0x73f   :  { %v5385_v48 = vadd.f32 %v5384_v41, %v5376_v38  ;;  %v7258_v41 = vld [vmem:[%s8895_s2 + $0x2d0] sm:$0xff]  }
 0x740   :  { %v4755_v45 = vadd.f32 %v4754_v29, %v4753_v56  ;;  %v5011_v56 = vadd.f32 %v5010_v6, %v5009_v14  ;;  %v4779_v14 = vrot.slane %v8619_v21, %v7611_v12 }
 0x741   :  { %v5386_v44 = vrot.slane %v5385_v48, 2 }
 0x742   :  { %v4756_v51 = vrot.slane %v4755_v45, 1  ;;  %v5012_v50 = vrot.slane %v5011_v56, 2 }
 0x743   :  { %v5387_v55 = vadd.f32 %v5386_v44, %v5385_v48  ;;  %v7259_v48 = vld [vmem:[%s8895_s2 + $0x2d8] sm:$0xff]   ;;  %v7260_v44 = vld [vmem:[%s8895_s2 + $0x2e0] sm:$0xff]  }
 0x744   :  { %v4757_v22 = vadd.f32 %v4756_v51, %v4755_v45  ;;  %v5366_v45 = vadd.f32 %v5365_v31, %v5364_v15  ;;  %v5013_v58 = vadd.f32 %v5012_v50, %v5011_v56  ;;  %v8765_v31 = vrot.slane %v8531_v25, %v8441_v1 }
 0x745   :  { %v5388_v60 = vrot.slane %v5387_v55, 1 }
 0x746   :  { %v4758_v53 = vmul.f32 0.125, %v4757_v22  ;;  %v5367_v52 = vrot.slane %v5366_v45, 1  ;;  %v5014_v43 = vrot.slane %v5013_v58, 1 }
 0x747   :  { %v5389_v33 = vadd.f32 %v5388_v60, %v5387_v55  ;;  %v5028_v60 = vrot.slane %v8619_v21, %v8441_v1  ;;  %v7264_v1 = vld [vmem:[%s8895_s2 + $0x1c0] sm:$0xff]  }
 0x748   :  { %v4759_v3 = vsub.f32 %v4747_v32, %v4758_v53  ;;  %v5375_v32 = vmul.f32 %v5372_v40, %v5372_v40  ;;  %v5368_v53 = vadd.f32 %v5367_v52, %v5366_v45  ;;  %v5015_v8 = vadd.f32 %v5014_v43, %v5013_v58  ;;  %v7261_v58 = vld [vmem:[%s8895_s2 + $0x2e8] sm:$0xff]  }
 0x74a   :  { %v4760_v36 = vmul.f32 %v4759_v3, %v4759_v3  ;;  %v5378_v37 = vrot.slane %v5375_v32, 4  ;;  %v5371_v62 = vmul.f32 0.125, %v5368_v53  ;;  %v5016_v30 = vmul.f32 0.125, %v5015_v8  ;;  %v7268_v8 = vld [vmem:[%s8895_s2 + $0x1e0] sm:$0xff]  }
 0x74c   :  { %v4761_v17 = vrot.slane %v4760_v36, 4  ;;  %v5379_v29 = vadd.f32 %v5378_v37, %v5375_v32  ;;  %v5017_v6 = vadd.f32 1e-05, %v5016_v30  ;;  %v7257_v37 = vld [vmem:[%s8895_s2 + $0x2c8] sm:$0xff]   ;;  %v7270_v30 = vld [vmem:[%s8895_s2 + $0x1f0] sm:$0xff]  }
 0x74e   :  { %v4762_v19 = vadd.f32 %v4761_v17, %v4760_v36  ;;  %v5380_v34 = vrot.slane %v5379_v29, 2  ;;  %v5397_v36 = vmul.f32 0.125, %v5389_v33  ;;  %v7263_v33 = vld [vmem:[%s8895_s2 + $0x2f8] sm:$0xff]  }
 0x750   :  { %v4763_v13 = vrot.slane %v4762_v19, 2  ;;  %v5381_v46 = vadd.f32 %v5380_v34, %v5379_v29  ;;  %v5400_v17 = vadd.f32 1e-05, %v5397_v36 }
 0x752   :  { %v4764_v2 = vadd.f32 %v4763_v13, %v4762_v19  ;;  %v5382_v22 = vrot.slane %v5381_v46, 1  ;;  %v8752_v19 = vsub.f32 %v5346_v54, %v5371_v62  ;;  %v7265_v62 = vld [vmem:[%s8895_s2 + $0x1c8] sm:$0xff]  }
 0x754   :  { %v4765_v35 = vrot.slane %v4764_v2, 1  ;;  %v5383_v59 = vadd.f32 %v5382_v22, %v5381_v46  ;;  %v5377_v15 = vmul.f32 %v8752_v19, %v8752_v19  ;;  %v5023_v22 = vrot.slane %v8619_v21, %v8434_v61 }
 0x756   :  { %v4766_v39 = vadd.f32 %v4765_v35, %v4764_v2  ;;  %v5396_v57 = vmul.f32 0.125, %v5383_v59  ;;  %v5390_v54 = vrot.slane %v5377_v15, 4 }
 0x758   :  { %v4767_v16 = vmul.f32 0.125, %v4766_v39  ;;  %v5399_v5 = vadd.f32 1e-05, %v5396_v57  ;;  %v5391_v39 = vadd.f32 %v5390_v54, %v5377_v15 }
 0x75a   :  { %v4768_v51 = vadd.f32 1e-05, %v4767_v16 }
 0x75c   :  { %7284 = vrsqrt.f32 %v4768_v51 }
 0x75d   :  { %7286 = vrsqrt.f32 %v5399_v5 }
 0x75e   :  { %7288 = vrsqrt.f32 %v5400_v17  ;;  %v7267_v17 = vld [vmem:[%s8895_s2 + $0x1d8] sm:$0xff]  }
 0x75f   :  { %7290 = vrsqrt.f32 %v5017_v6  ;;  %v4786_v6 = vrot.slane %v8619_v21, %v7657_v63  ;;  %v4579_v63 = vmul.f32 %v8612_v27, %v8612_v27 }
 0x766   :  { %v7285_v20 = vpop.eup %7284 }
 0x767   :  { %v4770_v47 = vmul.f32 %v7285_v20, %v4759_v3  ;;  %v8761_v3 = vrot.slane %v8531_v25, %v8434_v61  ;;  %v7287_v12 = vpop.eup %7286  ;;  %v7262_v61 = vld [vmem:[%s8895_s2 + $0x2f0] sm:$0xff]  }
 0x768   :  { %v7289_v32 = vpop.eup %7288  ;;  %v5405_v35 = vmul.f32 %v7287_v12, %v5372_v40 }
 0x769   :  { %v4775_v24 = vmul.f32 %v4774_v4, %v4770_v47  ;;  %v5406_v38 = vmul.f32 %v7289_v32, %v5373_v11  ;;  %v5392_v11 = vrot.slane %v5391_v39, 2  ;;  %v7291_v51 = vpop.eup %7290  ;;  %v7266_v4 = vld [vmem:[%s8895_s2 + $0x1d0] sm:$0xff]   ;;  %v5035_v32 = vrot.slane %v8619_v21, %v8482_v28 }
 0x76a   :  { %v5412_v56 = vmul.f32 %v8761_v3, %v5405_v35  ;;  %v5019_v52 = vmul.f32 %v7291_v51, %v8744_v7 }
 0x76b   :  { %v4780_v13 = vadd.f32 %v4779_v14, %v4775_v24  ;;  %v5413_v40 = vmul.f32 %v8761_v3, %v5406_v38  ;;  %v5393_v46 = vadd.f32 %v5392_v11, %v5391_v39  ;;  %v7269_v14 = vld [vmem:[%s8895_s2 + $0x1e8] sm:$0xff]   ;;  %v5430_v39 = vrot.slane %v8531_v25, %v8482_v28 }
 0x76c   :  { %v5419_v29 = vadd.f32 %v8765_v31, %v5412_v56  ;;  %v5024_v59 = vmul.f32 %v5023_v22, %v5019_v52 }
 0x76d   :  { %v4781_v23 = vmax.f32 %v4780_v13, 0.0  ;;  %v5420_v16 = vadd.f32 %v8765_v31, %v5413_v40  ;;  %v5394_v55 = vrot.slane %v5393_v46, 1 }
 0x76e   :  { %v5422_v45 = vmax.f32 %v5419_v29, 0.0  ;;  %v5029_v7 = vadd.f32 %v5028_v60, %v5024_v59 }
 0x76f   :  { %v4782_v2 = vpack.c.bf16 %v4781_v23, %v4781_v23  ;;  %v5423_v34 = vmax.f32 %v5420_v16, 0.0  ;;  %v5395_v53 = vadd.f32 %v5394_v55, %v5393_v46 }
 0x770   :  { %v5030_v43 = vmax.f32 %v5029_v7, 0.0 }
 0x771   :  { %6937 = vmatmul.mubr.bf16.vlgmr.msra.gmra.mrb[156].mxu1 %v4782_v2  ;;  %v5425_v50 = vpack.c.bf16 %v5423_v34, %v5422_v45  ;;  %v5398_v57 = vmul.f32 0.125, %v5395_v53 }
 0x772   :  { %6961 = vmatpush3.bf16.msra.mxu1 %v7256_v42  ;;  %6976 = vmatprep.mubr.msk.bf16.mxu1 %vm7353_vm5, %v7352_v49  ;;  %v5031_v36 = vpack.c.bf16 %v5030_v43, %v5030_v43 }
 0x773   :  { %6962 = vmatprep.subr.bf16.mxu1 %v7352_v49  ;;  %v5401_v5 = vadd.f32 1e-05, %v5398_v57 }
 0x775   :  { %7292 = vrsqrt.f32 %v5401_v5 }
 0x776   :  { %6963 = vmatpush3.bf16.msra.mxu1 %v7257_v37 }
 0x777   :  { %6964 = vmatprep.subr.bf16.mxu1 %v7352_v49 }
 0x77a   :  { %6965 = vmatpush3.bf16.msra.mxu1 %v7258_v41 }
 0x77b   :  { %6966 = vmatprep.subr.bf16.mxu1 %v7352_v49 }
 0x77e   :  { %6967 = vmatpush3.bf16.msra.mxu1 %v7259_v48 }
 0x77f   :  { %6968 = vmatprep.subr.bf16.mxu1 %v7352_v49  ;;  %v7293_v20 = vpop.eup %7292 }
 0x780   :  { %v5407_v47 = vmul.f32 %v7293_v20, %v8752_v19  ;;  %v7271_v19 = vld [vmem:[%s8895_s2 + $0x1f8] sm:$0xff]   ;;  %s5141_s2 = sld [smem:[#allocation2]] }
 0x782   :  { %6969 = vmatpush3.bf16.msra.mxu1 %v7260_v44  ;;  %v5414_v24 = vmul.f32 %v8761_v3, %v5407_v47 }
 0x783   :  { %6970 = vmatprep.subr.bf16.mxu1 %v7352_v49 }
 0x784   :  { %v5421_v13 = vadd.f32 %v8765_v31, %v5414_v24 }
 0x786   :  { %6971 = vmatpush3.bf16.msra.mxu1 %v7261_v58  ;;  %v5424_v15 = vmax.f32 %v5421_v13, 0.0 }
 0x787   :  { %6972 = vmatprep.subr.bf16.mxu1 %v7352_v49 }
 0x788   :  { %v5426_v23 = vpack.c.bf16 %v5424_v15, %v5424_v15 }
 0x78a   :  { %6973 = vmatpush3.bf16.msra.mxu1 %v7262_v61 }
 0x78b   :  { %6974 = vmatprep.subr.bf16.mxu1 %v7352_v49 }
 0x78e   :  { %6975 = vmatpush3.bf16.msra.mxu1 %v7263_v33 }
 0x78f   :  { %7000 = vmatprep.subr.bf16.mxu1 %v7264_v1 }
 0x791   :  { %6977 = vmatmul.mubr.bf16.vlgmr.msra.gmra.mrb[160].mxu1 %v5031_v36 }
 0x792   :  { %7001 = vmatpush3.bf16.msra.mxu1 %v7264_v1  ;;  %7016 = vmatprep.mubr.bf16.mxu1 %v5425_v50  ;;  %v4550_v50 = vpop.xlane.xlu1 %4549 }
 0x793   :  { %7002 = vmatprep.subr.bf16.mxu1 %v7265_v62  ;;  %vm4553_vm9 = vcmp.eq.f32.partialorder %v4550_v50, inf  ;;  %v4556_v59 = vand.u32 2147483648, %v4550_v50  ;;  %vm4555_vm11 = vcmp.eq.f32.partialorder %v4550_v50, 0.0 }
 0x796   :  { %7003 = vmatpush3.bf16.msra.mxu1 %v7265_v62 }
 0x797   :  { %7004 = vmatprep.subr.bf16.mxu1 %v7266_v4 }
 0x79a   :  { %7005 = vmatpush3.bf16.msra.mxu1 %v7266_v4 }
 0x79b   :  { %7006 = vmatprep.subr.bf16.mxu1 %v7267_v17 }
 0x79e   :  { %7007 = vmatpush3.bf16.msra.mxu1 %v7267_v17 }
 0x79f   :  { %7008 = vmatprep.subr.bf16.mxu1 %v7268_v8 }
 0x7a2   :  { %7009 = vmatpush3.bf16.msra.mxu1 %v7268_v8 }
 0x7a3   :  { %7010 = vmatprep.subr.bf16.mxu1 %v7269_v14 }
 0x7a6   :  { %7011 = vmatpush3.bf16.msra.mxu1 %v7269_v14 }
 0x7a7   :  { %7012 = vmatprep.subr.bf16.mxu1 %v7270_v30 }
 0x7aa   :  { %7013 = vmatpush3.bf16.msra.mxu1 %v7270_v30 }
 0x7ab   :  { %7014 = vmatprep.subr.bf16.mxu1 %v7271_v19  ;;  %v4563_v51 = vpop.xlane.xlu1 %4562 }
 0x7ac   :  { %7294 = vrsqrt.f32 %v4563_v51  ;;  %vm4566_vm8 = vcmp.eq.f32.partialorder %v4563_v51, inf  ;;  %v4569_v28 = vand.u32 2147483648, %v4563_v51  ;;  %vm4568_vm10 = vcmp.eq.f32.partialorder %v4563_v51, 0.0 }
 0x7ad   :  { %7296 = vrsqrt.f32 %v4550_v50 }
 0x7ae   :  { %7015 = vmatpush3.bf16.msra.mxu1 %v7271_v19 }
 0x7af   :  { %v4594_v20 = vpop.xlane.xlu1 %4593 }
 0x7b0   :  { %vm4597_vm12 = vcmp.eq.f32.partialorder %v4594_v20, inf  ;;  %v4600_v19 = vand.u32 2147483648, %v4594_v20  ;;  %vm4599_vm13 = vcmp.eq.f32.partialorder %v4594_v20, 0.0 }
 0x7b1   :  { %7017 = vmatmul.mubr.bf16.vlgmr.msra.gmra.mrb[164].mxu1 %v5426_v23 }
 0x7b6   :  { %v7295_v46 = vpop.eup %7294 }
 0x7b7   :  { %v7297_v44 = vpop.eup %7296  ;;  %v4565_v52 = vmul.f32 %v7295_v46, %v4563_v51 }
 0x7b8   :  { %v4552_v22 = vmul.f32 %v7297_v44, %v4550_v50 }
 0x7b9   :  { %v4567_v55 = vsel %vm4566_vm8, %v4563_v51, %v4565_v52  ;;  %vm4611_vm8 = vcmask 7168  }
 0x7ba   :  { %v4554_v25 = vsel %vm4553_vm9, %v4550_v50, %v4552_v22  ;;  %v4570_v58 = vsel %vm4568_vm10, %v4569_v28, %v4567_v55  ;;  %v5145_v22 = vstv %s5993_s16 }
 0x7bb   :  { %v4557_v60 = vsel %vm4555_vm11, %v4556_v59, %v4554_v25  ;;  %v4571_v53 = vmax.f32 %v4570_v58, 1e-12  ;;  %v5152_v58 = vstv %s5995_s17 }
 0x7bc   :  { %v4558_v57 = vmax.f32 %v4557_v60, 1e-12 }
 0x7bd   :  { %7298 = vrcp.f32 %v4571_v53 }
 0x7c7   :  { %v7299_v43 = vpop.eup %7298 }
 0x7c8   :  { %v4573_v62 = vmul.f32 %v7299_v43, %v8729_v18 }
 0x844   :  { %v4869_v42 = vpop.f32.mrb[156].mxu1 }
 0x845   :  { %v8835_v2 = vadd.f32 %v4869_v42, %v4786_v6  ;;  %v6938_v3 = vpop.f32.mrb[157].mxu1 }
 0x846   :  { %v4872_v12 = vpop.f32.mrb[158].mxu1 }
 0x847   :  { %5160 = vmax.xlane.f32.xlu0 %v8835_v2  ;;  %v6939_v54 = vpop.f32.mrb[159].mxu1 }
 0x864   :  { %v5118_v35 = vpop.f32.mrb[160].mxu1 }
 0x865   :  { %v8840_v31 = vadd.f32 %v5118_v35, %v5035_v32  ;;  %v6978_v37 = vpop.f32.mrb[161].mxu1 }
 0x866   :  { %v5121_v38 = vpop.f32.mrb[162].mxu1 }
 0x867   :  { %5187 = vmax.xlane.f32.xlu0 %v8840_v31  ;;  %v6979_v56 = vpop.f32.mrb[163].mxu1 }
 0x86b   :  { %4580 = vadd.xlane.f32.xlu0 %v4579_v63 }
 0x884   :  { %v7018_v40 = vpop.f32.mrb[164].mxu1 }
 0x885   :  { %v5522_v29 = vadd.f32 %v7018_v40, %v5430_v39  ;;  %v5513_v41 = vpop.f32.mrb[165].mxu1  ;;  %v5132_v40 = vand.u32 1, %v7605_v10 }
 0x886   :  { %v5514_v16 = vadd.f32 %v5513_v41, %v5430_v39  ;;  %v7019_v21 = vpop.f32.mrb[166].mxu1 }
 0x887   :  { %v5516_v45 = vpop.f32.mrb[167].mxu1  ;;  %vm8860_vm0 = vcmp.eq.s32.totalorder %v5132_v40, 0  ;;  %vm8866_vm1 = vcmp.eq.s32.totalorder %v5132_v40, 1 }
 0x888   :  { %v5517_v11 = vadd.f32 %v5516_v45, %v5430_v39  ;;  %v5539_v34 = vsub.f32 %v5514_v16, %v5522_v29  ;;  %v5125_v45 = vand.u32 127, %v308_v9  ;;  %v5146_v25 = vsel %vm8860_vm0, %v5145_v22, 0 }
 0x88a   :  { %v5527_v48 = vsub.f32 %v5514_v16, %v5517_v11  ;;  %v5540_v12 = vmul.f32 %v5539_v34, %v5539_v34  ;;  %v5142_v16 = vstv %s5141_s2 }
 0x88b   :  { %v5143_v21 = vsel %vm8860_vm0, %v5142_v16, 0 }
 0x88c   :  { %v5528_v36 = vmul.f32 %v5527_v48, %v5527_v48 }
 0x8d4   :  { %v8847_v61 = vpop.xlane.xlu0 %5160 }
 0x8d5   :  { %v5162_v7 = vsub.f32 %v8835_v2, %v8847_v61 }
 0x8d7   :  { %v5163_v33 = vmul.f32 1.442695, %v5162_v7 }
 0x8d9   :  { %7300 = vpow2.f32 %v5163_v33 }
 0x8da   :  { %7302 = vrcp.f32 %v4558_v57 }
 0x8db   :  { %7304 = vrsqrt.f32 %v4594_v20 }
 0x8e3   :  { %v7301_v1 = vpop.eup %7300 }
 0x8e4   :  { %5165 = vadd.xlane.f32.xlu0 %v7301_v1  ;;  %v7303_v5 = vpop.eup %7302 }
 0x8e5   :  { %v4560_v4 = vmul.f32 %v7303_v5, %v8610_v26  ;;  %v7305_v24 = vpop.eup %7304 }
 0x8e6   :  { %v4596_v13 = vmul.f32 %v7305_v24, %v4594_v20 }
 0x8e7   :  { %v4574_v17 = vmul.f32 %v4573_v62, %v4560_v4 }
 0x8e8   :  { %5529 = vadd.xlane.f32.xlu0 %v5528_v36  ;;  %v4598_v18 = vsel %vm4597_vm12, %v4594_v20, %v4596_v13 }
 0x8e9   :  { %v4601_v26 = vsel %vm4599_vm13, %v4600_v19, %v4598_v18 }
 0x8ea   :  { %v4602_v6 = vmax.f32 %v4601_v26, 1e-12 }
 0x8ec   :  { %4575 = vadd.xlane.f32.xlu0 %v4574_v17 }
 0x8f4   :  { %v8853_v8 = vpop.xlane.xlu0 %5187 }
 0x8f5   :  { %v5189_v47 = vsub.f32 %v8840_v31, %v8853_v8 }
 0x8f7   :  { %v5190_v14 = vmul.f32 1.442695, %v5189_v47 }
 0x8f8   :  { %v4581_v30 = vpop.xlane.xlu0 %4580 }
 0x8f9   :  { %7306 = vpow2.f32 %v5190_v14  ;;  %vm4584_vm14 = vcmp.eq.f32.partialorder %v4581_v30, inf  ;;  %v4587_v3 = vand.u32 2147483648, %v4581_v30  ;;  %vm4586_vm15 = vcmp.eq.f32.partialorder %v4581_v30, 0.0 }
 0x8fa   :  { %7308 = vrsqrt.f32 %v4581_v30 }
 0x8fb   :  { %7310 = vrcp.f32 %v4602_v6 }
 0x903   :  { %v7307_v15 = vpop.eup %7306 }
 0x904   :  { %v7309_v23 = vpop.eup %7308  ;;  %5192 = vadd.xlane.f32.xlu1 %v7307_v15 }
 0x905   :  { %v4583_v42 = vmul.f32 %v7309_v23, %v4581_v30  ;;  %v7311_v37 = vpop.eup %7310 }
 0x906   :  { %v4604_v63 = vmul.f32 %v7311_v37, %v8731_v0  ;;  %v5149_v0 = vstv %s5994_s15 }
 0x907   :  { %v4585_v54 = vsel %vm4584_vm14, %v4581_v30, %v4583_v42  ;;  %v5150_v10 = vsel %vm8866_vm1, %v5149_v0, %v5143_v21 }
 0x908   :  { %v4588_v32 = vsel %vm4586_vm15, %v4587_v3, %v4585_v54  ;;  %5541 = vadd.xlane.f32.xlu1 %v5540_v12  ;;  %vm5154_vm2 = vcmp.eq.s32.totalorder %v5125_v45, %v5150_v10 }
 0x909   :  { %v4589_v35 = vmax.f32 %v4588_v32, 1e-12  ;;  %v5996_v50 = vsel %vm5154_vm2, 1.0, %v7352_v49 }
 0x90b   :  { %7312 = vrcp.f32 %v4589_v35 }
 0x915   :  { %v7313_v38 = vpop.eup %7312 }
 0x916   :  { %v4591_v56 = vmul.f32 %v7313_v38, %v8612_v27 }
 0x918   :  { %v4605_v39 = vmul.f32 %v4604_v63, %v4591_v56 }
 0x91a   :  { %4606 = vadd.xlane.f32.xlu1 %v4605_v39 }
 0x971   :  { %v5166_v29 = vpop.xlane.xlu0 %5165 }
 0x972   :  { %7314 = vlog2.f32 %v5166_v29 }
 0x975   :  { %v5530_v44 = vpop.xlane.xlu0 %5529 }
 0x976   :  { %v5531_v52 = vadd.f32 1e-12, %v5530_v44 }
 0x978   :  { %7316 = vrsqrt.f32 %v5531_v52  ;;  %vm5534_vm4 = vcmp.eq.f32.partialorder %v5531_v52, inf  ;;  %v5537_v4 = vand.u32 2147483648, %v5531_v52  ;;  %vm5536_vm6 = vcmp.eq.f32.partialorder %v5531_v52, 0.0 }
 0x979   :  { %v4576_v1 = vpop.xlane.xlu0 %4575 }
 0x97a   :  { %v4577_v47 = vmul.f32 2.0, %v4576_v1 }
 0x97c   :  { %v7315_v11 = vpop.eup %7314 }
 0x97d   :  { %v5168_v34 = vmul.f32 0.6931472, %v7315_v11 }
 0x97f   :  { %v5169_v48 = vadd.f32 %v5168_v34, %v8847_v61 }
 0x981   :  { %v5170_v51 = vsub.f32 %v5169_v48, %v8835_v2  ;;  %v5153_v2 = vsel %vm8866_vm1, %v5152_v58, %v5146_v25 }
 0x982   :  { %v7317_v59 = vpop.eup %7316  ;;  %vm5157_vm3 = vcmp.eq.s32.totalorder %v5125_v45, %v5153_v2 }
 0x983   :  { %v5171_v46 = vmul.f32 %v5996_v50, %v5170_v51  ;;  %v5533_v7 = vmul.f32 %v7317_v59, %v5531_v52  ;;  %v5997_v57 = vsel %vm5157_vm3, 1.0, %v7352_v49 }
 0x985   :  { %5172 = vadd.xlane.f32.xlu0 %v5171_v46  ;;  %v5535_v36 = vsel %vm5534_vm4, %v5531_v52, %v5533_v7 }
 0x991   :  { %v5193_v9 = vpop.xlane.xlu1 %5192 }
 0x992   :  { %7318 = vlog2.f32 %v5193_v9 }
 0x995   :  { %v5542_v55 = vpop.xlane.xlu1 %5541 }
 0x996   :  { %v5543_v28 = vadd.f32 1e-12, %v5542_v55 }
 0x998   :  { %7320 = vrsqrt.f32 %v5543_v28  ;;  %vm5546_vm5 = vcmp.eq.f32.partialorder %v5543_v28, inf  ;;  %v5549_v17 = vand.u32 2147483648, %v5543_v28  ;;  %vm5548_vm7 = vcmp.eq.f32.partialorder %v5543_v28, 0.0 }
 0x99c   :  { %v7319_v60 = vpop.eup %7318 }
 0x99d   :  { %v5195_v53 = vmul.f32 0.6931472, %v7319_v60 }
 0x99f   :  { %v5196_v61 = vadd.f32 %v5195_v53, %v8853_v8  ;;  %v5538_v8 = vsel %vm5536_vm6, %v5537_v4, %v5535_v36 }
 0x9a1   :  { %v5197_v33 = vsub.f32 %v5196_v61, %v8840_v31  ;;  %v4578_v31 = vsub.f32 2.0, %v4577_v47 }
 0x9a2   :  { %v7321_v43 = vpop.eup %7320 }
 0x9a3   :  { %v5198_v5 = vmul.f32 %v5997_v57, %v5197_v33  ;;  %v5545_v62 = vmul.f32 %v7321_v43, %v5543_v28 }
 0x9a5   :  { %5199 = vadd.xlane.f32.xlu1 %v5198_v5  ;;  %v5547_v20 = vsel %vm5546_vm5, %v5543_v28, %v5545_v62 }
 0x9a6   :  { %v5550_v14 = vsel %vm5548_vm7, %v5549_v17, %v5547_v20 }
 0x9a7   :  { %v4607_v24 = vpop.xlane.xlu1 %4606  ;;  %v5551_v49 = vsub.f32 %v5538_v8, %v5550_v14 }
 0x9a8   :  { %v4608_v30 = vmul.f32 2.0, %v4607_v24 }
 0x9a9   :  { %v5552_v26 = vadd.f32 1.0, %v5551_v49 }
 0x9aa   :  { %v4609_v13 = vsub.f32 2.0, %v4608_v30 }
 0x9ab   :  { %v5553_v6 = vmax.f32 %v5552_v26, 0.0 }
 0x9ac   :  { %v4610_v18 = vadd.f32 %v4609_v13, %v4578_v31 }
 0x9ad   :  { %v5554_v42 = vsel %vm4611_vm8, %v5553_v6, 0.0 }
 0x9ae   :  { %v4612_v19 = vsel %vm4611_vm8, %v4610_v18, 0.0 }
 0x9af   :  { %4613 = vadd.xlane.f32.xlu0 %v4612_v19 }
 0xa12   :  { %v5173_v15 = vpop.xlane.xlu0 %5172 }
 0xa13   :  { %v5174_v23 = vsel %vm4611_vm8, %v5173_v15, 0.0 }
 0xa14   :  { %5175 = vadd.xlane.f32.xlu1 %v5174_v23 }
 0xa18   :  { %5555 = vadd.xlane.f32.xlu1 %v5554_v42 }
 0xa32   :  { %v5200_v3 = vpop.xlane.xlu1 %5199 }
 0xa33   :  { %v5201_v12 = vsel %vm4611_vm8, %v5200_v3, 0.0 }
 0xa34   :  { %5202 = vadd.xlane.f32.xlu0 %v5201_v12 }
 0xa3c   :  { %v4614_v54 = vpop.xlane.xlu0 %4613 }
 0xa3d   :  { %v4615_v32 = vrot.slane %v4614_v54, 4 }
 0xa3f   :  { %v4616_v35 = vadd.f32 %v4615_v32, %v4614_v54 }
 0xa41   :  { %v4617_v37 = vrot.slane %v4616_v35, 2 }
 0xa43   :  { %v4618_v38 = vadd.f32 %v4617_v37, %v4616_v35 }
 0xa45   :  { %v4619_v56 = vrot.slane %v4618_v38, 1 }
 0xa47   :  { %v4620_v63 = vadd.f32 %v4619_v56, %v4618_v38 }
 0xa49   :  { %7020 = vpush %v4620_v63 }
 0xa7a   :  { %s8883_s1 = spop %7020 }
 0xa7b   :  { %s4624_s18 = smul.f32 0.125, %s8883_s1 }
 0xa7d   :  { %5572 = sst [smem:[#allocation5 + $0x1]] %s4624_s18 }
 0xaa1   :  { %v5176_v39 = vpop.xlane.xlu1 %5175 }
 0xaa2   :  { %v5177_v40 = vrot.slane %v5176_v39, 4 }
 0xaa4   :  { %v5178_v29 = vadd.f32 %v5177_v40, %v5176_v39 }
 0xaa5   :  { %v5556_v0 = vpop.xlane.xlu1 %5555 }
 0xaa6   :  { %v5179_v41 = vrot.slane %v5178_v29, 2  ;;  %v5557_v45 = vrot.slane %v5556_v0, 4 }
 0xaa8   :  { %v5180_v16 = vadd.f32 %v5179_v41, %v5178_v29  ;;  %v5558_v10 = vadd.f32 %v5557_v45, %v5556_v0 }
 0xaaa   :  { %v5181_v21 = vrot.slane %v5180_v16, 1  ;;  %v5559_v11 = vrot.slane %v5558_v10, 2 }
 0xaac   :  { %v5182_v27 = vadd.f32 %v5181_v21, %v5180_v16  ;;  %v5560_v51 = vadd.f32 %v5559_v11, %v5558_v10 }
 0xaae   :  { %7022 = vpush %v5182_v27  ;;  %v5561_v52 = vrot.slane %v5560_v51, 1 }
 0xab0   :  { %v5562_v55 = vadd.f32 %v5561_v52, %v5560_v51 }
 0xac1   :  { %v5203_v34 = vpop.xlane.xlu0 %5202 }
 0xac2   :  { %v5204_v48 = vrot.slane %v5203_v34, 4 }
 0xac4   :  { %v5205_v50 = vadd.f32 %v5204_v48, %v5203_v34 }
 0xac6   :  { %v5206_v46 = vrot.slane %v5205_v50, 2 }
 0xac8   :  { %v5207_v44 = vadd.f32 %v5206_v46, %v5205_v50 }
 0xaca   :  { %v5208_v9 = vrot.slane %v5207_v44, 1 }
 0xacc   :  { %v5209_v22 = vadd.f32 %v5208_v9, %v5207_v44 }
 0xace   :  { %7024 = vpush %v5209_v22 }
 0xacf   :  { %7026 = vpush %v5562_v55 }
 0xadf   :  { %s7023_s19 = spop %7022 }
 0xae0   :  { %s5186_s20 = smul.f32 0.125, %s7023_s19 }
 0xaff   :  { %s7025_s21 = spop %7024 }
 0xb00   :  { %s5213_s22 = smul.f32 0.125, %s7025_s21  ;;  %s7027_s23 = spop %7026 }
 0xb01   :  { %s5566_s0 = smul.f32 0.125, %s7027_s23 }
 0xb02   :  { %s5214_s24 = sadd.f32 %s5213_s22, %s5186_s20 }
 0xb03   :  { %5576 = sst [smem:[#allocation5 + $0x3]] %s5566_s0 }
 0xb04   :  { %5574 = sst [smem:[#allocation5 + $0x2]] %s5214_s24 }
 0xb05   :  { %s5567_s28 = sadd.f32 %s5214_s24, %s4624_s18 }
 0xb07   :  { %s5568_s29 = sadd.f32 %s5567_s28, %s5566_s0 }
 0xb09   :  { %5570 = sst [smem:[#allocation5]] %s5568_s29 }
 0xb0a   :  { %7346 = shalt.err (!%p7343_p9)
}
 0xb0b   :  { %s7354_s5 = smov [#allocation5]  }
 0xb0c   :  { %5586 = dma.smem_to_vmem %s7354_s5, 16, %s5584_s27, [#allocation4]  }
 0xb0d   :  { %7349 = dma.done.wait [#allocation4], 16  }
 0xb0e   :  { %7350 = vsyncadd [#allocation4], 4294967280 }
 0xb0f   :  { %5590 = sfence }
 0xb10   :  { %5591 = vsyncpa [#allocation3], 1 }
 0xb11   :  { %5592 = vsyncpa [#allocation4], 1 }

</bundles_post_ra>
